<compile_context>
chip_gen: v7x
topology: tpu7x:2x2x1
jax: 0.10.0
libtpu: 0.0.40
codegen_flags: <defaults>
</compile_context>

<pallas_src>
import functools

import jax
import jax.numpy as jnp
from jax.experimental import pallas as pl
from jax.experimental.pallas import tpu as pltpu


# ------------------------------ Pallas kernel ------------------------------ #

def _mbconv_stack_kernel(x_ref, w1_ref, b1_ref, wdw_ref, bdw_ref, w3_ref, b3_ref,
                         o_ref, state_ref, hpad_ref, *, H, W, hidden, pad_l):
    """One grid step = one MBConv block (conv1+BN+GELU, dwconv+BN+GELU,
    conv3+BN, residual, GELU) for one batch element, fully in VMEM."""
    d = pl.program_id(1)
    wpad = pad_l + W + pad_l                       # padded column count (aligned)

    @pl.when(d == 0)
    def _():
        # Load the ConvLayer input into the resident activation carry.
        state_ref[...] = x_ref[0]
        # Zero only the halo border of the dw-conv pad buffer: the interior is
        # fully overwritten every block and the border is never written, so
        # this runs once per batch element instead of a full-buffer zero per
        # block.  (Safe under megacore: d == 0 fires for every b on its core.)
        zrow = jnp.zeros((wpad, hidden), jnp.float32)
        hpad_ref[0] = zrow
        hpad_ref[H + 1] = zrow
        hpad_ref[:, 0:pad_l, :] = jnp.zeros((H + 2, pad_l, hidden), jnp.float32)
        hpad_ref[:, pad_l + W:, :] = jnp.zeros((H + 2, wpad - pad_l - W, hidden),
                                               jnp.float32)

    xin = state_ref[...]                                       # [H*W, dim] f32 (shortcut)

    # ---- conv1: 1x1 (BN folded) + GELU, dim -> hidden, bf16 MXU / f32 acc --
    h1 = jnp.dot(xin.astype(jnp.bfloat16), w1_ref[d],
                 preferred_element_type=jnp.float32)           # [H*W, hidden]
    h1 = jax.nn.gelu(h1 + b1_ref[d], approximate=True)

    # ---- conv2: 3x3 depthwise (BN folded) + GELU, f32 VPU, XLU shifts ------
    # Interior store starts at a sublane-aligned column -> unmasked stores.
    hpad_ref[1:H + 1, pad_l:pad_l + W, :] = h1.reshape(H, W, hidden)
    wdw = wdw_ref[d]                                           # [9, hidden] f32
    acc = None
    for ky in range(3):
        # Aligned full-width row slab (row offsets live on the outer axis).
        slab = hpad_ref[ky:ky + H, :, :]                       # [H, wpad, hidden]
        for kx in range(3):
            if kx == 1:
                src = slab
            else:
                # +-1 column shift on the XLU; the [pad_l:pad_l+W] slice below
                # stays sublane-aligned and never reads wrapped columns.
                src = pltpu.roll(slab, shift=(1 - kx) % wpad, axis=1)
            window = src[:, pad_l:pad_l + W, :]                # [H, W, hidden]
            term = window * wdw[ky * 3 + kx].reshape(1, 1, hidden)
            acc = term if acc is None else acc + term          # first tap inits acc
    h2 = jax.nn.gelu(acc + bdw_ref[d].reshape(1, 1, hidden), approximate=True)
    h2 = h2.reshape(H * W, hidden)

    # ---- conv3: 1x1 (BN folded) + residual + GELU --------------------------
    y = jnp.dot(h2.astype(jnp.bfloat16), w3_ref[d],
                preferred_element_type=jnp.float32)            # [H*W, dim]
    out = jax.nn.gelu(y + b3_ref[d] + xin, approximate=True)

    # Carry the activation to the next block; emit output after the last one.
    state_ref[...] = out

    @pl.when(d == pl.num_programs(1) - 1)
    def _():
        o_ref[0] = out.astype(o_ref.dtype)


# ------------------------------ host-side glue ----------------------------- #

def _fold_bn(w, g, b, m, v, eps):
    """Fold eval-mode BatchNorm into a bias-free conv weight."""
    s = g / jnp.sqrt(v + eps)
    return w * s.reshape(-1, 1, 1, 1), b - m * s


def _pack_block_params(blocks, eps):
    """Fold BN and stack per-block weights along a leading depth axis."""
    w1_l, b1_l, wdw_l, bdw_l, w3_l, b3_l = [], [], [], [], [], []
    for blk in blocks:
        w1f, b1f = _fold_bn(blk["w1"], *blk["bn1"], eps)        # (hidden, dim, 1, 1)
        wdwf, bdwf = _fold_bn(blk["wdw"], *blk["bn2"], eps)     # (hidden, 1, 3, 3)
        w3f, b3f = _fold_bn(blk["w3"], *blk["bn3"], eps)        # (dim, hidden, 1, 1)
        hidden = w1f.shape[0]
        dim = w3f.shape[0]
        w1_l.append(jnp.transpose(w1f[:, :, 0, 0], (1, 0)))                 # [dim, hidden]
        b1_l.append(b1f.reshape(1, hidden))
        wdw_l.append(jnp.transpose(wdwf, (2, 3, 1, 0)).reshape(9, hidden))  # [9, hidden]
        bdw_l.append(bdwf.reshape(1, hidden))
        w3_l.append(jnp.transpose(w3f[:, :, 0, 0], (1, 0)))                 # [hidden, dim]
        b3_l.append(b3f.reshape(1, dim))
    stack = lambda lst: jnp.stack(lst, axis=0)
    return (stack(w1_l).astype(jnp.bfloat16), stack(b1_l),
            stack(wdw_l), stack(bdw_l),
            stack(w3_l).astype(jnp.bfloat16), stack(b3_l))


def conv_layer_forward(x_nchw, blocks, eps=1e-5):
    """ConvLayer.forward (depth x MBConv, downsample=None). NCHW in/out."""
    # TODO(synk): optional downsample module (PatchMerging) not implemented;
    #             this configuration uses downsample=None as in the default.
    B, C, H, W = x_nchw.shape
    depth = len(blocks)
    w1, b1, wdw, bdw, w3, b3 = _pack_block_params(blocks, eps)
    hidden = w1.shape[2]
    dim = C

    pad_l = 8                          # sublane-aligned interior start for the pad buffer
    wpad = pad_l + W + pad_l

    x_flat = jnp.transpose(x_nchw, (0, 2, 3, 1)).reshape(B, H * W, dim)

    kernel = functools.partial(_mbconv_stack_kernel, H=H, W=W, hidden=hidden,
                               pad_l=pad_l)

    out_flat = pl.pallas_call(
        kernel,
        out_shape=jax.ShapeDtypeStruct((B, H * W, dim), jnp.float32),
        grid_spec=pltpu.PrefetchScalarGridSpec(
            num_scalar_prefetch=0,
            grid=(B, depth),
            in_specs=[
                pl.BlockSpec((1, H * W, dim), lambda b, d: (b, 0, 0)),          # x
                # Weights/biases: full-depth blocks with constant index_map ->
                # VMEM-resident across the whole grid (indexed with d in-kernel).
                pl.BlockSpec((depth, dim, hidden), lambda b, d: (0, 0, 0)),     # w1 (bf16)
                pl.BlockSpec((depth, 1, hidden), lambda b, d: (0, 0, 0)),       # b1
                pl.BlockSpec((depth, 9, hidden), lambda b, d: (0, 0, 0)),       # w_dw
                pl.BlockSpec((depth, 1, hidden), lambda b, d: (0, 0, 0)),       # b_dw
                pl.BlockSpec((depth, hidden, dim), lambda b, d: (0, 0, 0)),     # w3 (bf16)
                pl.BlockSpec((depth, 1, dim), lambda b, d: (0, 0, 0)),          # b3
            ],
            out_specs=pl.BlockSpec((1, H * W, dim), lambda b, d: (b, 0, 0)),
            scratch_shapes=[
                pltpu.VMEM((H * W, dim), jnp.float32),          # resident activation carry
                pltpu.VMEM((H + 2, wpad, hidden), jnp.float32),  # dw-conv pad buffer
            ],
        ),
        compiler_params=pltpu.CompilerParams(
            dimension_semantics=("parallel", "arbitrary"),
            vmem_limit_bytes=32 * 1024 * 1024,
        ),
    )(x_flat, w1, b1, wdw, bdw, w3, b3)

    return jnp.transpose(out_flat.reshape(B, H, W, dim), (0, 3, 1, 2))


# ---------------------------- pure-JAX reference --------------------------- #

def _ref_forward(x, blocks, eps=1e-5):
    def conv_bn(x, w, bn, groups=1):
        g, b, m, v = bn
        kh, kw = w.shape[2], w.shape[3]
        y = jax.lax.conv_general_dilated(
            x, w, window_strides=(1, 1),
            padding=((kh // 2, kh // 2), (kw // 2, kw // 2)),
            dimension_numbers=("NCHW", "OIHW", "NCHW"),
            feature_group_count=groups)
        s = g / jnp.sqrt(v + eps)
        return y * s[None, :, None, None] + (b - m * s)[None, :, None, None]

    gelu = lambda t: jax.nn.gelu(t, approximate=False)   # torch.nn.GELU default (erf)
    for blk in blocks:
        shortcut = x
        h = gelu(conv_bn(x, blk["w1"], blk["bn1"]))
        h = gelu(conv_bn(h, blk["wdw"], blk["bn2"], groups=h.shape[1]))
        h = conv_bn(h, blk["w3"], blk["bn3"])
        x = gelu(h + shortcut)
    return x


# ---------------------------------- main ----------------------------------- #

if __name__ == "__main__":
    B, dim, H, W = 2, 32, 16, 16
    depth = 2
    expand_ratio = 4
    hidden = dim * expand_ratio          # 128 -> lane-dense intermediate
    eps = 1e-5

    key = jax.random.PRNGKey(0)
    keys = jax.random.split(key, 1 + depth * 6)
    x = jax.random.normal(keys[0], (B, dim, H, W), dtype=jnp.float32)

    def bn_params(k, c):
        k1, k2, k3, k4 = jax.random.split(k, 4)
        g = 1.0 + 0.1 * jax.random.normal(k1, (c,), jnp.float32)
        b = 0.1 * jax.random.normal(k2, (c,), jnp.float32)
        m = 0.1 * jax.random.normal(k3, (c,), jnp.float32)
        v = 1.0 + 0.1 * jax.random.uniform(k4, (c,), jnp.float32)
        return g, b, m, v

    blocks = []
    ki = 1
    for _ in range(depth):
        w1 = 0.1 * jax.random.normal(keys[ki], (hidden, dim, 1, 1), jnp.float32); ki += 1
        wdw = 0.1 * jax.random.normal(keys[ki], (hidden, 1, 3, 3), jnp.float32); ki += 1
        w3 = 0.1 * jax.random.normal(keys[ki], (dim, hidden, 1, 1), jnp.float32); ki += 1
        bn1 = bn_params(keys[ki], hidden); ki += 1
        bn2 = bn_params(keys[ki], hidden); ki += 1
        bn3 = bn_params(keys[ki], dim); ki += 1
        blocks.append(dict(w1=w1, wdw=wdw, w3=w3, bn1=bn1, bn2=bn2, bn3=bn3))

    out = jax.block_until_ready(conv_layer_forward(x, blocks, eps=eps))
    assert out.shape == (B, dim, H, W), out.shape

    ref = jax.block_until_ready(_ref_forward(x, blocks, eps=eps))
    max_err = float(jnp.max(jnp.abs(out - ref)))
    # bf16 MXU inputs + tanh-approx GELU vs the f32/erf reference -> ~1e-2 slack.
    assert jnp.allclose(out, ref, atol=3e-2, rtol=3e-2), max_err

    print("KERNEL_OK")
</pallas_src>

<mosaic_0001>
module attributes {stable_mosaic.version = 11 : i64} {
  func.func @_mbconv_stack_kernel(%arg0: i32, %arg1: i32, %arg2: memref<1x256x32xf32, #tpu.memory_space<vmem>>, %arg3: memref<2x32x128xbf16, #tpu.memory_space<vmem>>, %arg4: memref<2x1x128xf32, #tpu.memory_space<vmem>>, %arg5: memref<2x9x128xf32, #tpu.memory_space<vmem>>, %arg6: memref<2x1x128xf32, #tpu.memory_space<vmem>>, %arg7: memref<2x128x32xbf16, #tpu.memory_space<vmem>>, %arg8: memref<2x1x32xf32, #tpu.memory_space<vmem>>, %arg9: memref<1x256x32xf32, #tpu.memory_space<vmem>>, %arg10: memref<256x32xf32, #tpu.memory_space<vmem>>, %arg11: memref<18x32x128xf32, #tpu.memory_space<vmem>>) attributes {dimension_semantics = [#tpu.dimension_semantics<parallel>, #tpu.dimension_semantics<arbitrary>], iteration_bounds = array<i64: 2, 2>, scalar_prefetch = 0 : i64, scratch_operands = 2 : i64, tpu.core_type = #tpu.core_type<tc>, window_params = [{transform_indices = @transform_0, window_bounds = array<i64: 1, 256, 32>}, {pipeline_mode = #tpu.pipeline_mode<synchronous>, transform_indices = @transform_1, window_bounds = array<i64: 2, 32, 128>}, {pipeline_mode = #tpu.pipeline_mode<synchronous>, transform_indices = @transform_2, window_bounds = array<i64: 2, 1, 128>}, {pipeline_mode = #tpu.pipeline_mode<synchronous>, transform_indices = @transform_3, window_bounds = array<i64: 2, 9, 128>}, {pipeline_mode = #tpu.pipeline_mode<synchronous>, transform_indices = @transform_4, window_bounds = array<i64: 2, 1, 128>}, {pipeline_mode = #tpu.pipeline_mode<synchronous>, transform_indices = @transform_5, window_bounds = array<i64: 2, 128, 32>}, {pipeline_mode = #tpu.pipeline_mode<synchronous>, transform_indices = @transform_6, window_bounds = array<i64: 2, 1, 32>}, {transform_indices = @transform_7, window_bounds = array<i64: 1, 256, 32>}]} {
    %c0_i32 = arith.constant 0 : i32
    %0 = arith.cmpi eq, %arg1, %c0_i32 : i32
    %1 = arith.extui %0 : i1 to i32
    %c0_i32_0 = arith.constant 0 : i32
    %2 = arith.cmpi ne, %1, %c0_i32_0 : i32
    scf.if %2 {
      %c0_44 = arith.constant 0 : index
      %c0_45 = arith.constant 0 : index
      %c0_46 = arith.constant 0 : index
      %151 = vector.load %arg2[%c0_44, %c0_45, %c0_46] : memref<1x256x32xf32, #tpu.memory_space<vmem>>, vector<1x256x32xf32>
      %152 = vector.shape_cast %151 : vector<1x256x32xf32> to vector<256x32xf32>
      %c0_47 = arith.constant 0 : index
      %c0_48 = arith.constant 0 : index
      %153 = vector.load %arg10[%c0_47, %c0_48] : memref<256x32xf32, #tpu.memory_space<vmem>>, vector<256x32xf32>
      tpu.vector_store %arg10[%c0_47, %c0_48], %152 {strides = array<i32>} : memref<256x32xf32, #tpu.memory_space<vmem>>, vector<256x32xf32>,
      %cst_49 = arith.constant 0.000000e+00 : f32
      %154 = vector.broadcast %cst_49 : f32 to vector<32x128xf32>
      %c0_50 = arith.constant 0 : index
      %c0_51 = arith.constant 0 : index
      %c0_52 = arith.constant 0 : index
      %155 = vector.load %arg11[%c0_50, %c0_51, %c0_52] : memref<18x32x128xf32, #tpu.memory_space<vmem>>, vector<1x32x128xf32>
      %156 = vector.shape_cast %155 : vector<1x32x128xf32> to vector<32x128xf32>
      %157 = vector.shape_cast %154 : vector<32x128xf32> to vector<1x32x128xf32>
      tpu.vector_store %arg11[%c0_50, %c0_51, %c0_52], %157 {strides = array<i32>} : memref<18x32x128xf32, #tpu.memory_space<vmem>>, vector<1x32x128xf32>,
      %c17 = arith.constant 17 : index
      %c0_53 = arith.constant 0 : index
      %c0_54 = arith.constant 0 : index
      %158 = vector.load %arg11[%c17, %c0_53, %c0_54] : memref<18x32x128xf32, #tpu.memory_space<vmem>>, vector<1x32x128xf32>
      %159 = vector.shape_cast %158 : vector<1x32x128xf32> to vector<32x128xf32>
      %160 = vector.shape_cast %154 : vector<32x128xf32> to vector<1x32x128xf32>
      tpu.vector_store %arg11[%c17, %c0_53, %c0_54], %160 {strides = array<i32>} : memref<18x32x128xf32, #tpu.memory_space<vmem>>, vector<1x32x128xf32>,
      %cst_55 = arith.constant 0.000000e+00 : f32
      %161 = vector.broadcast %cst_55 : f32 to vector<18x8x128xf32>
      %c0_56 = arith.constant 0 : index
      %c0_57 = arith.constant 0 : index
      %c0_58 = arith.constant 0 : index
      %162 = vector.load %arg11[%c0_56, %c0_57, %c0_58] : memref<18x32x128xf32, #tpu.memory_space<vmem>>, vector<18x8x128xf32>
      tpu.vector_store %arg11[%c0_56, %c0_57, %c0_58], %161 {strides = array<i32>} : memref<18x32x128xf32, #tpu.memory_space<vmem>>, vector<18x8x128xf32>,
      %cst_59 = arith.constant 0.000000e+00 : f32
      %163 = vector.broadcast %cst_59 : f32 to vector<18x8x128xf32>
      %c0_60 = arith.constant 0 : index
      %c24 = arith.constant 24 : index
      %c0_61 = arith.constant 0 : index
      %164 = vector.load %arg11[%c0_60, %c24, %c0_61] : memref<18x32x128xf32, #tpu.memory_space<vmem>>, vector<18x8x128xf32>
      tpu.vector_store %arg11[%c0_60, %c24, %c0_61], %163 {strides = array<i32>} : memref<18x32x128xf32, #tpu.memory_space<vmem>>, vector<18x8x128xf32>,
    } else {
    }
    %c0 = arith.constant 0 : index
    %c0_1 = arith.constant 0 : index
    %3 = vector.load %arg10[%c0, %c0_1] : memref<256x32xf32, #tpu.memory_space<vmem>>, vector<256x32xf32>
    %4 = arith.truncf %3 : vector<256x32xf32> to vector<256x32xbf16>
    %5 = arith.index_cast %arg1 : i32 to index
    %c0_2 = arith.constant 0 : index
    %c0_3 = arith.constant 0 : index
    %6 = vector.load %arg3[%5, %c0_2, %c0_3] : memref<2x32x128xbf16, #tpu.memory_space<vmem>>, vector<1x32x128xbf16>
    %7 = vector.shape_cast %6 : vector<1x32x128xbf16> to vector<32x128xbf16>
    %cst = arith.constant dense<0.000000e+00> : vector<256x128xf32>
    %8 = tpu.matmul %4, %7, %cst {dimension_numbers = #tpu.dot_dimension_numbers<[1], [0], [0], [1], [0, 0, 1, 1], [], []>} : vector<256x32xbf16>, vector<32x128xbf16>, vector<256x128xf32> -> vector<256x128xf32>
    %9 = arith.index_cast %arg1 : i32 to index
    %c0_4 = arith.constant 0 : index
    %c0_5 = arith.constant 0 : index
    %10 = vector.load %arg4[%9, %c0_4, %c0_5] : memref<2x1x128xf32, #tpu.memory_space<vmem>>, vector<1x1x128xf32>
    %11 = vector.shape_cast %10 : vector<1x1x128xf32> to vector<1x128xf32>
    %12 = vector.broadcast %11 : vector<1x128xf32> to vector<256x128xf32>
    %13 = arith.addf %8, %12 : vector<256x128xf32>
    %14 = arith.mulf %13, %13 : vector<256x128xf32>
    %15 = arith.mulf %13, %14 : vector<256x128xf32>
    %cst_6 = arith.constant 4.471500e-02 : f32
    %16 = vector.broadcast %cst_6 : f32 to vector<256x128xf32>
    %17 = arith.mulf %16, %15 : vector<256x128xf32>
    %18 = arith.addf %13, %17 : vector<256x128xf32>
    %cst_7 = arith.constant 0.797884583 : f32
    %19 = vector.broadcast %cst_7 : f32 to vector<256x128xf32>
    %20 = arith.mulf %19, %18 : vector<256x128xf32>
    %21 = math.tanh %20 : vector<256x128xf32>
    %cst_8 = arith.constant 1.000000e+00 : f32
    %22 = vector.broadcast %cst_8 : f32 to vector<256x128xf32>
    %23 = arith.addf %22, %21 : vector<256x128xf32>
    %cst_9 = arith.constant 5.000000e-01 : f32
    %24 = vector.broadcast %cst_9 : f32 to vector<256x128xf32>
    %25 = arith.mulf %24, %23 : vector<256x128xf32>
    %26 = arith.mulf %13, %25 : vector<256x128xf32>
    %27 = vector.shape_cast %26 : vector<256x128xf32> to vector<16x16x128xf32>
    %c1 = arith.constant 1 : index
    %c8 = arith.constant 8 : index
    %c0_10 = arith.constant 0 : index
    %28 = vector.load %arg11[%c1, %c8, %c0_10] : memref<18x32x128xf32, #tpu.memory_space<vmem>>, vector<16x16x128xf32>
    tpu.vector_store %arg11[%c1, %c8, %c0_10], %27 {strides = array<i32>} : memref<18x32x128xf32, #tpu.memory_space<vmem>>, vector<16x16x128xf32>,
    %29 = arith.index_cast %arg1 : i32 to index
    %c0_11 = arith.constant 0 : index
    %c0_12 = arith.constant 0 : index
    %30 = vector.load %arg5[%29, %c0_11, %c0_12] : memref<2x9x128xf32, #tpu.memory_space<vmem>>, vector<1x9x128xf32>
    %31 = vector.shape_cast %30 : vector<1x9x128xf32> to vector<9x128xf32>
    %c0_13 = arith.constant 0 : index
    %c0_14 = arith.constant 0 : index
    %c0_15 = arith.constant 0 : index
    %32 = vector.load %arg11[%c0_13, %c0_14, %c0_15] : memref<18x32x128xf32, #tpu.memory_space<vmem>>, vector<16x32x128xf32>
    %c1_i32 = arith.constant 1 : i32
    %33 = tpu.dynamic_rotate %32 by %c1_i32 dim 1 : vector<16x32x128xf32>, i32 -> vector<16x32x128xf32>
    %34 = vector.extract_strided_slice %33 {offsets = [0, 8, 0], sizes = [16, 16, 128], strides = [1, 1, 1]} : vector<16x32x128xf32> to vector<16x16x128xf32>
    %35 = vector.extract_strided_slice %31 {offsets = [0, 0], sizes = [1, 128], strides = [1, 1]} : vector<9x128xf32> to vector<1x128xf32>
    %36 = vector.shape_cast %35 : vector<1x128xf32> to vector<128xf32>
    %37 = vector.shape_cast %36 : vector<128xf32> to vector<1x1x128xf32>
    %38 = vector.broadcast %37 : vector<1x1x128xf32> to vector<16x16x128xf32>
    %39 = arith.mulf %34, %38 : vector<16x16x128xf32>
    %40 = vector.extract_strided_slice %32 {offsets = [0, 8, 0], sizes = [16, 16, 128], strides = [1, 1, 1]} : vector<16x32x128xf32> to vector<16x16x128xf32>
    %41 = vector.extract_strided_slice %31 {offsets = [1, 0], sizes = [1, 128], strides = [1, 1]} : vector<9x128xf32> to vector<1x128xf32>
    %42 = vector.shape_cast %41 : vector<1x128xf32> to vector<128xf32>
    %43 = vector.shape_cast %42 : vector<128xf32> to vector<1x1x128xf32>
    %44 = vector.broadcast %43 : vector<1x1x128xf32> to vector<16x16x128xf32>
    %45 = arith.mulf %40, %44 : vector<16x16x128xf32>
    %46 = arith.addf %39, %45 : vector<16x16x128xf32>
    %c31_i32 = arith.constant 31 : i32
    %47 = tpu.dynamic_rotate %32 by %c31_i32 dim 1 : vector<16x32x128xf32>, i32 -> vector<16x32x128xf32>
    %48 = vector.extract_strided_slice %47 {offsets = [0, 8, 0], sizes = [16, 16, 128], strides = [1, 1, 1]} : vector<16x32x128xf32> to vector<16x16x128xf32>
    %49 = vector.extract_strided_slice %31 {offsets = [2, 0], sizes = [1, 128], strides = [1, 1]} : vector<9x128xf32> to vector<1x128xf32>
    %50 = vector.shape_cast %49 : vector<1x128xf32> to vector<128xf32>
    %51 = vector.shape_cast %50 : vector<128xf32> to vector<1x1x128xf32>
    %52 = vector.broadcast %51 : vector<1x1x128xf32> to vector<16x16x128xf32>
    %53 = arith.mulf %48, %52 : vector<16x16x128xf32>
    %54 = arith.addf %46, %53 : vector<16x16x128xf32>
    %c1_16 = arith.constant 1 : index
    %c0_17 = arith.constant 0 : index
    %c0_18 = arith.constant 0 : index
    %55 = vector.load %arg11[%c1_16, %c0_17, %c0_18] : memref<18x32x128xf32, #tpu.memory_space<vmem>>, vector<16x32x128xf32>
    %c1_i32_19 = arith.constant 1 : i32
    %56 = tpu.dynamic_rotate %55 by %c1_i32_19 dim 1 : vector<16x32x128xf32>, i32 -> vector<16x32x128xf32>
    %57 = vector.extract_strided_slice %56 {offsets = [0, 8, 0], sizes = [16, 16, 128], strides = [1, 1, 1]} : vector<16x32x128xf32> to vector<16x16x128xf32>
    %58 = vector.extract_strided_slice %31 {offsets = [3, 0], sizes = [1, 128], strides = [1, 1]} : vector<9x128xf32> to vector<1x128xf32>
    %59 = vector.shape_cast %58 : vector<1x128xf32> to vector<128xf32>
    %60 = vector.shape_cast %59 : vector<128xf32> to vector<1x1x128xf32>
    %61 = vector.broadcast %60 : vector<1x1x128xf32> to vector<16x16x128xf32>
    %62 = arith.mulf %57, %61 : vector<16x16x128xf32>
    %63 = arith.addf %54, %62 : vector<16x16x128xf32>
    %64 = vector.extract_strided_slice %55 {offsets = [0, 8, 0], sizes = [16, 16, 128], strides = [1, 1, 1]} : vector<16x32x128xf32> to vector<16x16x128xf32>
    %65 = vector.extract_strided_slice %31 {offsets = [4, 0], sizes = [1, 128], strides = [1, 1]} : vector<9x128xf32> to vector<1x128xf32>
    %66 = vector.shape_cast %65 : vector<1x128xf32> to vector<128xf32>
    %67 = vector.shape_cast %66 : vector<128xf32> to vector<1x1x128xf32>
    %68 = vector.broadcast %67 : vector<1x1x128xf32> to vector<16x16x128xf32>
    %69 = arith.mulf %64, %68 : vector<16x16x128xf32>
    %70 = arith.addf %63, %69 : vector<16x16x128xf32>
    %c31_i32_20 = arith.constant 31 : i32
    %71 = tpu.dynamic_rotate %55 by %c31_i32_20 dim 1 : vector<16x32x128xf32>, i32 -> vector<16x32x128xf32>
    %72 = vector.extract_strided_slice %71 {offsets = [0, 8, 0], sizes = [16, 16, 128], strides = [1, 1, 1]} : vector<16x32x128xf32> to vector<16x16x128xf32>
    %73 = vector.extract_strided_slice %31 {offsets = [5, 0], sizes = [1, 128], strides = [1, 1]} : vector<9x128xf32> to vector<1x128xf32>
    %74 = vector.shape_cast %73 : vector<1x128xf32> to vector<128xf32>
    %75 = vector.shape_cast %74 : vector<128xf32> to vector<1x1x128xf32>
    %76 = vector.broadcast %75 : vector<1x1x128xf32> to vector<16x16x128xf32>
    %77 = arith.mulf %72, %76 : vector<16x16x128xf32>
    %78 = arith.addf %70, %77 : vector<16x16x128xf32>
    %c2 = arith.constant 2 : index
    %c0_21 = arith.constant 0 : index
    %c0_22 = arith.constant 0 : index
    %79 = vector.load %arg11[%c2, %c0_21, %c0_22] : memref<18x32x128xf32, #tpu.memory_space<vmem>>, vector<16x32x128xf32>
    %c1_i32_23 = arith.constant 1 : i32
    %80 = tpu.dynamic_rotate %79 by %c1_i32_23 dim 1 : vector<16x32x128xf32>, i32 -> vector<16x32x128xf32>
    %81 = vector.extract_strided_slice %80 {offsets = [0, 8, 0], sizes = [16, 16, 128], strides = [1, 1, 1]} : vector<16x32x128xf32> to vector<16x16x128xf32>
    %82 = vector.extract_strided_slice %31 {offsets = [6, 0], sizes = [1, 128], strides = [1, 1]} : vector<9x128xf32> to vector<1x128xf32>
    %83 = vector.shape_cast %82 : vector<1x128xf32> to vector<128xf32>
    %84 = vector.shape_cast %83 : vector<128xf32> to vector<1x1x128xf32>
    %85 = vector.broadcast %84 : vector<1x1x128xf32> to vector<16x16x128xf32>
    %86 = arith.mulf %81, %85 : vector<16x16x128xf32>
    %87 = arith.addf %78, %86 : vector<16x16x128xf32>
    %88 = vector.extract_strided_slice %79 {offsets = [0, 8, 0], sizes = [16, 16, 128], strides = [1, 1, 1]} : vector<16x32x128xf32> to vector<16x16x128xf32>
    %89 = vector.extract_strided_slice %31 {offsets = [7, 0], sizes = [1, 128], strides = [1, 1]} : vector<9x128xf32> to vector<1x128xf32>
    %90 = vector.shape_cast %89 : vector<1x128xf32> to vector<128xf32>
    %91 = vector.shape_cast %90 : vector<128xf32> to vector<1x1x128xf32>
    %92 = vector.broadcast %91 : vector<1x1x128xf32> to vector<16x16x128xf32>
    %93 = arith.mulf %88, %92 : vector<16x16x128xf32>
    %94 = arith.addf %87, %93 : vector<16x16x128xf32>
    %c31_i32_24 = arith.constant 31 : i32
    %95 = tpu.dynamic_rotate %79 by %c31_i32_24 dim 1 : vector<16x32x128xf32>, i32 -> vector<16x32x128xf32>
    %96 = vector.extract_strided_slice %95 {offsets = [0, 8, 0], sizes = [16, 16, 128], strides = [1, 1, 1]} : vector<16x32x128xf32> to vector<16x16x128xf32>
    %97 = vector.extract_strided_slice %31 {offsets = [8, 0], sizes = [1, 128], strides = [1, 1]} : vector<9x128xf32> to vector<1x128xf32>
    %98 = vector.shape_cast %97 : vector<1x128xf32> to vector<128xf32>
    %99 = vector.shape_cast %98 : vector<128xf32> to vector<1x1x128xf32>
    %100 = vector.broadcast %99 : vector<1x1x128xf32> to vector<16x16x128xf32>
    %101 = arith.mulf %96, %100 : vector<16x16x128xf32>
    %102 = arith.addf %94, %101 : vector<16x16x128xf32>
    %103 = arith.index_cast %arg1 : i32 to index
    %c0_25 = arith.constant 0 : index
    %c0_26 = arith.constant 0 : index
    %104 = vector.load %arg6[%103, %c0_25, %c0_26] : memref<2x1x128xf32, #tpu.memory_space<vmem>>, vector<1x1x128xf32>
    %105 = vector.shape_cast %104 : vector<1x1x128xf32> to vector<1x128xf32>
    %106 = vector.shape_cast %105 : vector<1x128xf32> to vector<1x1x128xf32>
    %107 = vector.broadcast %106 : vector<1x1x128xf32> to vector<16x16x128xf32>
    %108 = arith.addf %102, %107 : vector<16x16x128xf32>
    %109 = arith.mulf %108, %108 : vector<16x16x128xf32>
    %110 = arith.mulf %108, %109 : vector<16x16x128xf32>
    %cst_27 = arith.constant 4.471500e-02 : f32
    %111 = vector.broadcast %cst_27 : f32 to vector<16x16x128xf32>
    %112 = arith.mulf %111, %110 : vector<16x16x128xf32>
    %113 = arith.addf %108, %112 : vector<16x16x128xf32>
    %cst_28 = arith.constant 0.797884583 : f32
    %114 = vector.broadcast %cst_28 : f32 to vector<16x16x128xf32>
    %115 = arith.mulf %114, %113 : vector<16x16x128xf32>
    %116 = math.tanh %115 : vector<16x16x128xf32>
    %cst_29 = arith.constant 1.000000e+00 : f32
    %117 = vector.broadcast %cst_29 : f32 to vector<16x16x128xf32>
    %118 = arith.addf %117, %116 : vector<16x16x128xf32>
    %cst_30 = arith.constant 5.000000e-01 : f32
    %119 = vector.broadcast %cst_30 : f32 to vector<16x16x128xf32>
    %120 = arith.mulf %119, %118 : vector<16x16x128xf32>
    %121 = arith.mulf %108, %120 : vector<16x16x128xf32>
    %122 = vector.shape_cast %121 : vector<16x16x128xf32> to vector<256x128xf32>
    %123 = arith.truncf %122 : vector<256x128xf32> to vector<256x128xbf16>
    %124 = arith.index_cast %arg1 : i32 to index
    %c0_31 = arith.constant 0 : index
    %c0_32 = arith.constant 0 : index
    %125 = vector.load %arg7[%124, %c0_31, %c0_32] : memref<2x128x32xbf16, #tpu.memory_space<vmem>>, vector<1x128x32xbf16>
    %126 = vector.shape_cast %125 : vector<1x128x32xbf16> to vector<128x32xbf16>
    %cst_33 = arith.constant dense<0.000000e+00> : vector<256x32xf32>
    %127 = tpu.matmul %123, %126, %cst_33 {dimension_numbers = #tpu.dot_dimension_numbers<[1], [0], [0], [1], [0, 0, 1, 1], [], []>} : vector<256x128xbf16>, vector<128x32xbf16>, vector<256x32xf32> -> vector<256x32xf32>
    %128 = arith.index_cast %arg1 : i32 to index
    %c0_34 = arith.constant 0 : index
    %c0_35 = arith.constant 0 : index
    %129 = vector.load %arg8[%128, %c0_34, %c0_35] : memref<2x1x32xf32, #tpu.memory_space<vmem>>, vector<1x1x32xf32>
    %130 = vector.shape_cast %129 : vector<1x1x32xf32> to vector<1x32xf32>
    %131 = vector.broadcast %130 : vector<1x32xf32> to vector<256x32xf32>
    %132 = arith.addf %127, %131 : vector<256x32xf32>
    %133 = arith.addf %132, %3 : vector<256x32xf32>
    %134 = arith.mulf %133, %133 : vector<256x32xf32>
    %135 = arith.mulf %133, %134 : vector<256x32xf32>
    %cst_36 = arith.constant 4.471500e-02 : f32
    %136 = vector.broadcast %cst_36 : f32 to vector<256x32xf32>
    %137 = arith.mulf %136, %135 : vector<256x32xf32>
    %138 = arith.addf %133, %137 : vector<256x32xf32>
    %cst_37 = arith.constant 0.797884583 : f32
    %139 = vector.broadcast %cst_37 : f32 to vector<256x32xf32>
    %140 = arith.mulf %139, %138 : vector<256x32xf32>
    %141 = math.tanh %140 : vector<256x32xf32>
    %cst_38 = arith.constant 1.000000e+00 : f32
    %142 = vector.broadcast %cst_38 : f32 to vector<256x32xf32>
    %143 = arith.addf %142, %141 : vector<256x32xf32>
    %cst_39 = arith.constant 5.000000e-01 : f32
    %144 = vector.broadcast %cst_39 : f32 to vector<256x32xf32>
    %145 = arith.mulf %144, %143 : vector<256x32xf32>
    %146 = arith.mulf %133, %145 : vector<256x32xf32>
    %c0_40 = arith.constant 0 : index
    %c0_41 = arith.constant 0 : index
    %147 = vector.load %arg10[%c0_40, %c0_41] : memref<256x32xf32, #tpu.memory_space<vmem>>, vector<256x32xf32>
    tpu.vector_store %arg10[%c0_40, %c0_41], %146 {strides = array<i32>} : memref<256x32xf32, #tpu.memory_space<vmem>>, vector<256x32xf32>,
    %c1_i32_42 = arith.constant 1 : i32
    %148 = arith.cmpi eq, %arg1, %c1_i32_42 : i32
    %149 = arith.extui %148 : i1 to i32
    %c0_i32_43 = arith.constant 0 : i32
    %150 = arith.cmpi ne, %149, %c0_i32_43 : i32
    scf.if %150 {
      %c0_44 = arith.constant 0 : index
      %c0_45 = arith.constant 0 : index
      %c0_46 = arith.constant 0 : index
      %151 = vector.load %arg9[%c0_44, %c0_45, %c0_46] : memref<1x256x32xf32, #tpu.memory_space<vmem>>, vector<1x256x32xf32>
      %152 = vector.shape_cast %151 : vector<1x256x32xf32> to vector<256x32xf32>
      %153 = vector.shape_cast %146 : vector<256x32xf32> to vector<1x256x32xf32>
      tpu.vector_store %arg9[%c0_44, %c0_45, %c0_46], %153 {strides = array<i32>} : memref<1x256x32xf32, #tpu.memory_space<vmem>>, vector<1x256x32xf32>,
    } else {
    }
    return
  }
  func.func @transform_0(%arg0: i32, %arg1: i32) -> (i32, i32, i32) {
    %c0_i32 = arith.constant 0 : i32
    %c0_i32_0 = arith.constant 0 : i32
    %c0_i32_1 = arith.constant 0 : i32
    return %arg0, %c0_i32, %c0_i32_0 : i32, i32, i32
  }
  func.func @transform_1(%arg0: i32, %arg1: i32) -> (i32, i32, i32) {
    %c0_i32 = arith.constant 0 : i32
    %c0_i32_0 = arith.constant 0 : i32
    %c0_i32_1 = arith.constant 0 : i32
    %c0_i32_2 = arith.constant 0 : i32
    return %c0_i32, %c0_i32_0, %c0_i32_1 : i32, i32, i32
  }
  func.func @transform_2(%arg0: i32, %arg1: i32) -> (i32, i32, i32) {
    %c0_i32 = arith.constant 0 : i32
    %c0_i32_0 = arith.constant 0 : i32
    %c0_i32_1 = arith.constant 0 : i32
    %c0_i32_2 = arith.constant 0 : i32
    return %c0_i32, %c0_i32_0, %c0_i32_1 : i32, i32, i32
  }
  func.func @transform_3(%arg0: i32, %arg1: i32) -> (i32, i32, i32) {
    %c0_i32 = arith.constant 0 : i32
    %c0_i32_0 = arith.constant 0 : i32
    %c0_i32_1 = arith.constant 0 : i32
    %c0_i32_2 = arith.constant 0 : i32
    return %c0_i32, %c0_i32_0, %c0_i32_1 : i32, i32, i32
  }
  func.func @transform_4(%arg0: i32, %arg1: i32) -> (i32, i32, i32) {
    %c0_i32 = arith.constant 0 : i32
    %c0_i32_0 = arith.constant 0 : i32
    %c0_i32_1 = arith.constant 0 : i32
    %c0_i32_2 = arith.constant 0 : i32
    return %c0_i32, %c0_i32_0, %c0_i32_1 : i32, i32, i32
  }
  func.func @transform_5(%arg0: i32, %arg1: i32) -> (i32, i32, i32) {
    %c0_i32 = arith.constant 0 : i32
    %c0_i32_0 = arith.constant 0 : i32
    %c0_i32_1 = arith.constant 0 : i32
    %c0_i32_2 = arith.constant 0 : i32
    return %c0_i32, %c0_i32_0, %c0_i32_1 : i32, i32, i32
  }
  func.func @transform_6(%arg0: i32, %arg1: i32) -> (i32, i32, i32) {
    %c0_i32 = arith.constant 0 : i32
    %c0_i32_0 = arith.constant 0 : i32
    %c0_i32_1 = arith.constant 0 : i32
    %c0_i32_2 = arith.constant 0 : i32
    return %c0_i32, %c0_i32_0, %c0_i32_1 : i32, i32, i32
  }
  func.func @transform_7(%arg0: i32, %arg1: i32) -> (i32, i32, i32) {
    %c0_i32 = arith.constant 0 : i32
    %c0_i32_0 = arith.constant 0 : i32
    %c0_i32_1 = arith.constant 0 : i32
    return %arg0, %c0_i32, %c0_i32_0 : i32, i32, i32
  }
}

</mosaic_0001>

<bundles_post_ra>
// kernel: tpu_custom_call.1
= control target key start
LH: loop header
LB: loop body
LE: loop exit
PB: predicated region body
PF: predicated region fallthrough
CT: control target
= control target key end

     0   :  { %s3868_s24 = smov 0   ;;  %s3870_s25 = smov 0   ;;  %s5851_s0 = inlined_call_operand.vmem [shape: f32[2,256,32], index: 0, kind: input, shape index: {}]   ;;  %s5852_s1 = inlined_call_operand.vmem [shape: bf16[2,32,128], index: 1, kind: input, shape index: {}]   ;;  %s5853_s2 = inlined_call_operand.vmem [shape: f32[2,1,128], index: 2, kind: input, shape index: {}]   ;;  %s5854_s3 = inlined_call_operand.vmem [shape: f32[2,9,128], index: 3, kind: input, shape index: {}]   ;;  %s5855_s4 = inlined_call_operand.vmem [shape: f32[2,1,128], index: 4, kind: input, shape index: {}]   ;;  %s5856_s5 = inlined_call_operand.vmem [shape: bf16[2,128,32], index: 5, kind: input, shape index: {}]   ;;  %s5857_s6 = inlined_call_operand.vmem [shape: f32[2,1,32], index: 6, kind: input, shape index: {}]   ;;  %s5858_s7 = inlined_call_operand.vmem [shape: f32[2,256,32], index: 7, kind: output, shape index: {}]  }
   0x1   :  { %s3872_s26 = smov 0   ;;  %s3874_s27 = smov 0  }
   0x2   :  { %s3876_s28 = smov 0  }
   0x3 LB: > { %s26_s29 = sadd.s32 1, %s3817_s26  ;;  %s29_s30 = sadd.s32 1, %s3821_s27  ;;  %s3825_s28 = sphi %s3876_s28, %s17_s28   ;;  %s3821_s27 = sphi %s3874_s27, %s5887_s27   ;;  %s3817_s26 = sphi %s3872_s26, %s5886_s26   ;;  %s3813_s25 = sphi %s3870_s25, %s5885_s25   ;;  %s3809_s24 = sphi %s3868_s24, %s5884_s24  }
   0x4   : > { %p27_p0 = scmp.ge.s32.totalorder %s26_s29, 2  ;;  %p3319_p1 = scmp.ge.s32.totalorder %s3825_s28, 1 }
   0x5   : > { %p249_p2 = scmp.lt.s32.totalorder %s3825_s28, 5 }
   0x6   : > { %s5889_s29 = smov (%p27_p0, %s26_s29), 0  ;;  %s5891_s30 = smov (!%p27_p0, %s29_s30), %s3821_s27 }
   0x7   : > { %p250_p3 = pnand %p3319_p1, %p249_p2  ;;  %p31_p4 = scmp.ge.s32.totalorder %s5891_s30, 2 }
   0x9   : > { %s5893_s30 = smov (%p31_p4, %s5891_s30), 0  ;;  %253 = sbr.rel (%p250_p3) target bundleno = 905 (0x389), region = 48 }
  0x10   : > { %p281_p5 = scmp.lt.s32.totalorder %s3813_s25, 1  ;;  %p3324_p6 = scmp.ne.s32.totalorder %s3809_s24, 0 }
  0x11   : > { %vm328_vm0 = vcmask (!%p3324_p6), 261120   ;;  %v3827_v3 = vmov (!%p3324_p6), 0.0  }
  0x12   : > { %s5895_s25 = smov (!%p281_p5, %s3813_s25), 1  ;;  %295 = sbr.rel (%p3324_p6) target bundleno = 56 (0x38), region = 52 }
  0x13   : > { %s3362_s8 = sshll.u32 %s5895_s25, 8  ;;  %362 = vst [vmem:[#allocation3 + $0x8] sm:$0xff] (!%p3324_p6), %v3827_v3  ;;  %363 = vst [vmem:[#allocation3 + $0x10] sm:$0xff] (!%p3324_p6), %v3827_v3 }
  0x14   : > { %s3903_s11 = scalar_lea.vmem %s5851_s0, %s3362_s8  ;;  %s3908_s14 = scalar_lea.vmem %s5858_s7, %s3362_s8  ;;  %367 = vst [vmem:[#allocation3 + $0x228] sm:$0xff] (!%p3324_p6), %v3827_v3  ;;  %368 = vst [vmem:[#allocation3 + $0x230] sm:$0xff] (!%p3324_p6), %v3827_v3 }
  0x15   : > { %v296_v0 = vld [vmem:[%s3903_s11] sm:$0xff] (!%p3324_p6)  ;;  %v297_v1 = vld [vmem:[%s3903_s11 + $0x8] sm:$0xff] (!%p3324_p6)  ;;  %v298_v2 = vld [vmem:[%s3903_s11 + $0x10] sm:$0xff] (!%p3324_p6)  ;;  %370 = vst [vmem:[#allocation3] sm:$0xff] (!%p3324_p6), %v3827_v3 }
  0x16   : > { %371 = vst [vmem:[#allocation3 + $0x20] sm:$0xff] (!%p3324_p6), %v3827_v3  ;;  %372 = vst [vmem:[#allocation3 + $0x40] sm:$0xff] (!%p3324_p6), %v3827_v3  ;;  %v299_v4 = vld [vmem:[%s3903_s11 + $0x18] sm:$0xff] (!%p3324_p6)  ;;  %v300_v5 = vld [vmem:[%s3903_s11 + $0x20] sm:$0xff] (!%p3324_p6) }
  0x17   : > { %373 = vst [vmem:[#allocation3 + $0x60] sm:$0xff] (!%p3324_p6), %v3827_v3  ;;  %374 = vst [vmem:[#allocation3 + $0x80] sm:$0xff] (!%p3324_p6), %v3827_v3  ;;  %v301_v6 = vld [vmem:[%s3903_s11 + $0x28] sm:$0xff] (!%p3324_p6)  ;;  %v302_v7 = vld [vmem:[%s3903_s11 + $0x30] sm:$0xff] (!%p3324_p6) }
  0x18   : > { %375 = vst [vmem:[#allocation3 + $0xa0] sm:$0xff] (!%p3324_p6), %v3827_v3  ;;  %376 = vst [vmem:[#allocation3 + $0xc0] sm:$0xff] (!%p3324_p6), %v3827_v3  ;;  %v303_v8 = vld [vmem:[%s3903_s11 + $0x38] sm:$0xff] (!%p3324_p6)  ;;  %v304_v9 = vld [vmem:[%s3903_s11 + $0x40] sm:$0xff] (!%p3324_p6) }
  0x19   : > { %377 = vst [vmem:[#allocation3 + $0xe0] sm:$0xff] %v3827_v3  ;;  %378 = vst [vmem:[#allocation3 + $0x100] sm:$0xff] %v3827_v3  ;;  %v305_v10 = vld [vmem:[%s3903_s11 + $0x48] sm:$0xff]  ;;  %v306_v11 = vld [vmem:[%s3903_s11 + $0x50] sm:$0xff] }
  0x1a   : > { %379 = vst [vmem:[#allocation3 + $0x120] sm:$0xff] %v3827_v3  ;;  %380 = vst [vmem:[#allocation3 + $0x140] sm:$0xff] %v3827_v3  ;;  %v307_v12 = vld [vmem:[%s3903_s11 + $0x58] sm:$0xff]  ;;  %v308_v13 = vld [vmem:[%s3903_s11 + $0x60] sm:$0xff] }
  0x1b   : > { %381 = vst [vmem:[#allocation3 + $0x160] sm:$0xff] %v3827_v3  ;;  %382 = vst [vmem:[#allocation3 + $0x180] sm:$0xff] %v3827_v3  ;;  %v309_v14 = vld [vmem:[%s3903_s11 + $0x68] sm:$0xff]  ;;  %v310_v15 = vld [vmem:[%s3903_s11 + $0x70] sm:$0xff] }
  0x1c   : > { %383 = vst [vmem:[#allocation3 + $0x1a0] sm:$0xff] %v3827_v3  ;;  %384 = vst [vmem:[#allocation3 + $0x1c0] sm:$0xff] %v3827_v3  ;;  %v311_v16 = vld [vmem:[%s3903_s11 + $0x78] sm:$0xff]  ;;  %v312_v17 = vld [vmem:[%s3903_s11 + $0x80] sm:$0xff] }
  0x1d   : > { %385 = vst [vmem:[#allocation3 + $0x1e0] sm:$0xff] %v3827_v3  ;;  %386 = vst [vmem:[#allocation3 + $0x200] sm:$0xff] %v3827_v3  ;;  %v313_v18 = vld [vmem:[%s3903_s11 + $0x88] sm:$0xff]  ;;  %v314_v19 = vld [vmem:[%s3903_s11 + $0x90] sm:$0xff] }
  0x1e   : > { %389 = vst [vmem:[#allocation3 + $0x38] sm:$0xff] %v3827_v3  ;;  %390 = vst [vmem:[#allocation3 + $0x58] sm:$0xff] %v3827_v3  ;;  %v315_v20 = vld [vmem:[%s3903_s11 + $0x98] sm:$0xff]  ;;  %v316_v21 = vld [vmem:[%s3903_s11 + $0xa0] sm:$0xff] }
  0x1f   : > { %391 = vst [vmem:[#allocation3 + $0x78] sm:$0xff] %v3827_v3  ;;  %392 = vst [vmem:[#allocation3 + $0x98] sm:$0xff] %v3827_v3  ;;  %v317_v22 = vld [vmem:[%s3903_s11 + $0xa8] sm:$0xff]  ;;  %v318_v23 = vld [vmem:[%s3903_s11 + $0xb0] sm:$0xff] }
  0x20   : > { %393 = vst [vmem:[#allocation3 + $0xb8] sm:$0xff] %v3827_v3  ;;  %394 = vst [vmem:[#allocation3 + $0xd8] sm:$0xff] %v3827_v3  ;;  %v319_v24 = vld [vmem:[%s3903_s11 + $0xb8] sm:$0xff]  ;;  %v320_v25 = vld [vmem:[%s3903_s11 + $0xc0] sm:$0xff] }
  0x21   : > { %395 = vst [vmem:[#allocation3 + $0xf8] sm:$0xff] %v3827_v3  ;;  %396 = vst [vmem:[#allocation3 + $0x118] sm:$0xff] %v3827_v3  ;;  %v321_v26 = vld [vmem:[%s3903_s11 + $0xc8] sm:$0xff]  ;;  %v322_v27 = vld [vmem:[%s3903_s11 + $0xd0] sm:$0xff] }
  0x22   : > { %397 = vst [vmem:[#allocation3 + $0x138] sm:$0xff] %v3827_v3  ;;  %398 = vst [vmem:[#allocation3 + $0x158] sm:$0xff] %v3827_v3  ;;  %v323_v28 = vld [vmem:[%s3903_s11 + $0xd8] sm:$0xff]  ;;  %v324_v29 = vld [vmem:[%s3903_s11 + $0xe0] sm:$0xff] }
  0x23   : > { %399 = vst [vmem:[#allocation3 + $0x178] sm:$0xff] %v3827_v3  ;;  %400 = vst [vmem:[#allocation3 + $0x198] sm:$0xff] %v3827_v3  ;;  %v325_v30 = vld [vmem:[%s3903_s11 + $0xe8] sm:$0xff]  ;;  %v326_v31 = vld [vmem:[%s3903_s11 + $0xf0] sm:$0xff] }
  0x24   : > { %401 = vst [vmem:[#allocation3 + $0x1b8] sm:$0xff] %v3827_v3  ;;  %402 = vst [vmem:[#allocation3 + $0x1d8] sm:$0xff] %v3827_v3  ;;  %v327_v32 = vld [vmem:[%s3903_s11 + $0xf8] sm:$0xff] }
  0x25   : > { %403 = vst [vmem:[#allocation3 + $0x1f8] sm:$0xff] %v3827_v3  ;;  %404 = vst [vmem:[#allocation3 + $0x218] sm:$0xff] %v3827_v3 }
  0x26   : > { %387 = vst [vmem:[#allocation3 + $0x220] sm:$0xff] %v3827_v3  ;;  %388 = vst [vmem:[#allocation3 + $0x18] sm:$0xff] %v3827_v3 }
  0x27   : > { %405 = vst [vmem:[#allocation3 + $0x238] sm:$0xff] %v3827_v3  ;;  %329 = vst.msk [vmem:[#allocation2] sm:$0xff] %vm328_vm0, %v296_v0 }
  0x28   : > { %330 = vst.msk [vmem:[#allocation2 + $0x8] sm:$0xff] %vm328_vm0, %v297_v1  ;;  %331 = vst.msk [vmem:[#allocation2 + $0x10] sm:$0xff] %vm328_vm0, %v298_v2 }
  0x29   : > { %332 = vst.msk [vmem:[#allocation2 + $0x18] sm:$0xff] %vm328_vm0, %v299_v4  ;;  %333 = vst.msk [vmem:[#allocation2 + $0x20] sm:$0xff] %vm328_vm0, %v300_v5 }
  0x2a   : > { %334 = vst.msk [vmem:[#allocation2 + $0x28] sm:$0xff] %vm328_vm0, %v301_v6  ;;  %335 = vst.msk [vmem:[#allocation2 + $0x30] sm:$0xff] %vm328_vm0, %v302_v7 }
  0x2b   : > { %336 = vst.msk [vmem:[#allocation2 + $0x38] sm:$0xff] %vm328_vm0, %v303_v8  ;;  %337 = vst.msk [vmem:[#allocation2 + $0x40] sm:$0xff] %vm328_vm0, %v304_v9 }
  0x2c   : > { %338 = vst.msk [vmem:[#allocation2 + $0x48] sm:$0xff] %vm328_vm0, %v305_v10  ;;  %339 = vst.msk [vmem:[#allocation2 + $0x50] sm:$0xff] %vm328_vm0, %v306_v11 }
  0x2d   : > { %340 = vst.msk [vmem:[#allocation2 + $0x58] sm:$0xff] %vm328_vm0, %v307_v12  ;;  %341 = vst.msk [vmem:[#allocation2 + $0x60] sm:$0xff] %vm328_vm0, %v308_v13 }
  0x2e   : > { %342 = vst.msk [vmem:[#allocation2 + $0x68] sm:$0xff] %vm328_vm0, %v309_v14  ;;  %343 = vst.msk [vmem:[#allocation2 + $0x70] sm:$0xff] %vm328_vm0, %v310_v15 }
  0x2f   : > { %344 = vst.msk [vmem:[#allocation2 + $0x78] sm:$0xff] %vm328_vm0, %v311_v16  ;;  %345 = vst.msk [vmem:[#allocation2 + $0x80] sm:$0xff] %vm328_vm0, %v312_v17 }
  0x30   : > { %346 = vst.msk [vmem:[#allocation2 + $0x88] sm:$0xff] %vm328_vm0, %v313_v18  ;;  %347 = vst.msk [vmem:[#allocation2 + $0x90] sm:$0xff] %vm328_vm0, %v314_v19 }
  0x31   : > { %348 = vst.msk [vmem:[#allocation2 + $0x98] sm:$0xff] %vm328_vm0, %v315_v20  ;;  %349 = vst.msk [vmem:[#allocation2 + $0xa0] sm:$0xff] %vm328_vm0, %v316_v21 }
  0x32   : > { %350 = vst.msk [vmem:[#allocation2 + $0xa8] sm:$0xff] %vm328_vm0, %v317_v22  ;;  %351 = vst.msk [vmem:[#allocation2 + $0xb0] sm:$0xff] %vm328_vm0, %v318_v23 }
  0x33   : > { %352 = vst.msk [vmem:[#allocation2 + $0xb8] sm:$0xff] %vm328_vm0, %v319_v24  ;;  %353 = vst.msk [vmem:[#allocation2 + $0xc0] sm:$0xff] %vm328_vm0, %v320_v25 }
  0x34   : > { %354 = vst.msk [vmem:[#allocation2 + $0xc8] sm:$0xff] %vm328_vm0, %v321_v26  ;;  %355 = vst.msk [vmem:[#allocation2 + $0xd0] sm:$0xff] %vm328_vm0, %v322_v27 }
  0x35   : > { %356 = vst.msk [vmem:[#allocation2 + $0xd8] sm:$0xff] %vm328_vm0, %v323_v28  ;;  %357 = vst.msk [vmem:[#allocation2 + $0xe0] sm:$0xff] %vm328_vm0, %v324_v29 }
  0x36   : > { %358 = vst.msk [vmem:[#allocation2 + $0xe8] sm:$0xff] %vm328_vm0, %v325_v30  ;;  %359 = vst.msk [vmem:[#allocation2 + $0xf0] sm:$0xff] %vm328_vm0, %v326_v31 }
  0x37   : > { %360 = vst.msk [vmem:[#allocation2 + $0xf8] sm:$0xff] %vm328_vm0, %v327_v32 }
  0x38 PF: > { %s3364_s15 = sshll.u32 %s3809_s24, 4  ;;  %v406_v33 = vld [vmem:[#allocation2] sm:$0xff]  ;;  %v407_v34 = vld [vmem:[#allocation2 + $0x8] sm:$0xff]  ;;  %vm481_vm1 = vcmask 261120   ;;  %v408_v38 = vld [vmem:[#allocation2 + $0x10] sm:$0xff]  ;;  %s3365_s19 = sshll.u32 %s3809_s24, 6  ;;  %v1128_v27 = vlaneseq }
  0x39   : > { %s456_s18 = scalar_lea.vmem %s5852_s1, %s3364_s15  ;;  %v438_v35 = vpack.c.bf16 %v407_v34, %v406_v33  ;;  %v409_v39 = vld [vmem:[#allocation2 + $0x18] sm:$0xff]  ;;  %v410_v40 = vld [vmem:[#allocation2 + $0x20] sm:$0xff]  ;;  %v411_v41 = vld [vmem:[#allocation2 + $0x28] sm:$0xff]  ;;  %s4001_s22 = scalar_lea.vmem %s5856_s5, %s3365_s19 }
  0x3a   : > { %v3549_v36 = vld [vmem:[%s456_s18] sm:$0xff]   ;;  %v3550_v37 = vld [vmem:[%s456_s18 + $0x8] sm:$0xff]   ;;  %v439_v42 = vpack.c.bf16 %v409_v39, %v408_v38  ;;  %v440_v43 = vpack.c.bf16 %v411_v41, %v410_v40  ;;  %v412_v44 = vld [vmem:[#allocation2 + $0x30] sm:$0xff]  ;;  %v4011_v28 = vshrl.u32 %v1128_v27, 7  ;;  %s4018_s8 = scalar_lea.vmem %s5854_s3, %s3364_s15  ;;  %s461_s11 = scalar_lea.vmem %s5853_s2, %s3809_s24 }
  0x3b   : > { %3412 = vmatprep.mubr.msk.bf16.mxu0 %vm481_vm1, %v438_v35  ;;  %3408 = vmatprep.subr.bf16.mxu0 %v3549_v36  ;;  %v413_v45 = vld [vmem:[#allocation2 + $0x38] sm:$0xff]  ;;  %v414_v46 = vld [vmem:[#allocation2 + $0x40] sm:$0xff]  ;;  %v415_v47 = vld [vmem:[#allocation2 + $0x48] sm:$0xff]  ;;  %s4446_s15 = scalar_lea.vmem %s5855_s4, %s3809_s24  ;;  %s2635_s18 = scalar_lea.vmem %s5857_s6, %s3809_s24 }
  0x3c   : > { %3409 = vmatpush3.bf16.msra.mxu0 %v3549_v36  ;;  %v441_v48 = vpack.c.bf16 %v413_v45, %v412_v44  ;;  %v442_v49 = vpack.c.bf16 %v415_v47, %v414_v46  ;;  %v416_v50 = vld [vmem:[#allocation2 + $0x50] sm:$0xff]  ;;  %v417_v51 = vld [vmem:[#allocation2 + $0x58] sm:$0xff]  ;;  %v418_v52 = vld [vmem:[#allocation2 + $0x60] sm:$0xff]  ;;  %v1165_v32 = vsub.s32 0, %v4011_v28  ;;  %v1201_v33 = vsub.s32 1, %v4011_v28  ;;  %p3359_p7 = scmp.ne.s32.totalorder %s3809_s24, 1 }
  0x3d   : > { %3410 = vmatprep.subr.bf16.mxu0 %v3550_v37  ;;  %v419_v53 = vld [vmem:[#allocation2 + $0x68] sm:$0xff]  ;;  %v443_v54 = vpack.c.bf16 %v417_v51, %v416_v50  ;;  %v420_v56 = vld [vmem:[#allocation2 + $0x70] sm:$0xff]  ;;  %v421_v57 = vld [vmem:[#allocation2 + $0x78] sm:$0xff]  ;;  %vm1130_vm2 = vcmp.lt.s32.totalorder %v4011_v28, 1  ;;  %v1350_v41 = vsub.s32 2, %v4011_v28  ;;  %vm1315_vm3 = vcmp.lt.s32.totalorder %v4011_v28, 7 }
  0x3e   : > { %v444_v55 = vpack.c.bf16 %v419_v53, %v418_v52  ;;  %v422_v58 = vld [vmem:[#allocation2 + $0x80] sm:$0xff]  ;;  %v423_v59 = vld [vmem:[#allocation2 + $0x88] sm:$0xff]  ;;  %v445_v60 = vpack.c.bf16 %v421_v57, %v420_v56  ;;  %v424_v62 = vld [vmem:[#allocation2 + $0x90] sm:$0xff] }
  0x3f   : > { %v446_v61 = vpack.c.bf16 %v423_v59, %v422_v58  ;;  %v425_v63 = vld [vmem:[#allocation2 + $0x98] sm:$0xff]  ;;  %v426_v0 = vld [vmem:[#allocation2 + $0xa0] sm:$0xff]  ;;  %v427_v1 = vld [vmem:[#allocation2 + $0xa8] sm:$0xff]  ;;  %v1778_v58 = vsub.s32 5, %v4011_v28  ;;  %v1991_v59 = vsub.s32 6, %v4011_v28 }
  0x40   : > { %3411 = vmatpush3.bf16.msra.mxu0 %v3550_v37  ;;  %v447_v2 = vpack.c.bf16 %v425_v63, %v424_v62  ;;  %v448_v3 = vpack.c.bf16 %v427_v1, %v426_v0  ;;  %v428_v4 = vld [vmem:[#allocation2 + $0xb0] sm:$0xff]  ;;  %v429_v5 = vld [vmem:[#allocation2 + $0xb8] sm:$0xff]  ;;  %v430_v6 = vld [vmem:[#allocation2 + $0xc0] sm:$0xff]  ;;  %v2059_v62 = vsub.s32 7, %v4011_v28 }
  0x41   : > { %v431_v7 = vld [vmem:[#allocation2 + $0xc8] sm:$0xff]  ;;  %v449_v8 = vpack.c.bf16 %v429_v5, %v428_v4  ;;  %v432_v10 = vld [vmem:[#allocation2 + $0xd0] sm:$0xff]  ;;  %v433_v11 = vld [vmem:[#allocation2 + $0xd8] sm:$0xff] }
  0x42   : > { %v450_v9 = vpack.c.bf16 %v431_v7, %v430_v6  ;;  %v434_v12 = vld [vmem:[#allocation2 + $0xe0] sm:$0xff]  ;;  %v435_v13 = vld [vmem:[#allocation2 + $0xe8] sm:$0xff]  ;;  %v451_v14 = vpack.c.bf16 %v433_v11, %v432_v10  ;;  %v436_v16 = vld [vmem:[#allocation2 + $0xf0] sm:$0xff] }
  0x43   : > { %3413 = vmatmul.mubr.msk.bf16.vlgmr.msra.gmra.mrb[0].mxu0 %vm481_vm1, %v439_v42  ;;  %v452_v15 = vpack.c.bf16 %v435_v13, %v434_v12  ;;  %v437_v17 = vld [vmem:[#allocation2 + $0xf8] sm:$0xff]  ;;  %v3551_v19 = vld [vmem:[%s4001_s22] sm:$0xff]   ;;  %v3552_v20 = vld [vmem:[%s4001_s22 + $0x8] sm:$0xff]  }
  0x44   : > { %3416 = vmatprep.mubr.msk.bf16.mxu0 %vm481_vm1, %v440_v43  ;;  %v453_v18 = vpack.c.bf16 %v437_v17, %v436_v16  ;;  %3444 = vmatprep.subr.bf16.mxu0 %v3551_v19  ;;  %v3553_v21 = vld [vmem:[%s4001_s22 + $0x10] sm:$0xff]   ;;  %v3554_v22 = vld [vmem:[%s4001_s22 + $0x18] sm:$0xff]   ;;  %v3555_v23 = vld [vmem:[%s4001_s22 + $0x20] sm:$0xff]  }
  0x45   : > { %3492 = vmatprep.subr.bf16.mxu1 %v3551_v19  ;;  %3445 = vmatpush3.bf16.msra.mxu0 %v3551_v19  ;;  %v3556_v24 = vld [vmem:[%s4001_s22 + $0x28] sm:$0xff]   ;;  %v3557_v25 = vld [vmem:[%s4001_s22 + $0x30] sm:$0xff]   ;;  %v3558_v26 = vld [vmem:[%s4001_s22 + $0x38] sm:$0xff]  }
  0x46   : > { %3500 = vmatpush3.bf16.msra.mxu1 %v3551_v19  ;;  %3446 = vmatprep.subr.bf16.mxu0 %v3552_v20  ;;  %v1016_v29 = vld [vmem:[#allocation3] sm:$0xff]  ;;  %v1017_v30 = vld [vmem:[#allocation3 + $0x8] sm:$0xff]  ;;  %v1018_v31 = vld [vmem:[#allocation3 + $0x10] sm:$0xff] }
  0x47   : > { %3493 = vmatprep.subr.bf16.mxu1 %v3552_v20  ;;  %v1014_v34 = vld [vmem:[%s4018_s8] sm:$0xff]  ;;  %v1080_v35 = vrot.slane %v1016_v29, 7  ;;  %v1096_v36 = vrot.slane %v1017_v30, 7  ;;  %v1112_v37 = vrot.slane %v1018_v31, 7  ;;  %v1019_v38 = vld [vmem:[#allocation3 + $0x18] sm:$0xff]  ;;  %v1267_v43 = vrot.slane %v1017_v30, 1 }
  0x48   : > { %v4024_v39 = vrot.slane %v1014_v34, %v1165_v32  ;;  %v4026_v40 = vrot.slane %v1014_v34, %v1201_v33  ;;  %v1283_v44 = vrot.slane %v1018_v31, 1  ;;  %v1299_v46 = vrot.slane %v1019_v38, 1  ;;  %v4086_v17 = vld [vmem:[#allocation3 + $0x38] sm:$0xff] }
  0x49   : > { %3447 = vmatpush3.bf16.msra.mxu0 %v3552_v20  ;;  %v1147_v42 = vsel %vm1130_vm2, %v1080_v35, %v1096_v36  ;;  %v1131_v45 = vsel %vm1130_vm2, %v1096_v36, %v1112_v37  ;;  %v4038_v47 = vrot.slane %v1014_v34, %v1350_v41  ;;  %v4079_v13 = vrot.slane %v1014_v34, %v1778_v58  ;;  %v4103_v29 = vld [vmem:[#allocation3 + $0x78] sm:$0xff]  ;;  %v4130_v58 = vld [vmem:[#allocation3 + $0x60] sm:$0xff] }
  0x4a   : > { %3501 = vmatpush3.bf16.msra.mxu1 %v3552_v20  ;;  %3448 = vmatprep.subr.bf16.mxu0 %v3553_v21  ;;  %v1203_v50 = vmul.f32 %v4026_v40, %v1017_v30  ;;  %v1168_v51 = vmul.f32 %v4024_v39, %v1131_v45  ;;  %v1204_v52 = vmul.f32 %v4026_v40, %v1018_v31 }
  0x4b   : > { %3417 = vmatmul.mubr.msk.bf16.gmra.mrb[4].mxu0 %vm481_vm1, %v441_v48  ;;  %3494 = vmatprep.subr.bf16.mxu1 %v3553_v21  ;;  %v4040_v48 = vld [vmem:[%s461_s11] ss:$0 sm:$0xff]  ;;  %v1332_v53 = vsel %vm1315_vm3, %v1267_v43, %v1283_v44  ;;  %v1316_v57 = vsel %vm1315_vm3, %v1283_v44, %v1299_v46  ;;  %v4090_v19 = vrot.slane %v1014_v34, %v2059_v62 }
  0x4c   : > { %3420 = vmatprep.mubr.msk.bf16.mxu0 %vm481_vm1, %v442_v49  ;;  %v1167_v49 = vmul.f32 %v4024_v39, %v1147_v42  ;;  %v1236_v6 = vadd.f32 %v1204_v52, %v1168_v51  ;;  %v1353_v7 = vmul.f32 %v4038_v47, %v1316_v57 }
  0x4d   : > { %3449 = vmatpush3.bf16.msra.mxu0 %v3553_v21 }
  0x4e   : > { %3502 = vmatpush3.bf16.msra.mxu1 %v3553_v21  ;;  %3450 = vmatprep.subr.bf16.mxu0 %v3554_v22  ;;  %v1235_v1 = vadd.f32 %v1203_v50, %v1167_v49  ;;  %v4101_v27 = vadd.f32 %v1353_v7, %v1236_v6 }
  0x4f   : > { %3495 = vmatprep.subr.bf16.mxu1 %v3554_v22 }
  0x51   : > { %3451 = vmatpush3.bf16.msra.mxu0 %v3554_v22 }
  0x52   : > { %3503 = vmatpush3.bf16.msra.mxu1 %v3554_v22  ;;  %3452 = vmatprep.subr.bf16.mxu0 %v3555_v23 }
  0x53   : > { %3421 = vmatmul.mubr.msk.bf16.gmra.mrb[8].mxu0 %vm481_vm1, %v443_v54  ;;  %3496 = vmatprep.subr.bf16.mxu1 %v3555_v23  ;;  %v1562_v54 = vsub.s32 3, %v4011_v28 }
  0x54   : > { %3424 = vmatprep.mubr.msk.bf16.mxu0 %vm481_vm1, %v444_v55  ;;  %v1630_v55 = vsub.s32 4, %v4011_v28 }
  0x55   : > { %3453 = vmatpush3.bf16.msra.mxu0 %v3555_v23 }
  0x56   : > { %3504 = vmatpush3.bf16.msra.mxu1 %v3555_v23  ;;  %3454 = vmatprep.subr.bf16.mxu0 %v3556_v24  ;;  %v4072_v10 = vrot.slane %v1014_v34, %v1630_v55  ;;  %v4096_v23 = vld [vmem:[#allocation3 + $0x58] sm:$0xff] }
  0x57   : > { %3497 = vmatprep.subr.bf16.mxu1 %v3556_v24 }
  0x59   : > { %3455 = vmatpush3.bf16.msra.mxu0 %v3556_v24 }
  0x5a   : > { %3505 = vmatpush3.bf16.msra.mxu1 %v3556_v24  ;;  %3456 = vmatprep.subr.bf16.mxu0 %v3557_v25 }
  0x5b   : > { %3425 = vmatmul.mubr.msk.bf16.gmra.mrb[12].mxu0 %vm481_vm1, %v445_v60  ;;  %3498 = vmatprep.subr.bf16.mxu1 %v3557_v25 }
  0x5c   : > { %3428 = vmatprep.mubr.msk.bf16.mxu0 %vm481_vm1, %v446_v61 }
  0x5d   : > { %3457 = vmatpush3.bf16.msra.mxu0 %v3557_v25 }
  0x5e   : > { %3506 = vmatpush3.bf16.msra.mxu1 %v3557_v25  ;;  %3458 = vmatprep.subr.bf16.mxu0 %v3558_v26 }
  0x5f   : > { %3499 = vmatprep.subr.bf16.mxu1 %v3558_v26 }
  0x61   : > { %3459 = vmatpush3.bf16.msra.mxu0 %v3558_v26 }
  0x62   : > { %3507 = vmatpush3.bf16.msra.mxu1 %v3558_v26 }
  0x63   : > { %3429 = vmatmul.mubr.msk.bf16.gmra.mrb[16].mxu0 %vm481_vm1, %v447_v2  ;;  %v1352_v2 = vmul.f32 %v4038_v47, %v1332_v53 }
  0x64   : > { %3432 = vmatprep.mubr.msk.bf16.mxu0 %vm481_vm1, %v448_v3 }
  0x65   : > { %v4099_v26 = vadd.f32 %v1352_v2, %v1235_v1 }
  0x6b   : > { %3433 = vmatmul.mubr.msk.bf16.gmra.mrb[20].mxu0 %vm481_vm1, %v449_v8  ;;  %v4068_v8 = vld [vmem:[#allocation3 + $0x20] sm:$0xff] }
  0x6c   : > { %3436 = vmatprep.mubr.msk.bf16.mxu0 %vm481_vm1, %v450_v9  ;;  %v4070_v9 = vrot.slane %v1014_v34, %v1562_v54 }
  0x73   : > { %3437 = vmatmul.mubr.msk.bf16.gmra.mrb[24].mxu0 %vm481_vm1, %v451_v14  ;;  %v4081_v14 = vrot.slane %v1014_v34, %v1991_v59 }
  0x74   : > { %3440 = vmatprep.mubr.msk.bf16.mxu0 %vm481_vm1, %v452_v15 }
  0x7b   : > { %3441 = vmatmul.mubr.msk.bf16.gmra.mrb[28].mxu0 %vm481_vm1, %v453_v18  ;;  %v4088_v18 = vld [vmem:[#allocation3 + $0x40] sm:$0xff] }
 0x116   : > { %v3414_v56 = vpop.f32.mrb[0].mxu0 }
 0x117   : > { %v4055_v60 = vadd.f32 %v3414_v56, %v4040_v48  ;;  %v564_v61 = vpop.f32.mrb[1].mxu0 }
 0x118   : > { %v4059_v63 = vadd.f32 %v4040_v48, %v564_v61  ;;  %v3415_v0 = vpop.f32.mrb[2].mxu0 }
 0x119   : > { %v693_v3 = vmul.f32 %v4055_v60, %v4055_v60  ;;  %v4065_v4 = vadd.f32 %v3415_v0, %v4040_v48  ;;  %v567_v5 = vpop.f32.mrb[3].mxu0  ;;  %v4135_v0 = vld [vmem:[#allocation3 + $0x80] sm:$0xff] }
 0x11a   : > { %v691_v11 = vmul.f32 %v4059_v63, %v4059_v63  ;;  %v4077_v12 = vadd.f32 %v4040_v48, %v567_v5  ;;  %v4140_v5 = vld [vmem:[#allocation3 + $0x98] sm:$0xff] }
 0x11b   : > { %v725_v15 = vmul.f32 %v693_v3, %v4055_v60  ;;  %v694_v16 = vmul.f32 %v4065_v4, %v4065_v4 }
 0x11c   : > { %v723_v20 = vmul.f32 %v691_v11, %v4059_v63  ;;  %v692_v21 = vmul.f32 %v4077_v12, %v4077_v12 }
 0x11d   : > { %v757_v24 = vmul.f32 0.044715, %v725_v15  ;;  %v726_v25 = vmul.f32 %v694_v16, %v4065_v4  ;;  %v4144_v15 = vld [vmem:[#allocation3 + $0xa0] sm:$0xff] }
 0x11e   : > { %v755_v30 = vmul.f32 0.044715, %v723_v20  ;;  %v724_v31 = vmul.f32 %v692_v21, %v4077_v12  ;;  %v3418_v32 = vpop.f32.mrb[4].mxu0  ;;  %5861 = vst [vmem:[#allocation4_spill] sm:$0xff] %v4144_v15 }
 0x11f   : > { %v789_v35 = vadd.f32 %v757_v24, %v4055_v60  ;;  %v758_v36 = vmul.f32 0.044715, %v726_v25  ;;  %v4110_v37 = vadd.f32 %v3418_v32, %v4040_v48  ;;  %v580_v38 = vpop.f32.mrb[5].mxu0 }
 0x120   : > { %v787_v42 = vadd.f32 %v755_v30, %v4059_v63  ;;  %v756_v43 = vmul.f32 0.044715, %v724_v31  ;;  %v4115_v44 = vadd.f32 %v4040_v48, %v580_v38  ;;  %v3419_v45 = vpop.f32.mrb[6].mxu0 }
 0x121   : > { %v821_v49 = vmul.f32 0.7978846, %v789_v35  ;;  %v790_v50 = vadd.f32 %v758_v36, %v4065_v4  ;;  %v697_v51 = vmul.f32 %v4110_v37, %v4110_v37  ;;  %v4122_v52 = vadd.f32 %v3419_v45, %v4040_v48  ;;  %v583_v53 = vpop.f32.mrb[7].mxu0 }
 0x122   : > { %v819_v54 = vmul.f32 0.7978846, %v787_v42  ;;  %v788_v55 = vadd.f32 %v756_v43, %v4077_v12  ;;  %v695_v56 = vmul.f32 %v4115_v44, %v4115_v44  ;;  %v4128_v57 = vadd.f32 %v4040_v48, %v583_v53 }
 0x123   : > { %3559 = vtanh.f32 %v821_v49  ;;  %v822_v59 = vmul.f32 0.7978846, %v790_v50  ;;  %v729_v61 = vmul.f32 %v697_v51, %v4110_v37  ;;  %v698_v62 = vmul.f32 %v4122_v52, %v4122_v52 }
 0x124   : > { %3561 = vtanh.f32 %v819_v54  ;;  %v820_v1 = vmul.f32 0.7978846, %v788_v55  ;;  %v727_v2 = vmul.f32 %v695_v56, %v4115_v44  ;;  %v696_v3 = vmul.f32 %v4128_v57, %v4128_v57 }
 0x125   : > { %3563 = vtanh.f32 %v822_v59  ;;  %v761_v6 = vmul.f32 0.044715, %v729_v61  ;;  %v730_v7 = vmul.f32 %v698_v62, %v4122_v52  ;;  %v4170_v62 = vld [vmem:[#allocation3 + $0xb8] sm:$0xff] }
 0x126   : > { %3565 = vtanh.f32 %v820_v1  ;;  %v759_v16 = vmul.f32 0.044715, %v727_v2  ;;  %v728_v20 = vmul.f32 %v696_v3, %v4128_v57  ;;  %v3422_v21 = vpop.f32.mrb[8].mxu0  ;;  %5862 = vst [vmem:[#allocation5_spill] sm:$0xff] %v4170_v62 }
 0x127   : > { %v793_v25 = vadd.f32 %v761_v6, %v4110_v37  ;;  %v762_v30 = vmul.f32 0.044715, %v730_v7  ;;  %v4150_v31 = vadd.f32 %v3422_v21, %v4040_v48  ;;  %v596_v32 = vpop.f32.mrb[9].mxu0 }
 0x128   : > { %v791_v36 = vadd.f32 %v759_v16, %v4115_v44  ;;  %v760_v38 = vmul.f32 0.044715, %v728_v20  ;;  %v4155_v42 = vadd.f32 %v4040_v48, %v596_v32  ;;  %v3423_v43 = vpop.f32.mrb[10].mxu0 }
 0x129   : > { %v825_v49 = vmul.f32 0.7978846, %v793_v25  ;;  %v794_v50 = vadd.f32 %v762_v30, %v4122_v52  ;;  %v701_v51 = vmul.f32 %v4150_v31, %v4150_v31  ;;  %v4162_v53 = vadd.f32 %v3423_v43, %v4040_v48  ;;  %v599_v54 = vpop.f32.mrb[11].mxu0 }
 0x12a   : > { %v823_v55 = vmul.f32 0.7978846, %v791_v36  ;;  %v792_v56 = vadd.f32 %v760_v38, %v4128_v57  ;;  %v699_v59 = vmul.f32 %v4155_v42, %v4155_v42  ;;  %v4168_v61 = vadd.f32 %v4040_v48, %v599_v54 }
 0x12b   : > { %3567 = vtanh.f32 %v825_v49  ;;  %v826_v1 = vmul.f32 0.7978846, %v794_v50  ;;  %v733_v2 = vmul.f32 %v701_v51, %v4150_v31  ;;  %v702_v3 = vmul.f32 %v4162_v53, %v4162_v53 }
 0x12c   : > { %3569 = vtanh.f32 %v823_v55  ;;  %v824_v6 = vmul.f32 0.7978846, %v792_v56  ;;  %v731_v7 = vmul.f32 %v699_v59, %v4155_v42  ;;  %v700_v16 = vmul.f32 %v4168_v61, %v4168_v61 }
 0x12d   : > { %v3560_v20 = vpop.eup %3559  ;;  %3571 = vtanh.f32 %v826_v1  ;;  %v765_v21 = vmul.f32 0.044715, %v733_v2  ;;  %v734_v25 = vmul.f32 %v702_v3, %v4162_v53 }
 0x12e   : > { %v3562_v32 = vpop.eup %3561  ;;  %v885_v36 = vadd.f32 1.0, %v3560_v20  ;;  %3573 = vtanh.f32 %v824_v6  ;;  %v763_v38 = vmul.f32 0.044715, %v731_v7  ;;  %v732_v43 = vmul.f32 %v700_v16, %v4168_v61  ;;  %v3426_v49 = vpop.f32.mrb[12].mxu0 }
 0x12f   : > { %v3564_v50 = vpop.eup %3563  ;;  %v883_v51 = vadd.f32 1.0, %v3562_v32  ;;  %v797_v54 = vadd.f32 %v765_v21, %v4150_v31  ;;  %v766_v55 = vmul.f32 0.044715, %v734_v25  ;;  %v4183_v56 = vadd.f32 %v3426_v49, %v4040_v48  ;;  %v612_v59 = vpop.f32.mrb[13].mxu0 }
 0x130   : > { %v3566_v1 = vpop.eup %3565  ;;  %v917_v2 = vmul.f32 0.5, %v885_v36  ;;  %v886_v3 = vadd.f32 1.0, %v3564_v50  ;;  %v795_v30 = vadd.f32 %v763_v38, %v4155_v42  ;;  %v764_v20 = vmul.f32 0.044715, %v732_v43  ;;  %v3427_v6 = vpop.f32.mrb[14].mxu0 }
 0x131   : > { %v915_v7 = vmul.f32 0.5, %v883_v51  ;;  %v884_v45 = vadd.f32 1.0, %v3566_v1  ;;  %v829_v16 = vmul.f32 0.7978846, %v797_v54  ;;  %v798_v35 = vadd.f32 %v766_v55, %v4162_v53  ;;  %v615_v32 = vpop.f32.mrb[15].mxu0 }
 0x132   : > { %v4188_v21 = vmul.f32 %v917_v2, %v4055_v60  ;;  %v918_v25 = vmul.f32 0.5, %v886_v3  ;;  %v827_v49 = vmul.f32 0.7978846, %v795_v30  ;;  %v796_v24 = vadd.f32 %v764_v20, %v4168_v61 }
 0x133   : > { %v4192_v36 = vmul.f32 %v915_v7, %v4059_v63  ;;  %v916_v50 = vmul.f32 0.5, %v884_v45  ;;  %3575 = vtanh.f32 %v829_v16  ;;  %v830_v38 = vmul.f32 0.7978846, %v798_v35 }
 0x134   : > { %982 = vst [vmem:[#allocation3 + $0x48] sm:$0xff] %v4188_v21  ;;  %v4196_v43 = vmul.f32 %v918_v25, %v4065_v4  ;;  %3577 = vtanh.f32 %v827_v49  ;;  %v828_v51 = vmul.f32 0.7978846, %v796_v24  ;;  %v705_v60 = vmul.f32 %v4183_v56, %v4183_v56 }
 0x135   : > { %v3568_v54 = vpop.eup %3567  ;;  %v4203_v63 = vmul.f32 %v916_v50, %v4077_v12  ;;  %3579 = vtanh.f32 %v830_v38  ;;  %v4208_v24 = vadd.f32 %v4040_v48, %v612_v59  ;;  %v4213_v12 = vadd.f32 %v3427_v6, %v4040_v48 }
 0x136   : > { %v3570_v35 = vpop.eup %3569  ;;  %983 = vst [vmem:[#allocation3 + $0x50] sm:$0xff] %v4196_v43  ;;  %v889_v45 = vadd.f32 1.0, %v3568_v54  ;;  %3581 = vtanh.f32 %v828_v51  ;;  %v737_v4 = vmul.f32 %v705_v60, %v4183_v56  ;;  %v3430_v1 = vpop.f32.mrb[16].mxu0  ;;  %v4220_v11 = vadd.f32 %v4040_v48, %v615_v32 }
 0x137   : > { %v3572_v2 = vpop.eup %3571  ;;  %v887_v7 = vadd.f32 1.0, %v3570_v35  ;;  %v628_v16 = vpop.f32.mrb[17].mxu0  ;;  %v703_v51 = vmul.f32 %v4208_v24, %v4208_v24  ;;  %v706_v46 = vmul.f32 %v4213_v12, %v4213_v12 }
 0x138   : > { %v3574_v25 = vpop.eup %3573  ;;  %v921_v49 = vmul.f32 0.5, %v889_v45  ;;  %v890_v50 = vadd.f32 1.0, %v3572_v2  ;;  %v769_v38 = vmul.f32 0.044715, %v737_v4  ;;  %v3431_v59 = vpop.f32.mrb[18].mxu0 }
 0x139   : > { %v919_v60 = vmul.f32 0.5, %v887_v7  ;;  %v888_v54 = vadd.f32 1.0, %v3574_v25  ;;  %v631_v35 = vpop.f32.mrb[19].mxu0  ;;  %v735_v4 = vmul.f32 %v703_v51, %v4208_v24  ;;  %v738_v7 = vmul.f32 %v706_v46, %v4213_v12 }
 0x13a   : > { %v953_v6 = vmul.f32 %v921_v49, %v4110_v37  ;;  %v922_v41 = vmul.f32 0.5, %v890_v50  ;;  %v801_v45 = vadd.f32 %v769_v38, %v4183_v56  ;;  %v704_v25 = vmul.f32 %v4220_v11, %v4220_v11 }
 0x13b   : > { %v951_v2 = vmul.f32 %v919_v60, %v4115_v44  ;;  %v920_v34 = vmul.f32 0.5, %v888_v54  ;;  %v767_v20 = vmul.f32 0.044715, %v735_v4  ;;  %v4231_v37 = vadd.f32 %v3430_v1, %v4040_v48 }
 0x13c   : > { %986 = vst [vmem:[#allocation3 + $0x88] sm:$0xff] %v953_v6  ;;  %v954_v32 = vmul.f32 %v922_v41, %v4122_v52  ;;  %v833_v55 = vmul.f32 0.7978846, %v801_v45  ;;  %v770_v44 = vmul.f32 0.044715, %v738_v7  ;;  %v736_v38 = vmul.f32 %v704_v25, %v4220_v11 }
 0x13d   : > { %v3576_v49 = vpop.eup %3575  ;;  %984 = vst [vmem:[#allocation3 + $0x68] sm:$0xff] %v951_v2  ;;  %v4234_v50 = vmul.f32 %v920_v34, %v4128_v57  ;;  %v4238_v46 = vadd.f32 %v4040_v48, %v628_v16  ;;  %v799_v41 = vadd.f32 %v767_v20, %v4208_v24  ;;  %v709_v52 = vmul.f32 %v4231_v37, %v4231_v37 }
 0x13e   : > { %v3578_v51 = vpop.eup %3577  ;;  %987 = vst [vmem:[#allocation3 + $0x90] sm:$0xff] %v954_v32  ;;  %v893_v60 = vadd.f32 1.0, %v3576_v49  ;;  %3583 = vtanh.f32 %v833_v55  ;;  %v3434_v1 = vpop.f32.mrb[20].mxu0  ;;  %v802_v57 = vadd.f32 %v770_v44, %v4213_v12  ;;  %v768_v6 = vmul.f32 0.044715, %v736_v38 }
 0x13f   : > { %v3580_v54 = vpop.eup %3579  ;;  %985 = vst [vmem:[#allocation3 + $0x70] sm:$0xff] %v4234_v50  ;;  %v891_v34 = vadd.f32 1.0, %v3578_v51  ;;  %v707_v16 = vmul.f32 %v4238_v46, %v4238_v46  ;;  %v644_v45 = vpop.f32.mrb[21].mxu0  ;;  %v831_v7 = vmul.f32 0.7978846, %v799_v41  ;;  %v741_v20 = vmul.f32 %v709_v52, %v4231_v37 }
 0x140   : > { %v3582_v4 = vpop.eup %3581  ;;  %v925_v2 = vmul.f32 0.5, %v893_v60  ;;  %v894_v55 = vadd.f32 1.0, %v3580_v54  ;;  %v3435_v25 = vpop.f32.mrb[22].mxu0  ;;  %v834_v33 = vmul.f32 0.7978846, %v802_v57  ;;  %v800_v22 = vadd.f32 %v768_v6, %v4220_v11 }
 0x141   : > { %v923_v32 = vmul.f32 0.5, %v891_v34  ;;  %v892_v49 = vadd.f32 1.0, %v3582_v4  ;;  %v647_v51 = vpop.f32.mrb[23].mxu0  ;;  %3585 = vtanh.f32 %v831_v7  ;;  %v773_v30 = vmul.f32 0.044715, %v741_v20 }
 0x142   : > { %v957_v44 = vmul.f32 %v925_v2, %v4150_v31  ;;  %v926_v38 = vmul.f32 0.5, %v894_v55  ;;  %3587 = vtanh.f32 %v834_v33  ;;  %v832_v60 = vmul.f32 0.7978846, %v800_v22 }
 0x143   : > { %v955_v3 = vmul.f32 %v923_v32, %v4155_v42  ;;  %v924_v62 = vmul.f32 0.5, %v892_v49  ;;  %v805_v52 = vadd.f32 %v773_v30, %v4231_v37  ;;  %v739_v54 = vmul.f32 %v707_v16, %v4238_v46 }
 0x144   : > { %990 = vst [vmem:[#allocation3 + $0xc8] sm:$0xff] %v957_v44  ;;  %v958_v41 = vmul.f32 %v926_v38, %v4162_v53  ;;  %v4255_v34 = vadd.f32 %v3431_v59, %v4040_v48  ;;  %3589 = vtanh.f32 %v832_v60  ;;  %v4259_v57 = vadd.f32 %v4040_v48, %v631_v35 }
 0x145   : > { %988 = vst [vmem:[#allocation3 + $0xa8] sm:$0xff] %v955_v3  ;;  %v956_v31 = vmul.f32 %v924_v62, %v4168_v61  ;;  %v4262_v33 = vadd.f32 %v3434_v1, %v4040_v48  ;;  %v837_v22 = vmul.f32 0.7978846, %v805_v52  ;;  %v771_v42 = vmul.f32 0.044715, %v739_v54 }
 0x146   : > { %991 = vst [vmem:[#allocation3 + $0xd0] sm:$0xff] %v958_v41  ;;  %v710_v53 = vmul.f32 %v4255_v34, %v4255_v34  ;;  %v4267_v30 = vadd.f32 %v4040_v48, %v644_v45  ;;  %v3438_v59 = vpop.f32.mrb[24].mxu0  ;;  %v708_v61 = vmul.f32 %v4259_v57, %v4259_v57  ;;  %v4274_v3 = vadd.f32 %v3435_v25, %v4040_v48 }
 0x147   : > { %989 = vst [vmem:[#allocation3 + $0xb0] sm:$0xff] %v956_v31  ;;  %v713_v62 = vmul.f32 %v4262_v33, %v4262_v33  ;;  %v4277_v35 = vadd.f32 %v4040_v48, %v647_v51  ;;  %v4279_v1 = vpop.f32.mrb[25].mxu0  ;;  %3591 = vtanh.f32 %v837_v22  ;;  %v803_v16 = vadd.f32 %v771_v42, %v4238_v46 }
 0x148   : > { %v3584_v6 = vpop.eup %3583  ;;  %v742_v45 = vmul.f32 %v710_v53, %v4255_v34  ;;  %v711_v4 = vmul.f32 %v4267_v30, %v4267_v30  ;;  %v3439_v2 = vpop.f32.mrb[26].mxu0  ;;  %v740_v7 = vmul.f32 %v708_v61, %v4259_v57  ;;  %v714_v25 = vmul.f32 %v4274_v3, %v4274_v3 }
 0x149   : > { %v897_v55 = vadd.f32 1.0, %v3584_v6  ;;  %v745_v20 = vmul.f32 %v713_v62, %v4262_v33  ;;  %v663_v32 = vpop.f32.mrb[27].mxu0  ;;  %v835_v49 = vmul.f32 0.7978846, %v803_v16  ;;  %v712_v38 = vmul.f32 %v4277_v35, %v4277_v35 }
 0x14a   : > { %v774_v51 = vmul.f32 0.044715, %v742_v45  ;;  %v743_v44 = vmul.f32 %v711_v4, %v4267_v30  ;;  %v772_v41 = vmul.f32 0.044715, %v740_v7  ;;  %v746_v54 = vmul.f32 %v714_v25, %v4274_v3 }
 0x14b   : > { %v929_v60 = vmul.f32 0.5, %v897_v55  ;;  %v777_v52 = vmul.f32 0.044715, %v745_v20  ;;  %v3586_v31 = vpop.eup %3585  ;;  %3593 = vtanh.f32 %v835_v49  ;;  %v744_v53 = vmul.f32 %v712_v38, %v4277_v35 }
 0x14c   : > { %v806_v22 = vadd.f32 %v774_v51, %v4255_v34  ;;  %v775_v42 = vmul.f32 0.044715, %v743_v44  ;;  %v3588_v61 = vpop.eup %3587  ;;  %v895_v6 = vadd.f32 1.0, %v3586_v31  ;;  %v804_v16 = vadd.f32 %v772_v41, %v4259_v57 }
 0x14d   : > { %v961_v62 = vmul.f32 %v929_v60, %v4183_v56  ;;  %v809_v45 = vadd.f32 %v777_v52, %v4262_v33  ;;  %v898_v4 = vadd.f32 1.0, %v3588_v61  ;;  %v778_v20 = vmul.f32 0.044715, %v746_v54 }
 0x14e   : > { %v838_v55 = vmul.f32 0.7978846, %v806_v22  ;;  %v807_v7 = vadd.f32 %v775_v42, %v4267_v30  ;;  %v3442_v25 = vpop.f32.mrb[28].mxu0  ;;  %v3590_v49 = vpop.eup %3589  ;;  %v927_v51 = vmul.f32 0.5, %v895_v6  ;;  %v836_v44 = vmul.f32 0.7978846, %v804_v16 }
 0x14f   : > { %994 = vst [vmem:[#allocation3 + $0x108] sm:$0xff] %v961_v62  ;;  %v841_v15 = vmul.f32 0.7978846, %v809_v45  ;;  %v4300_v38 = vadd.f32 %v3438_v59, %v4040_v48  ;;  %v676_v56 = vpop.f32.mrb[29].mxu0  ;;  %v930_v60 = vmul.f32 0.5, %v898_v4  ;;  %v896_v31 = vadd.f32 1.0, %v3590_v49 }
 0x150   : > { %3595 = vtanh.f32 %v838_v55  ;;  %v839_v41 = vmul.f32 0.7978846, %v807_v7  ;;  %v3443_v52 = vpop.f32.mrb[30].mxu0  ;;  %v959_v22 = vmul.f32 %v927_v51, %v4208_v24  ;;  %v810_v54 = vadd.f32 %v778_v20, %v4274_v3 }
 0x151   : > { %3597 = vtanh.f32 %v836_v44  ;;  %v776_v42 = vmul.f32 0.044715, %v744_v53  ;;  %v4304_v61 = vpop.f32.mrb[31].mxu0  ;;  %v3592_v62 = vpop.eup %3591  ;;  %v962_v6 = vmul.f32 %v930_v60, %v4213_v12  ;;  %v928_v16 = vmul.f32 0.5, %v896_v31 }
 0x152   : > { %3599 = vtanh.f32 %v841_v15  ;;  %v717_v59 = vmul.f32 %v4300_v38, %v4300_v38  ;;  %992 = vst [vmem:[#allocation3 + $0xe8] sm:$0xff] %v959_v22  ;;  %v901_v45 = vadd.f32 1.0, %v3592_v62  ;;  %v842_v4 = vmul.f32 0.7978846, %v810_v54 }
 0x153   : > { %3601 = vtanh.f32 %v839_v41  ;;  %v808_v24 = vadd.f32 %v776_v42, %v4277_v35  ;;  %995 = vst [vmem:[#allocation3 + $0x110] sm:$0xff] %v962_v6  ;;  %v960_v55 = vmul.f32 %v928_v16, %v4220_v11  ;;  %v4314_v7 = vadd.f32 %v4040_v48, %v4279_v1 }
 0x154   : > { %v749_v53 = vmul.f32 %v717_v59, %v4300_v38  ;;  %v4317_v15 = vadd.f32 %v3439_v2, %v4040_v48  ;;  %v933_v12 = vmul.f32 0.5, %v901_v45  ;;  %3603 = vtanh.f32 %v842_v4 }
 0x155   : > { %v840_v20 = vmul.f32 0.7978846, %v808_v24  ;;  %v4320_v49 = vadd.f32 %v4040_v48, %v663_v32  ;;  %v3594_v51 = vpop.eup %3593  ;;  %993 = vst [vmem:[#allocation3 + $0xf0] sm:$0xff] %v960_v55  ;;  %v715_v11 = vmul.f32 %v4314_v7, %v4314_v7  ;;  %v4327_v1 = vadd.f32 %v3442_v25, %v4040_v48 }
 0x156   : > { %v781_v44 = vmul.f32 0.044715, %v749_v53  ;;  %v718_v60 = vmul.f32 %v4317_v15, %v4317_v15  ;;  %v965_v2 = vmul.f32 %v933_v12, %v4231_v37  ;;  %v899_v31 = vadd.f32 1.0, %v3594_v51 }
 0x157   : > { %3605 = vtanh.f32 %v840_v20  ;;  %v716_v32 = vmul.f32 %v4320_v49, %v4320_v49  ;;  %v747_v22 = vmul.f32 %v715_v11, %v4314_v7  ;;  %v721_v42 = vmul.f32 %v4327_v1, %v4327_v1 }
 0x158   : > { %v813_v41 = vadd.f32 %v781_v44, %v4300_v38  ;;  %v750_v54 = vmul.f32 %v718_v60, %v4317_v15  ;;  %998 = vst [vmem:[#allocation3 + $0x148] sm:$0xff] %v965_v2  ;;  %v931_v62 = vmul.f32 0.5, %v899_v31  ;;  %v4339_v37 = vadd.f32 %v4040_v48, %v676_v56 }
 0x159   : > { %v748_v25 = vmul.f32 %v716_v32, %v4320_v49  ;;  %v4342_v6 = vadd.f32 %v3443_v52, %v4040_v48  ;;  %v779_v45 = vmul.f32 0.044715, %v747_v22  ;;  %v753_v24 = vmul.f32 %v721_v42, %v4327_v1 }
 0x15a   : > { %v3596_v16 = vpop.eup %3595  ;;  %v845_v59 = vmul.f32 0.7978846, %v813_v41  ;;  %v782_v4 = vmul.f32 0.044715, %v750_v54  ;;  %v963_v53 = vmul.f32 %v931_v62, %v4238_v46  ;;  %v719_v51 = vmul.f32 %v4339_v37, %v4339_v37 }
 0x15b   : > { %v3598_v55 = vpop.eup %3597  ;;  %v902_v12 = vadd.f32 1.0, %v3596_v16  ;;  %v780_v20 = vmul.f32 0.044715, %v748_v25  ;;  %v811_v52 = vadd.f32 %v779_v45, %v4314_v7  ;;  %v785_v41 = vmul.f32 0.044715, %v753_v24 }
 0x15c   : > { %v3600_v44 = vpop.eup %3599  ;;  %v900_v56 = vadd.f32 1.0, %v3598_v55  ;;  %3607 = vtanh.f32 %v845_v59  ;;  %v814_v11 = vadd.f32 %v782_v4, %v4317_v15  ;;  %996 = vst [vmem:[#allocation3 + $0x128] sm:$0xff] %v963_v53 }
 0x15d   : > { %v3602_v60 = vpop.eup %3601  ;;  %v934_v2 = vmul.f32 0.5, %v902_v12  ;;  %v905_v31 = vadd.f32 1.0, %v3600_v44  ;;  %v812_v32 = vadd.f32 %v780_v20, %v4320_v49  ;;  %v843_v54 = vmul.f32 0.7978846, %v811_v52 }
 0x15e   : > { %v932_v46 = vmul.f32 0.5, %v900_v56  ;;  %v903_v22 = vadd.f32 1.0, %v3602_v60  ;;  %v846_v42 = vmul.f32 0.7978846, %v814_v11  ;;  %v3604_v62 = vpop.eup %3603  ;;  %v817_v45 = vadd.f32 %v785_v41, %v4327_v1 }
 0x15f   : > { %v966_v25 = vmul.f32 %v934_v2, %v4255_v34  ;;  %v937_v16 = vmul.f32 0.5, %v905_v31  ;;  %v844_v59 = vmul.f32 0.7978846, %v812_v32  ;;  %v906_v53 = vadd.f32 1.0, %v3604_v62 }
 0x160   : > { %v964_v4 = vmul.f32 %v932_v46, %v4259_v57  ;;  %v935_v55 = vmul.f32 0.5, %v903_v22  ;;  %3609 = vtanh.f32 %v843_v54  ;;  %v849_v20 = vmul.f32 0.7978846, %v817_v45 }
 0x161   : > { %v3606_v12 = vpop.eup %3605  ;;  %999 = vst [vmem:[#allocation3 + $0x150] sm:$0xff] %v966_v25  ;;  %v969_v24 = vmul.f32 %v937_v16, %v4262_v33  ;;  %3611 = vtanh.f32 %v846_v42  ;;  %v751_v44 = vmul.f32 %v719_v51, %v4339_v37  ;;  %v938_v56 = vmul.f32 0.5, %v906_v53 }
 0x162   : > { %997 = vst [vmem:[#allocation3 + $0x130] sm:$0xff] %v964_v4  ;;  %v967_v34 = vmul.f32 %v935_v55, %v4267_v30  ;;  %v904_v52 = vadd.f32 1.0, %v3606_v12  ;;  %3613 = vtanh.f32 %v844_v59  ;;  %v722_v11 = vmul.f32 %v4342_v6, %v4342_v6 }
 0x163   : > { %1002 = vst [vmem:[#allocation3 + $0x188] sm:$0xff] %v969_v24  ;;  %3615 = vtanh.f32 %v849_v20  ;;  %v783_v57 = vmul.f32 0.044715, %v751_v44  ;;  %v4361_v60 = vadd.f32 %v4040_v48, %v4304_v61  ;;  %v970_v33 = vmul.f32 %v938_v56, %v4274_v3 }
 0x164   : > { %1000 = vst [vmem:[#allocation3 + $0x168] sm:$0xff] %v967_v34  ;;  %v936_v51 = vmul.f32 0.5, %v904_v52  ;;  %v5863_v2 = vrot.slane %v4203_v63, 7  ;;  %v5864_v30 = vrot.slane %v4192_v36, 7  ;;  %v5866_v41 = vrot.slane %v4068_v8, 7 }
 0x165   : > { %v815_v61 = vadd.f32 %v783_v57, %v4339_v37  ;;  %v754_v3 = vmul.f32 %v722_v11, %v4342_v6  ;;  %v720_v46 = vmul.f32 %v4361_v60, %v4361_v60  ;;  %1003 = vst [vmem:[#allocation3 + $0x190] sm:$0xff] %v970_v33  ;;  %v1632_v62 = vmul.f32 %v4072_v10, %v4192_v36 }
 0x166   : > { %v4370_v31 = vsel %vm1130_vm2, %v5864_v30, %v5863_v2  ;;  %v5865_v32 = vmov %v5864_v30  ;;  %v3608_v54 = vpop.eup %3607  ;;  %v968_v42 = vmul.f32 %v936_v51, %v4277_v35  ;;  %v1633_v25 = vmul.f32 %v4072_v10, %v4203_v63 }
 0x167   : > { %v4378_v48 = vsel %vm1130_vm2, %v5866_v41, %v5865_v32  ;;  %v1565_v8 = vmul.f32 %v4070_v9, %v4370_v31  ;;  %v909_v16 = vadd.f32 1.0, %v3608_v54  ;;  %v847_v59 = vmul.f32 0.7978846, %v815_v61 }
 0x168   : > { %v1564_v22 = vmul.f32 %v4070_v9, %v4378_v48  ;;  %v786_v45 = vmul.f32 0.044715, %v754_v3  ;;  %v752_v4 = vmul.f32 %v720_v46, %v4361_v60  ;;  %1001 = vst [vmem:[#allocation3 + $0x170] sm:$0xff] %v968_v42  ;;  %v5867_v35 = vrot.slane %v4086_v17, 1 }
 0x169   : > { %v1597_v53 = vadd.f32 %v1565_v8, %v4101_v27  ;;  %v5868_v12 = vrot.slane %v4203_v63, 1  ;;  %v5870_v44 = vrot.slane %v4192_v36, 1  ;;  %v941_v56 = vmul.f32 0.5, %v909_v16 }
 0x16a   : > { %v1596_v55 = vadd.f32 %v1564_v22, %v4099_v26  ;;  %3617 = vtanh.f32 %v847_v59  ;;  %v818_v26 = vadd.f32 %v786_v45, %v4342_v6  ;;  %v784_v27 = vmul.f32 0.044715, %v752_v4  ;;  %v3610_v17 = vpop.eup %3609 }
 0x16b   : > { %v4402_v24 = vsel %vm1315_vm3, %v5868_v12, %v5867_v35  ;;  %v5869_v20 = vmov %v5868_v12  ;;  %v1665_v57 = vadd.f32 %v1633_v25, %v1597_v53  ;;  %v3612_v51 = vpop.eup %3611  ;;  %v973_v2 = vmul.f32 %v941_v56, %v4300_v38 }
 0x16c   : > { %v4410_v34 = vsel %vm1315_vm3, %v5870_v44, %v5869_v20  ;;  %v1664_v52 = vadd.f32 %v1632_v62, %v1596_v55  ;;  %v1781_v33 = vmul.f32 %v4079_v13, %v4402_v24  ;;  %v907_v30 = vadd.f32 1.0, %v3610_v17  ;;  %v3614_v61 = vpop.eup %3613 }
 0x16d   : > { %v1780_v11 = vmul.f32 %v4079_v13, %v4410_v34  ;;  %v850_v32 = vmul.f32 0.7978846, %v818_v26  ;;  %v816_v41 = vadd.f32 %v784_v27, %v4361_v60  ;;  %v910_v3 = vadd.f32 1.0, %v3612_v51  ;;  %v3616_v42 = vpop.eup %3615  ;;  %1006 = vst [vmem:[#allocation3 + $0x1c8] sm:$0xff] %v973_v2 }
 0x16e   : > { %v1813_v22 = vadd.f32 %v1781_v33, %v1665_v57  ;;  %v1925_v54 = vrot.slane %v4188_v21, 7  ;;  %v939_v8 = vmul.f32 0.5, %v907_v30  ;;  %v908_v62 = vadd.f32 1.0, %v3614_v61 }
 0x16f   : > { %v1812_v46 = vadd.f32 %v1780_v11, %v1664_v52  ;;  %3619 = vtanh.f32 %v850_v32  ;;  %v848_v25 = vmul.f32 0.7978846, %v816_v41  ;;  %v942_v16 = vmul.f32 0.5, %v910_v3  ;;  %v4437_v52 = vld [vmem:[%s4018_s8 + $0x8] ss:$0 sm:$0xff] }
 0x170   : > { %v913_v59 = vadd.f32 1.0, %v3616_v42  ;;  %v1941_v38 = vrot.slane %v4196_v43, 7  ;;  %v5871_v45 = vrot.slane %v4088_v18, 7  ;;  %v971_v55 = vmul.f32 %v939_v8, %v4314_v7  ;;  %v4469_v42 = vld [vmem:[%s4446_s15] ss:$0 sm:$0xff] }
 0x171   : > { %v940_v53 = vmul.f32 0.5, %v908_v62  ;;  %3621 = vtanh.f32 %v848_v25  ;;  %v974_v12 = vmul.f32 %v942_v16, %v4317_v15  ;;  %v2061_v56 = vmul.f32 %v4090_v19, %v4188_v21 }
 0x172   : > { %v1973_v4 = vsel %vm1130_vm2, %v5871_v45, %v1925_v54  ;;  %v945_v20 = vmul.f32 0.5, %v913_v59  ;;  %v1957_v44 = vsel %vm1130_vm2, %v1925_v54, %v1941_v38  ;;  %1004 = vst [vmem:[#allocation3 + $0x1a8] sm:$0xff] %v971_v55  ;;  %v2062_v17 = vmul.f32 %v4090_v19, %v4196_v43 }
 0x173   : > { %v1993_v35 = vmul.f32 %v4081_v14, %v1973_v4  ;;  %v972_v26 = vmul.f32 %v940_v53, %v4320_v49  ;;  %v1994_v27 = vmul.f32 %v4081_v14, %v1957_v44  ;;  %1007 = vst [vmem:[#allocation3 + $0x1d0] sm:$0xff] %v974_v12  ;;  %v2125_v57 = vrot.slane %v4188_v21, 1 }
 0x174   : > { %v977_v15 = vmul.f32 %v945_v20, %v4327_v1  ;;  %v2141_v11 = vrot.slane %v4196_v43, 1  ;;  %v3618_v33 = vpop.eup %3617  ;;  %v1169_v49 = vmul.f32 %v4378_v48, %v4024_v39  ;;  %v1170_v1 = vmul.f32 %v4370_v31, %v4024_v39 }
 0x175   : > { %v2025_v7 = vadd.f32 %v1993_v35, %v1812_v46  ;;  %1005 = vst [vmem:[#allocation3 + $0x1b0] sm:$0xff] %v972_v26  ;;  %v2026_v51 = vadd.f32 %v1994_v27, %v1813_v22  ;;  %v911_v21 = vadd.f32 1.0, %v3618_v33  ;;  %v5872_v43 = vrot.slane %v4096_v23, 1  ;;  %v4464_v46 = vld [vmem:[#allocation3 + $0x48] sm:$0xff]  ;;  %v4466_v22 = vld [vmem:[#allocation3 + $0x50] sm:$0xff] }
 0x176   : > { %1010 = vst [vmem:[#allocation3 + $0x208] sm:$0xff] %v977_v15  ;;  %v2189_v32 = vsel %vm1315_vm3, %v2125_v57, %v2141_v11  ;;  %v1205_v41 = vmul.f32 %v4026_v40, %v4192_v36  ;;  %v1206_v31 = vmul.f32 %v4026_v40, %v4203_v63  ;;  %v1355_v62 = vmul.f32 %v4402_v24, %v4038_v47  ;;  %v4496_v57 = vld [vmem:[#allocation3 + $0x68] sm:$0xff] }
 0x177   : > { %v2093_v2 = vadd.f32 %v2061_v56, %v2025_v7  ;;  %v2173_v30 = vsel %vm1315_vm3, %v2141_v11, %v5872_v43  ;;  %v2094_v61 = vadd.f32 %v2062_v17, %v2026_v51  ;;  %v2209_v3 = vmul.f32 %v4437_v52, %v2189_v32 }
 0x178   : > { %v2210_v48 = vmul.f32 %v4437_v52, %v2173_v30  ;;  %v943_v54 = vmul.f32 0.5, %v911_v21  ;;  %v1237_v8 = vadd.f32 %v1205_v41, %v1169_v49  ;;  %v1238_v59 = vadd.f32 %v1206_v31, %v1170_v1 }
 0x179   : > { %v3620_v36 = vpop.eup %3619  ;;  %v2241_v25 = vadd.f32 %v2209_v3, %v2093_v2  ;;  %v1354_v38 = vmul.f32 %v4410_v34, %v4038_v47  ;;  %v1497_v4 = vrot.slane %v4464_v46, 7  ;;  %v1513_v55 = vrot.slane %v4466_v22, 7 }
 0x17a   : > { %v2242_v16 = vadd.f32 %v2210_v48, %v2094_v61  ;;  %v975_v63 = vmul.f32 %v943_v54, %v4339_v37  ;;  %v914_v45 = vadd.f32 1.0, %v3620_v36  ;;  %v1387_v20 = vadd.f32 %v1355_v62, %v1238_v59 }
 0x17b   : > { %v3622_v53 = vpop.eup %3621  ;;  %v4479_v35 = vadd.f32 %v4469_v42, %v2241_v25  ;;  %v1386_v12 = vadd.f32 %v1354_v38, %v1237_v8  ;;  %v1529_v37 = vsel %vm1130_vm2, %v1497_v4, %v1513_v55  ;;  %v5873_v34 = vrot.slane %v4088_v18, 7 }
 0x17c   : > { %v4482_v24 = vadd.f32 %v4469_v42, %v2242_v16  ;;  %1008 = vst [vmem:[#allocation3 + $0x1e8] sm:$0xff] %v975_v63  ;;  %v946_v44 = vmul.f32 0.5, %v914_v45  ;;  %v912_v56 = vadd.f32 1.0, %v3622_v53  ;;  %v1567_v15 = vmul.f32 %v4070_v9, %v1529_v37 }
 0x17d   : > { %v1545_v26 = vsel %vm1130_vm2, %v5873_v34, %v1497_v4  ;;  %v2313_v27 = vmul.f32 %v4479_v35, %v4479_v35  ;;  %v1634_v18 = vmul.f32 %v4072_v10, %v4464_v46  ;;  %v1635_v51 = vmul.f32 %v4072_v10, %v4466_v22 }
 0x17e   : > { %v2314_v7 = vmul.f32 %v4482_v24, %v4482_v24  ;;  %v1566_v17 = vmul.f32 %v4070_v9, %v1545_v26  ;;  %v978_v11 = vmul.f32 %v946_v44, %v4342_v6  ;;  %v944_v33 = vmul.f32 0.5, %v912_v56 }
 0x17f   : > { %v2345_v2 = vmul.f32 %v2313_v27, %v4479_v35  ;;  %v1599_v21 = vadd.f32 %v1567_v15, %v1387_v20  ;;  %v1697_v30 = vrot.slane %v4464_v46, 1  ;;  %v1713_v6 = vrot.slane %v4466_v22, 1 }
 0x180   : > { %v2346_v49 = vmul.f32 %v2314_v7, %v4482_v24  ;;  %v1598_v1 = vadd.f32 %v1566_v17, %v1386_v12  ;;  %1011 = vst [vmem:[#allocation3 + $0x210] sm:$0xff] %v978_v11  ;;  %v976_v43 = vmul.f32 %v944_v33, %v4361_v60  ;;  %v1926_v32 = vrot.slane %v4496_v57, 7 }
 0x181   : > { %v2377_v41 = vmul.f32 0.044715, %v2345_v2  ;;  %v1667_v48 = vadd.f32 %v1635_v51, %v1599_v21  ;;  %v5874_v31 = vrot.slane %v4096_v23, 1  ;;  %v1761_v8 = vsel %vm1315_vm3, %v1697_v30, %v1713_v6 }
 0x182   : > { %v2378_v61 = vmul.f32 0.044715, %v2346_v49  ;;  %v1666_v3 = vadd.f32 %v1634_v18, %v1598_v1  ;;  %1009 = vst [vmem:[#allocation3 + $0x1f0] sm:$0xff] %v976_v43  ;;  %v1942_v60 = vrot.slane %v4234_v50, 7  ;;  %v5875_v62 = vrot.slane %v4130_v58, 7 }
 0x183   : > { %v1745_v54 = vsel %vm1315_vm3, %v1713_v6, %v5874_v31  ;;  %v2409_v25 = vadd.f32 %v2377_v41, %v4479_v35  ;;  %v1782_v23 = vmul.f32 %v4079_v13, %v1761_v8  ;;  %v2063_v58 = vmul.f32 %v4090_v19, %v4496_v57 }
 0x184   : > { %v4520_v36 = vsel %vm1130_vm2, %v5875_v62, %v1926_v32  ;;  %v2410_v16 = vadd.f32 %v2378_v61, %v4482_v24  ;;  %v1783_v59 = vmul.f32 %v4079_v13, %v1745_v54  ;;  %v1958_v38 = vsel %vm1130_vm2, %v1926_v32, %v1942_v60  ;;  %v4558_v61 = vld [vmem:[#allocation3 + $0x88] sm:$0xff] }
 0x185   : > { %v1995_v63 = vmul.f32 %v4081_v14, %v4520_v36  ;;  %v2064_v45 = vmul.f32 %v4090_v19, %v4234_v50  ;;  %v2441_v4 = vmul.f32 0.7978846, %v2409_v25  ;;  %v1814_v53 = vadd.f32 %v1782_v23, %v1666_v3 }
 0x186   : > { %v2442_v55 = vmul.f32 0.7978846, %v2410_v16  ;;  %v1815_v12 = vadd.f32 %v1783_v59, %v1667_v48  ;;  %v1996_v20 = vmul.f32 %v4081_v14, %v1958_v38  ;;  %v2126_v44 = vrot.slane %v4496_v57, 1 }
 0x187   : > { %v2142_v56 = vrot.slane %v4234_v50, 1  ;;  %v1171_v34 = vmul.f32 %v1545_v26, %v4024_v39  ;;  %3623 = vtanh.f32 %v2441_v4  ;;  %v2027_v27 = vadd.f32 %v1995_v63, %v1814_v53  ;;  %v4547_v50 = vld [vmem:[#allocation3 + $0x70] sm:$0xff] }
 0x188   : > { %v1172_v7 = vmul.f32 %v1529_v37, %v4024_v39  ;;  %v1207_v17 = vmul.f32 %v4464_v46, %v4026_v40  ;;  %3625 = vtanh.f32 %v2442_v55  ;;  %v2028_v15 = vadd.f32 %v1996_v20, %v1815_v12 }
 0x189   : > { %v5876_v11 = vrot.slane %v4103_v29, 1  ;;  %v2190_v18 = vsel %vm1315_vm3, %v2126_v44, %v2142_v56  ;;  %v2095_v26 = vadd.f32 %v2063_v58, %v2027_v27  ;;  %v1208_v46 = vmul.f32 %v4466_v22, %v4026_v40 }
 0x18a   : > { %v2211_v51 = vmul.f32 %v4437_v52, %v2190_v18  ;;  %v2096_v2 = vadd.f32 %v2064_v45, %v2028_v15  ;;  %v1239_v49 = vadd.f32 %v1207_v17, %v1171_v34  ;;  %v1356_v1 = vmul.f32 %v1761_v8, %v4038_v47  ;;  %v4564_v8 = vld [vmem:[#allocation3 + $0x90] sm:$0xff] }
 0x18b   : > { %v2174_v33 = vsel %vm1315_vm3, %v2142_v56, %v5876_v11  ;;  %v1357_v21 = vmul.f32 %v1745_v54, %v4038_v47  ;;  %v1240_v30 = vadd.f32 %v1208_v46, %v1172_v7  ;;  %v1514_v6 = vrot.slane %v4547_v50, 7 }
 0x18c   : > { %v2212_v37 = vmul.f32 %v4437_v52, %v2174_v33  ;;  %v2243_v43 = vadd.f32 %v2211_v51, %v2095_v26  ;;  %v1568_v41 = vmul.f32 %v4520_v36, %v4070_v9  ;;  %v1388_v48 = vadd.f32 %v1356_v1, %v1239_v49 }
 0x18d   : > { %v1636_v22 = vmul.f32 %v4496_v57, %v4072_v10  ;;  %v1637_v31 = vmul.f32 %v4072_v10, %v4547_v50  ;;  %v1389_v60 = vadd.f32 %v1357_v21, %v1240_v30  ;;  %v1530_v62 = vsel %vm1130_vm2, %v1926_v32, %v1514_v6 }
 0x18e   : > { %v2244_v3 = vadd.f32 %v2212_v37, %v2096_v2  ;;  %v4567_v54 = vadd.f32 %v4469_v42, %v2243_v43  ;;  %v1714_v25 = vrot.slane %v4547_v50, 1  ;;  %v1569_v23 = vmul.f32 %v4070_v9, %v1530_v62 }
 0x18f   : > { %v1600_v59 = vadd.f32 %v1568_v41, %v1388_v48  ;;  %v1927_v38 = vrot.slane %v4558_v61, 7  ;;  %v5877_v58 = vmov %v5876_v11  ;;  %v1943_v4 = vrot.slane %v4564_v8, 7 }
 0x190   : > { %v4573_v16 = vadd.f32 %v4469_v42, %v2244_v3  ;;  %v2315_v63 = vmul.f32 %v4567_v54, %v4567_v54  ;;  %v1746_v45 = vsel %vm1315_vm3, %v1714_v25, %v5877_v58  ;;  %v1762_v32 = vsel %vm1315_vm3, %v2126_v44, %v1714_v25 }
 0x191   : > { %v1601_v53 = vadd.f32 %v1569_v23, %v1389_v60  ;;  %v1668_v12 = vadd.f32 %v1636_v22, %v1600_v59  ;;  %v1784_v20 = vmul.f32 %v4079_v13, %v1762_v32  ;;  %v3624_v56 = vpop.eup %3623  ;;  %v1785_v29 = vmul.f32 %v4079_v13, %v1746_v45 }
 0x192   : > { %v2316_v55 = vmul.f32 %v4573_v16, %v4573_v16  ;;  %v2347_v34 = vmul.f32 %v2315_v63, %v4567_v54  ;;  %v4593_v27 = vsel %vm1130_vm2, %v1927_v38, %v1943_v4  ;;  %v5878_v44 = vrot.slane %v4135_v0, 7  ;;  %v3626_v17 = vpop.eup %3625 }
 0x193   : > { %v2505_v15 = vadd.f32 1.0, %v3624_v56  ;;  %v1669_v33 = vadd.f32 %v1637_v31, %v1601_v53  ;;  %v1816_v18 = vadd.f32 %v1784_v20, %v1668_v12  ;;  %v2506_v26 = vadd.f32 1.0, %v3626_v17 }
 0x194   : > { %v4599_v7 = vsel %vm1130_vm2, %v5878_v44, %v1927_v38  ;;  %v2348_v11 = vmul.f32 %v2316_v55, %v4573_v16  ;;  %v2379_v51 = vmul.f32 0.044715, %v2347_v34  ;;  %v1998_v46 = vmul.f32 %v4081_v14, %v4593_v27 }
 0x195   : > { %v1997_v37 = vmul.f32 %v4081_v14, %v4599_v7  ;;  %v2537_v2 = vmul.f32 0.5, %v2505_v15  ;;  %v1817_v49 = vadd.f32 %v1785_v29, %v1669_v33  ;;  %v2065_v1 = vmul.f32 %v4090_v19, %v4558_v61  ;;  %v4643_v15 = vld [vmem:[#allocation3 + $0xa8] sm:$0xff] }
 0x196   : > { %v2380_v0 = vmul.f32 0.044715, %v2348_v11  ;;  %v2538_v21 = vmul.f32 0.5, %v2506_v26  ;;  %v2411_v43 = vadd.f32 %v2379_v51, %v4567_v54  ;;  %v2066_v6 = vmul.f32 %v4090_v19, %v4564_v8 }
 0x197   : > { %v2029_v30 = vadd.f32 %v1997_v37, %v1816_v18  ;;  %v2569_v41 = vmul.f32 %v2537_v2, %v4479_v35  ;;  %v2030_v48 = vadd.f32 %v1998_v46, %v1817_v49  ;;  %v2127_v22 = vrot.slane %v4558_v61, 1 }
 0x198   : > { %v2412_v3 = vadd.f32 %v2380_v0, %v4573_v16  ;;  %v2570_v31 = vmul.f32 %v2538_v21, %v4482_v24  ;;  %v2443_v60 = vmul.f32 0.7978846, %v2411_v43  ;;  %v2143_v23 = vrot.slane %v4564_v8, 1 }
 0x199   : > { %v2097_v25 = vadd.f32 %v2065_v1, %v2029_v30  ;;  %v2098_v38 = vadd.f32 %v2066_v6, %v2030_v48  ;;  %v1173_v63 = vmul.f32 %v4520_v36, %v4024_v39  ;;  %v1174_v58 = vmul.f32 %v1530_v62, %v4024_v39 }
 0x19a   : > { %v2444_v59 = vmul.f32 0.7978846, %v2412_v3  ;;  %v2601_v4 = vpack.c.bf16 %v2570_v31, %v2569_v41  ;;  %3627 = vtanh.f32 %v2443_v60  ;;  %v5879_v35 = vrot.slane %v4140_v5, 1  ;;  %v5880_v41 = vld [vmem:[#allocation4_spill] sm:$0xff] }
 0x19b   : > { %v4627_v24 = vsel %vm1315_vm3, %v2127_v22, %v2143_v23  ;;  %v1209_v62 = vmul.f32 %v4496_v57, %v4026_v40  ;;  %v1210_v5 = vmul.f32 %v4547_v50, %v4026_v40  ;;  %v1358_v12 = vmul.f32 %v1762_v32, %v4038_v47  ;;  %v4645_v57 = vld [vmem:[#allocation3 + $0xb0] sm:$0xff] }
 0x19c   : > { %v4623_v55 = vsel %vm1315_vm3, %v2143_v23, %v5879_v35  ;;  %3629 = vtanh.f32 %v2444_v59  ;;  %v2213_v53 = vmul.f32 %v4437_v52, %v4627_v24  ;;  %3460 = vmatprep.mubr.bf16.mxu0 %v2601_v4  ;;  %v1359_v20 = vmul.f32 %v1746_v45, %v4038_v47 }
 0x19d   : > { %v2214_v36 = vmul.f32 %v4437_v52, %v4623_v55  ;;  %v1570_v56 = vmul.f32 %v4599_v7, %v4070_v9  ;;  %v1241_v44 = vadd.f32 %v1209_v62, %v1173_v63  ;;  %v1571_v17 = vmul.f32 %v4593_v27, %v4070_v9 }
 0x19e   : > { %v2245_v34 = vadd.f32 %v2213_v53, %v2097_v25  ;;  %v1242_v11 = vadd.f32 %v1210_v5, %v1174_v58  ;;  %v1638_v50 = vmul.f32 %v4558_v61, %v4072_v10  ;;  %v1639_v45 = vmul.f32 %v4564_v8, %v4072_v10 }
 0x19f   : > { %v2246_v29 = vadd.f32 %v2214_v36, %v2098_v38  ;;  %v1786_v32 = vmul.f32 %v4627_v24, %v4079_v13  ;;  %v1390_v26 = vadd.f32 %v1358_v12, %v1241_v44  ;;  %v1787_v51 = vmul.f32 %v4623_v55, %v4079_v13 }
 0x1a0   : > { %v4654_v33 = vadd.f32 %v4469_v42, %v2245_v34  ;;  %v1391_v37 = vadd.f32 %v1359_v20, %v1242_v11  ;;  %v1928_v46 = vrot.slane %v4643_v15, 7  ;;  %v1944_v2 = vrot.slane %v4645_v57, 7 }
 0x1a1   : > { %v4657_v18 = vadd.f32 %v4469_v42, %v2246_v29  ;;  %v2067_v0 = vmul.f32 %v4090_v19, %v4643_v15  ;;  %v1602_v21 = vadd.f32 %v1570_v56, %v1390_v26  ;;  %v2068_v43 = vmul.f32 %v4090_v19, %v4645_v57  ;;  %v5882_v56 = vld [vmem:[#allocation5_spill] sm:$0xff] }
 0x1a2   : > { %v2317_v49 = vmul.f32 %v4654_v33, %v4654_v33  ;;  %v1603_v30 = vadd.f32 %v1571_v17, %v1391_v37  ;;  %v4673_v6 = vsel %vm1130_vm2, %v1928_v46, %v1944_v2  ;;  %v5881_v3 = vrot.slane %v5880_v41, 7 }
 0x1a3   : > { %v2318_v1 = vmul.f32 %v4657_v18, %v4657_v18  ;;  %v2128_v22 = vrot.slane %v4643_v15, 1  ;;  %v1670_v25 = vadd.f32 %v1638_v50, %v1602_v21  ;;  %v2000_v63 = vmul.f32 %v4081_v14, %v4673_v6 }
 0x1a4   : > { %v4679_v48 = vsel %vm1130_vm2, %v5881_v3, %v1928_v46  ;;  %v2349_v31 = vmul.f32 %v2317_v49, %v4654_v33  ;;  %v3628_v59 = vpop.eup %3627  ;;  %v1671_v38 = vadd.f32 %v1639_v45, %v1603_v30  ;;  %v2144_v58 = vrot.slane %v4645_v57, 1 }
 0x1a5   : > { %v2350_v60 = vmul.f32 %v2318_v1, %v4657_v18  ;;  %v1999_v23 = vmul.f32 %v4081_v14, %v4679_v48  ;;  %v1175_v4 = vmul.f32 %v4599_v7, %v4024_v39  ;;  %v2507_v53 = vadd.f32 1.0, %v3628_v59 }
 0x1a6   : > { %v3630_v35 = vpop.eup %3629  ;;  %v2381_v36 = vmul.f32 0.044715, %v2349_v31  ;;  %v1818_v5 = vadd.f32 %v1786_v32, %v1670_v25  ;;  %v1819_v20 = vadd.f32 %v1787_v51, %v1671_v38  ;;  %v5883_v34 = vrot.slane %v5882_v56, 1  ;;  %v1861_v25 = vld [vmem:[#allocation3 + $0xc0] sm:$0xff]  ;;  %v4731_v38 = vld [vmem:[#allocation3 + $0xc8] sm:$0xff] }
 0x1a7   : > { %v2382_v62 = vmul.f32 0.044715, %v2350_v60  ;;  %v2508_v12 = vadd.f32 1.0, %v3630_v35  ;;  %v4699_v44 = vsel %vm1315_vm3, %v2128_v22, %v2144_v58  ;;  %v2539_v17 = vmul.f32 0.5, %v2507_v53 }
 0x1a8   : > { %v4695_v29 = vsel %vm1315_vm3, %v2144_v58, %v5883_v34  ;;  %v2413_v7 = vadd.f32 %v2381_v36, %v4654_v33  ;;  %v2031_v50 = vadd.f32 %v1999_v23, %v1818_v5  ;;  %v2032_v32 = vadd.f32 %v2000_v63, %v1819_v20  ;;  %v4733_v63 = vld [vmem:[#allocation3 + $0xd0] sm:$0xff] }
 0x1a9   : > { %v2414_v11 = vadd.f32 %v2382_v62, %v4657_v18  ;;  %v2540_v45 = vmul.f32 0.5, %v2508_v12  ;;  %v2215_v26 = vmul.f32 %v4437_v52, %v4699_v44  ;;  %v2216_v51 = vmul.f32 %v4437_v52, %v4695_v29 }
 0x1aa   : > { %v2571_v37 = vmul.f32 %v2539_v17, %v4567_v54  ;;  %v2445_v46 = vmul.f32 0.7978846, %v2413_v7  ;;  %v2099_v49 = vadd.f32 %v2067_v0, %v2031_v50  ;;  %v2100_v21 = vadd.f32 %v2068_v43, %v2032_v32 }
 0x1ab   : > { %v2446_v2 = vmul.f32 0.7978846, %v2414_v11  ;;  %v2572_v1 = vmul.f32 %v2540_v45, %v4573_v16  ;;  %v1176_v30 = vmul.f32 %v4593_v27, %v4024_v39  ;;  %v1211_v41 = vmul.f32 %v4558_v61, %v4026_v40 }
 0x1ac   : > { %3631 = vtanh.f32 %v2445_v46  ;;  %v2247_v3 = vadd.f32 %v2215_v26, %v2099_v49  ;;  %v1212_v22 = vmul.f32 %v4564_v8, %v4026_v40  ;;  %v1360_v54 = vmul.f32 %v4627_v24, %v4038_v47  ;;  %v1864_v26 = vld [vmem:[#allocation3 + $0xd8] sm:$0xff] }
 0x1ad   : > { %v2602_v31 = vpack.c.bf16 %v2572_v1, %v2571_v37  ;;  %3633 = vtanh.f32 %v2446_v2  ;;  %v2248_v0 = vadd.f32 %v2216_v51, %v2100_v21  ;;  %v1243_v60 = vadd.f32 %v1211_v41, %v1175_v4 }
 0x1ae   : > { %v4718_v16 = vadd.f32 %v4469_v42, %v2247_v3  ;;  %v1244_v43 = vadd.f32 %v1212_v22, %v1176_v30  ;;  %v1361_v27 = vmul.f32 %v4623_v55, %v4038_v47  ;;  %v1572_v61 = vmul.f32 %v4679_v48, %v4070_v9 }
 0x1af   : > { %3461 = vmatmul.mubr.bf16.vlgmr.msra.gmra.mrb[32].mxu0 %v2602_v31  ;;  %v4725_v8 = vadd.f32 %v4469_v42, %v2248_v0  ;;  %v1392_v24 = vadd.f32 %v1360_v54, %v1243_v60  ;;  %v1573_v23 = vmul.f32 %v4673_v6, %v4070_v9  ;;  %v1640_v59 = vmul.f32 %v4643_v15, %v4072_v10 }
 0x1b0   : > { %v2319_v55 = vmul.f32 %v4718_v16, %v4718_v16  ;;  %v1393_v58 = vadd.f32 %v1361_v27, %v1244_v43  ;;  %v1641_v4 = vmul.f32 %v4645_v57, %v4072_v10  ;;  %v1788_v35 = vmul.f32 %v4699_v44, %v4079_v13 }
 0x1b1   : > { %v2320_v53 = vmul.f32 %v4725_v8, %v4725_v8  ;;  %v1604_v36 = vadd.f32 %v1572_v61, %v1392_v24  ;;  %v1789_v62 = vmul.f32 %v4695_v29, %v4079_v13  ;;  %v1913_v5 = vrot.slane %v1861_v25, 7 }
 0x1b2   : > { %v2351_v12 = vmul.f32 %v2319_v55, %v4718_v16  ;;  %v1605_v20 = vadd.f32 %v1573_v23, %v1393_v58  ;;  %v1929_v56 = vrot.slane %v4731_v38, 7  ;;  %v1945_v34 = vrot.slane %v4733_v63, 7 }
 0x1b3   : > { %v2352_v17 = vmul.f32 %v2320_v53, %v4725_v8  ;;  %v1672_v7 = vadd.f32 %v1640_v59, %v1604_v36  ;;  %v2069_v11 = vmul.f32 %v4090_v19, %v4731_v38  ;;  %v2070_v50 = vmul.f32 %v4090_v19, %v4733_v63 }
 0x1b4   : > { %v2383_v45 = vmul.f32 0.044715, %v2351_v12  ;;  %v1673_v32 = vadd.f32 %v1641_v4, %v1605_v20  ;;  %v4755_v51 = vsel %vm1130_vm2, %v1929_v56, %v1945_v34  ;;  %v4759_v37 = vsel %vm1130_vm2, %v1913_v5, %v1929_v56 }
 0x1b5   : > { %v2384_v46 = vmul.f32 0.044715, %v2352_v17  ;;  %v1820_v2 = vadd.f32 %v1788_v35, %v1672_v7  ;;  %v2001_v49 = vmul.f32 %v4081_v14, %v4759_v37  ;;  %v2002_v1 = vmul.f32 %v4081_v14, %v4755_v51 }
 0x1b6   : > { %v3632_v21 = vpop.eup %3631  ;;  %v2415_v30 = vadd.f32 %v2383_v45, %v4718_v16  ;;  %v1821_v41 = vadd.f32 %v1789_v62, %v1673_v32  ;;  %v2129_v3 = vrot.slane %v4731_v38, 1  ;;  %v2145_v22 = vrot.slane %v4733_v63, 1  ;;  %v1865_v45 = vld [vmem:[#allocation3 + $0xe0] sm:$0xff] }
 0x1b7   : > { %v3634_v54 = vpop.eup %3633  ;;  %v2509_v31 = vadd.f32 1.0, %v3632_v21  ;;  %v2416_v0 = vadd.f32 %v2384_v46, %v4725_v8  ;;  %v2033_v60 = vadd.f32 %v2001_v49, %v1820_v2  ;;  %v2161_v43 = vrot.slane %v1864_v26, 1  ;;  %v4809_v26 = vld [vmem:[#allocation3 + $0xf0] sm:$0xff] }
 0x1b8   : > { %v2510_v27 = vadd.f32 1.0, %v3634_v54  ;;  %v2447_v61 = vmul.f32 0.7978846, %v2415_v30  ;;  %v2034_v25 = vadd.f32 %v2002_v1, %v1821_v41  ;;  %v4771_v24 = vsel %vm1315_vm3, %v2129_v3, %v2145_v22 }
 0x1b9   : > { %v2541_v23 = vmul.f32 0.5, %v2509_v31  ;;  %v2448_v59 = vmul.f32 0.7978846, %v2416_v0  ;;  %v2101_v55 = vadd.f32 %v2069_v11, %v2033_v60  ;;  %v4775_v58 = vsel %vm1315_vm3, %v2145_v22, %v2161_v43 }
 0x1ba   : > { %v2542_v4 = vmul.f32 0.5, %v2510_v27  ;;  %3635 = vtanh.f32 %v2447_v61  ;;  %v2102_v35 = vadd.f32 %v2070_v50, %v2034_v25  ;;  %v2217_v53 = vmul.f32 %v4437_v52, %v4771_v24 }
 0x1bb   : > { %v2573_v36 = vmul.f32 %v2541_v23, %v4654_v33  ;;  %3637 = vtanh.f32 %v2448_v59  ;;  %v2218_v62 = vmul.f32 %v4437_v52, %v4775_v58  ;;  %v1177_v5 = vmul.f32 %v4679_v48, %v4024_v39 }
 0x1bc   : > { %v2574_v12 = vmul.f32 %v2542_v4, %v4657_v18  ;;  %v2249_v20 = vadd.f32 %v2217_v53, %v2101_v55  ;;  %v1178_v56 = vmul.f32 %v4673_v6, %v4024_v39  ;;  %v1213_v34 = vmul.f32 %v4643_v15, %v4026_v40 }
 0x1bd   : > { %v2250_v17 = vadd.f32 %v2218_v62, %v2102_v35  ;;  %v1214_v33 = vmul.f32 %v4645_v57, %v4026_v40  ;;  %v1362_v7 = vmul.f32 %v4699_v44, %v4038_v47  ;;  %v1363_v11 = vmul.f32 %v4695_v29, %v4038_v47  ;;  %v4807_v29 = vld [vmem:[#allocation3 + $0xe8] sm:$0xff] }
 0x1be   : > { %v2603_v48 = vpack.c.bf16 %v2574_v12, %v2573_v36  ;;  %v4796_v18 = vadd.f32 %v4469_v42, %v2249_v20  ;;  %v1245_v50 = vadd.f32 %v1213_v34, %v1177_v5  ;;  %v1574_v6 = vmul.f32 %v4759_v37, %v4070_v9  ;;  %v1868_v34 = vld [vmem:[#allocation3 + $0xf8] sm:$0xff] }
 0x1bf   : > { %v4801_v15 = vadd.f32 %v4469_v42, %v2250_v17  ;;  %v1246_v32 = vadd.f32 %v1214_v33, %v1178_v56  ;;  %v1575_v57 = vmul.f32 %v4755_v51, %v4070_v9  ;;  %v1642_v44 = vmul.f32 %v4731_v38, %v4072_v10 }
 0x1c0   : > { %3464 = vmatprep.mubr.bf16.mxu1 %v2603_v48  ;;  %v2321_v46 = vmul.f32 %v4796_v18, %v4796_v18  ;;  %v1394_v2 = vadd.f32 %v1362_v7, %v1245_v50  ;;  %v1643_v49 = vmul.f32 %v4733_v63, %v4072_v10  ;;  %v1790_v1 = vmul.f32 %v4771_v24, %v4079_v13 }
 0x1c1   : > { %v2322_v21 = vmul.f32 %v4801_v15, %v4801_v15  ;;  %v1395_v30 = vadd.f32 %v1363_v11, %v1246_v32  ;;  %v1791_v41 = vmul.f32 %v4775_v58, %v4079_v13  ;;  %v1914_v3 = vrot.slane %v1865_v45, 7 }
 0x1c2   : > { %v2353_v22 = vmul.f32 %v2321_v46, %v4796_v18  ;;  %v1606_v54 = vadd.f32 %v1574_v6, %v1394_v2  ;;  %v1930_v31 = vrot.slane %v4807_v29, 7  ;;  %v1946_v0 = vrot.slane %v4809_v26, 7 }
 0x1c3   : > { %v2354_v60 = vmul.f32 %v2322_v21, %v4801_v15  ;;  %v1607_v43 = vadd.f32 %v1575_v57, %v1395_v30  ;;  %v2071_v27 = vmul.f32 %v4090_v19, %v4807_v29  ;;  %v2072_v61 = vmul.f32 %v4090_v19, %v4809_v26 }
 0x1c4   : > { %v3636_v25 = vpop.eup %3635  ;;  %v2385_v23 = vmul.f32 0.044715, %v2353_v22  ;;  %v1674_v59 = vadd.f32 %v1642_v44, %v1606_v54  ;;  %v4831_v55 = vsel %vm1130_vm2, %v1930_v31, %v1946_v0  ;;  %v4835_v4 = vsel %vm1130_vm2, %v1914_v3, %v1930_v31 }
 0x1c5   : > { %v3638_v35 = vpop.eup %3637  ;;  %v2511_v53 = vadd.f32 1.0, %v3636_v25  ;;  %v2386_v36 = vmul.f32 0.044715, %v2354_v60  ;;  %v1675_v62 = vadd.f32 %v1643_v49, %v1607_v43  ;;  %v2003_v5 = vmul.f32 %v4081_v14, %v4835_v4  ;;  %v1869_v25 = vld [vmem:[#allocation3 + $0x100] sm:$0xff] }
 0x1c6   : > { %v2512_v12 = vadd.f32 1.0, %v3638_v35  ;;  %v2417_v20 = vadd.f32 %v2385_v23, %v4796_v18  ;;  %v1822_v56 = vadd.f32 %v1790_v1, %v1674_v59  ;;  %v2004_v17 = vmul.f32 %v4081_v14, %v4831_v55  ;;  %v4880_v59 = vld [vmem:[#allocation3 + $0x108] sm:$0xff]  ;;  %v4882_v35 = vld [vmem:[#allocation3 + $0x110] sm:$0xff] }
 0x1c7   : > { %v2543_v33 = vmul.f32 0.5, %v2511_v53  ;;  %v2418_v7 = vadd.f32 %v2386_v36, %v4801_v15  ;;  %v1823_v11 = vadd.f32 %v1791_v41, %v1675_v62  ;;  %v2130_v48 = vrot.slane %v4807_v29, 1 }
 0x1c8   : > { %v2544_v50 = vmul.f32 0.5, %v2512_v12  ;;  %v2449_v6 = vmul.f32 0.7978846, %v2417_v20  ;;  %v2035_v45 = vadd.f32 %v2003_v5, %v1822_v56  ;;  %v2146_v32 = vrot.slane %v4809_v26, 1 }
 0x1c9   : > { %v2575_v57 = vmul.f32 %v2543_v33, %v4718_v16  ;;  %v2450_v44 = vmul.f32 0.7978846, %v2418_v7  ;;  %v2036_v46 = vadd.f32 %v2004_v17, %v1823_v11  ;;  %v2162_v2 = vrot.slane %v1868_v34, 1 }
 0x1ca   : > { %v2576_v49 = vmul.f32 %v2544_v50, %v4725_v8  ;;  %3639 = vtanh.f32 %v2449_v6  ;;  %v2103_v1 = vadd.f32 %v2071_v27, %v2035_v45  ;;  %v4849_v21 = vsel %vm1315_vm3, %v2130_v48, %v2146_v32 }
 0x1cb   : > { %3641 = vtanh.f32 %v2450_v44  ;;  %v2104_v30 = vadd.f32 %v2072_v61, %v2036_v46  ;;  %v4853_v41 = vsel %vm1315_vm3, %v2146_v32, %v2162_v2  ;;  %v2219_v16 = vmul.f32 %v4437_v52, %v4849_v21 }
 0x1cc   : > { %v2604_v3 = vpack.c.bf16 %v2576_v49, %v2575_v57  ;;  %v2220_v22 = vmul.f32 %v4437_v52, %v4853_v41  ;;  %v1179_v8 = vmul.f32 %v4759_v37, %v4024_v39  ;;  %v1180_v54 = vmul.f32 %v4755_v51, %v4024_v39 }
 0x1cd   : > { %v2251_v31 = vadd.f32 %v2219_v16, %v2103_v1  ;;  %v1215_v0 = vmul.f32 %v4731_v38, %v4026_v40  ;;  %v1216_v60 = vmul.f32 %v4733_v63, %v4026_v40  ;;  %v1364_v43 = vmul.f32 %v4771_v24, %v4038_v47 }
 0x1ce   : > { %3465 = vmatmul.mubr.bf16.vlgmr.msra.gmra.mrb[0].mxu1 %v2604_v3  ;;  %v2252_v27 = vadd.f32 %v2220_v22, %v2104_v30  ;;  %v1365_v61 = vmul.f32 %v4775_v58, %v4038_v47  ;;  %v1576_v37 = vmul.f32 %v4835_v4, %v4070_v9  ;;  %v1577_v51 = vmul.f32 %v4831_v55, %v4070_v9  ;;  %v1872_v3 = vld [vmem:[#allocation3 + $0x118] sm:$0xff] }
 0x1cf   : > { %v4876_v38 = vadd.f32 %v4469_v42, %v2251_v31  ;;  %v1247_v23 = vadd.f32 %v1215_v0, %v1179_v8  ;;  %v1248_v63 = vadd.f32 %v1216_v60, %v1180_v54  ;;  %v1644_v24 = vmul.f32 %v4807_v29, %v4072_v10 }
 0x1d0   : > { %v4885_v58 = vadd.f32 %v4469_v42, %v2252_v27  ;;  %v1645_v53 = vmul.f32 %v4809_v26, %v4072_v10  ;;  %v1792_v36 = vmul.f32 %v4849_v21, %v4079_v13  ;;  %v1793_v62 = vmul.f32 %v4853_v41, %v4079_v13 }
 0x1d1   : > { %v2323_v5 = vmul.f32 %v4876_v38, %v4876_v38  ;;  %v1396_v12 = vadd.f32 %v1364_v43, %v1247_v23  ;;  %v1397_v20 = vadd.f32 %v1365_v61, %v1248_v63  ;;  %v1915_v56 = vrot.slane %v1869_v25, 7 }
 0x1d2   : > { %v2324_v34 = vmul.f32 %v4885_v58, %v4885_v58  ;;  %v1931_v17 = vrot.slane %v4880_v59, 7  ;;  %v1947_v33 = vrot.slane %v4882_v35, 7  ;;  %v2073_v7 = vmul.f32 %v4090_v19, %v4880_v59 }
 0x1d3   : > { %v2355_v11 = vmul.f32 %v2323_v5, %v4876_v38  ;;  %v1608_v48 = vadd.f32 %v1576_v37, %v1396_v12  ;;  %v1609_v50 = vadd.f32 %v1577_v51, %v1397_v20  ;;  %v2074_v6 = vmul.f32 %v4090_v19, %v4882_v35 }
 0x1d4   : > { %v3640_v45 = vpop.eup %3639  ;;  %v2356_v32 = vmul.f32 %v2324_v34, %v4885_v58  ;;  %v4907_v57 = vsel %vm1130_vm2, %v1931_v17, %v1947_v33  ;;  %v4911_v44 = vsel %vm1130_vm2, %v1915_v56, %v1931_v17  ;;  %v2131_v46 = vrot.slane %v4880_v59, 1 }
 0x1d5   : > { %v3642_v2 = vpop.eup %3641  ;;  %v2513_v49 = vadd.f32 1.0, %v3640_v45  ;;  %v2387_v1 = vmul.f32 0.044715, %v2355_v11  ;;  %v1676_v30 = vadd.f32 %v1644_v24, %v1608_v48  ;;  %v1677_v16 = vadd.f32 %v1645_v53, %v1609_v50 }
 0x1d6   : > { %v2514_v22 = vadd.f32 1.0, %v3642_v2  ;;  %v2388_v8 = vmul.f32 0.044715, %v2356_v32  ;;  %v2005_v54 = vmul.f32 %v4081_v14, %v4911_v44  ;;  %v2006_v31 = vmul.f32 %v4081_v14, %v4907_v57  ;;  %v4956_v2 = vld [vmem:[#allocation3 + $0x130] sm:$0xff] }
 0x1d7   : > { %v2545_v0 = vmul.f32 0.5, %v2513_v49  ;;  %v2419_v60 = vadd.f32 %v2387_v1, %v4876_v38  ;;  %v1824_v43 = vadd.f32 %v1792_v36, %v1676_v30  ;;  %v1825_v27 = vadd.f32 %v1793_v62, %v1677_v16 }
 0x1d8   : > { %v2546_v61 = vmul.f32 0.5, %v2514_v22  ;;  %v2420_v37 = vadd.f32 %v2388_v8, %v4885_v58  ;;  %v2147_v51 = vrot.slane %v4882_v35, 1  ;;  %v2163_v25 = vrot.slane %v1872_v3, 1 }
 0x1d9   : > { %v2577_v23 = vmul.f32 %v2545_v0, %v4796_v18  ;;  %v2451_v63 = vmul.f32 0.7978846, %v2419_v60  ;;  %v2037_v24 = vadd.f32 %v2005_v54, %v1824_v43  ;;  %v2038_v53 = vadd.f32 %v2006_v31, %v1825_v27 }
 0x1da   : > { %v2578_v5 = vmul.f32 %v2546_v61, %v4801_v15  ;;  %v2452_v12 = vmul.f32 0.7978846, %v2420_v37  ;;  %v4925_v20 = vsel %vm1315_vm3, %v2147_v51, %v2163_v25  ;;  %v4929_v36 = vsel %vm1315_vm3, %v2131_v46, %v2147_v51  ;;  %v4954_v46 = vld [vmem:[#allocation3 + $0x128] sm:$0xff] }
 0x1db   : > { %3643 = vtanh.f32 %v2451_v63  ;;  %v2105_v62 = vadd.f32 %v2073_v7, %v2037_v24  ;;  %v2106_v56 = vadd.f32 %v2074_v6, %v2038_v53  ;;  %v2221_v18 = vmul.f32 %v4437_v52, %v4929_v36 }
 0x1dc   : > { %v2605_v34 = vpack.c.bf16 %v2578_v5, %v2577_v23  ;;  %3645 = vtanh.f32 %v2452_v12  ;;  %v2222_v15 = vmul.f32 %v4437_v52, %v4925_v20  ;;  %v1181_v17 = vmul.f32 %v4835_v4, %v4024_v39  ;;  %v1876_v5 = vld [vmem:[#allocation3 + $0x138] sm:$0xff] }
 0x1dd   : > { %v2253_v33 = vadd.f32 %v2221_v18, %v2105_v62  ;;  %v1182_v11 = vmul.f32 %v4831_v55, %v4024_v39  ;;  %v1217_v48 = vmul.f32 %v4807_v29, %v4026_v40  ;;  %v1218_v7 = vmul.f32 %v4809_v26, %v4026_v40  ;;  %v1873_v26 = vld [vmem:[#allocation3 + $0x120] sm:$0xff] }
 0x1de   : > { %3468 = vmatprep.mubr.bf16.mxu1 %v2605_v34  ;;  %v2254_v50 = vadd.f32 %v2222_v15, %v2106_v56  ;;  %v1366_v6 = vmul.f32 %v4849_v21, %v4038_v47  ;;  %v1367_v52 = vmul.f32 %v4853_v41, %v4038_v47  ;;  %v1578_v4 = vmul.f32 %v4911_v44, %v4070_v9 }
 0x1df   : > { %v4950_v45 = vadd.f32 %v4469_v42, %v2253_v33  ;;  %v1249_v55 = vadd.f32 %v1217_v48, %v1181_v17  ;;  %v1250_v32 = vadd.f32 %v1218_v7, %v1182_v11  ;;  %v1579_v29 = vmul.f32 %v4907_v57, %v4070_v9 }
 0x1e0   : > { %v4959_v21 = vadd.f32 %v4469_v42, %v2254_v50  ;;  %v1646_v41 = vmul.f32 %v4880_v59, %v4072_v10  ;;  %v1647_v49 = vmul.f32 %v4882_v35, %v4072_v10  ;;  %v1794_v1 = vmul.f32 %v4929_v36, %v4079_v13 }
 0x1e1   : > { %v2325_v30 = vmul.f32 %v4950_v45, %v4950_v45  ;;  %v1398_v16 = vadd.f32 %v1366_v6, %v1249_v55  ;;  %v1399_v3 = vadd.f32 %v1367_v52, %v1250_v32  ;;  %v1795_v22 = vmul.f32 %v4925_v20, %v4079_v13 }
 0x1e2   : > { %v2326_v42 = vmul.f32 %v4959_v21, %v4959_v21  ;;  %v1916_v8 = vrot.slane %v1873_v26, 7  ;;  %v1932_v54 = vrot.slane %v4954_v46, 7  ;;  %v1948_v31 = vrot.slane %v4956_v2, 7 }
 0x1e3   : > { %v2357_v0 = vmul.f32 %v2325_v30, %v4950_v45  ;;  %v1610_v60 = vadd.f32 %v1578_v4, %v1398_v16  ;;  %v1611_v43 = vadd.f32 %v1579_v29, %v1399_v3  ;;  %v2075_v27 = vmul.f32 %v4090_v19, %v4954_v46 }
 0x1e4   : > { %v2358_v61 = vmul.f32 %v2326_v42, %v4959_v21  ;;  %v4981_v37 = vsel %vm1130_vm2, %v1932_v54, %v1948_v31  ;;  %v4985_v51 = vsel %vm1130_vm2, %v1916_v8, %v1932_v54  ;;  %v2076_v25 = vmul.f32 %v4090_v19, %v4956_v2 }
 0x1e5   : > { %v3644_v23 = vpop.eup %3643  ;;  %v2389_v63 = vmul.f32 0.044715, %v2357_v0  ;;  %v1678_v24 = vadd.f32 %v1646_v41, %v1610_v60  ;;  %v1679_v53 = vadd.f32 %v1647_v49, %v1611_v43  ;;  %v2007_v12 = vmul.f32 %v4081_v14, %v4985_v51 }
 0x1e6   : > { %v3646_v62 = vpop.eup %3645  ;;  %v2515_v56 = vadd.f32 1.0, %v3644_v23  ;;  %v2390_v18 = vmul.f32 0.044715, %v2358_v61  ;;  %v2008_v34 = vmul.f32 %v4081_v14, %v4981_v37  ;;  %v2132_v15 = vrot.slane %v4954_v46, 1  ;;  %v1877_v23 = vld [vmem:[#allocation3 + $0x140] sm:$0xff] }
 0x1e7   : > { %v2516_v17 = vadd.f32 1.0, %v3646_v62  ;;  %v2421_v33 = vadd.f32 %v2389_v63, %v4950_v45  ;;  %v1826_v11 = vadd.f32 %v1794_v1, %v1678_v24  ;;  %v1827_v48 = vadd.f32 %v1795_v22, %v1679_v53  ;;  %v5008_v22 = vld [vmem:[%s4018_s8 + $0x8] ss:$0 sm:$0xff] }
 0x1e8   : > { %v2547_v7 = vmul.f32 0.5, %v2515_v56  ;;  %v2422_v50 = vadd.f32 %v2390_v18, %v4959_v21  ;;  %v2148_v6 = vrot.slane %v4956_v2, 1  ;;  %v2164_v52 = vrot.slane %v1876_v5, 1  ;;  %v5030_v63 = vld [vmem:[#allocation3 + $0x148] sm:$0xff]  ;;  %v5045_v5 = vld [vmem:[#allocation3 + $0x150] sm:$0xff] }
 0x1e9   : > { %v2548_v4 = vmul.f32 0.5, %v2516_v17  ;;  %v2453_v55 = vmul.f32 0.7978846, %v2421_v33  ;;  %v2039_v32 = vadd.f32 %v2007_v12, %v1826_v11  ;;  %v2040_v29 = vadd.f32 %v2008_v34, %v1827_v48 }
 0x1ea   : > { %v2579_v26 = vmul.f32 %v2547_v7, %v4876_v38  ;;  %v2454_v41 = vmul.f32 0.7978846, %v2422_v50  ;;  %v5000_v49 = vsel %vm1315_vm3, %v2148_v6, %v2164_v52  ;;  %v5004_v1 = vsel %vm1315_vm3, %v2132_v15, %v2148_v6 }
 0x1eb   : > { %v2580_v30 = vmul.f32 %v2548_v4, %v4885_v58  ;;  %3647 = vtanh.f32 %v2453_v55  ;;  %v2107_v16 = vadd.f32 %v2075_v27, %v2039_v32  ;;  %v2108_v3 = vadd.f32 %v2076_v25, %v2040_v29 }
 0x1ec   : > { %3649 = vtanh.f32 %v2454_v41  ;;  %v2223_v38 = vmul.f32 %v5008_v22, %v5004_v1  ;;  %v2224_v42 = vmul.f32 %v5008_v22, %v5000_v49  ;;  %v1183_v8 = vmul.f32 %v4911_v44, %v4024_v39 }
 0x1ed   : > { %v2606_v54 = vpack.c.bf16 %v2580_v30, %v2579_v26  ;;  %v1184_v58 = vmul.f32 %v4907_v57, %v4024_v39  ;;  %v1219_v31 = vmul.f32 %v4880_v59, %v4026_v40  ;;  %v1220_v0 = vmul.f32 %v4882_v35, %v4026_v40  ;;  %v5033_v35 = vld [vmem:[%s4446_s15] ss:$0 sm:$0xff] }
 0x1ee   : > { %v2255_v60 = vadd.f32 %v2223_v38, %v2107_v16  ;;  %v2256_v43 = vadd.f32 %v2224_v42, %v2108_v3  ;;  %v1368_v27 = vmul.f32 %v4929_v36, %v4038_v47  ;;  %v1369_v61 = vmul.f32 %v4925_v20, %v4038_v47 }
 0x1ef   : > { %3469 = vmatmul.mubr.bf16.gmra.mrb[4].mxu1 %v2606_v54  ;;  %v1251_v44 = vadd.f32 %v1219_v31, %v1183_v8  ;;  %v1252_v25 = vadd.f32 %v1220_v0, %v1184_v58  ;;  %v1580_v57 = vmul.f32 %v4985_v51, %v4070_v9  ;;  %v1581_v59 = vmul.f32 %v4981_v37, %v4070_v9  ;;  %v1880_v8 = vld [vmem:[#allocation3 + $0x158] sm:$0xff] }
 0x1f0   : > { %v5036_v24 = vadd.f32 %v5033_v35, %v2255_v60  ;;  %v5039_v36 = vadd.f32 %v5033_v35, %v2256_v43  ;;  %v1648_v20 = vmul.f32 %v4954_v46, %v4072_v10  ;;  %v1649_v53 = vmul.f32 %v4956_v2, %v4072_v10 }
 0x1f1   : > { %v1400_v12 = vadd.f32 %v1368_v27, %v1251_v44  ;;  %v1401_v62 = vadd.f32 %v1369_v61, %v1252_v25  ;;  %v1796_v56 = vmul.f32 %v5004_v1, %v4079_v13  ;;  %v1797_v18 = vmul.f32 %v5000_v49, %v4079_v13 }
 0x1f2   : > { %v2327_v34 = vmul.f32 %v5036_v24, %v5036_v24  ;;  %v2328_v15 = vmul.f32 %v5039_v36, %v5039_v36  ;;  %v1917_v17 = vrot.slane %v1877_v23, 7  ;;  %v1933_v33 = vrot.slane %v5030_v63, 7 }
 0x1f3   : > { %v1612_v11 = vadd.f32 %v1580_v57, %v1400_v12  ;;  %v1613_v48 = vadd.f32 %v1581_v59, %v1401_v62  ;;  %v1949_v7 = vrot.slane %v5045_v5, 7  ;;  %v2077_v50 = vmul.f32 %v4090_v19, %v5030_v63 }
 0x1f4   : > { %v2359_v6 = vmul.f32 %v2327_v34, %v5036_v24  ;;  %v2360_v52 = vmul.f32 %v2328_v15, %v5039_v36  ;;  %v5063_v4 = vsel %vm1130_vm2, %v1917_v17, %v1933_v33  ;;  %v2078_v55 = vmul.f32 %v4090_v19, %v5045_v5 }
 0x1f5   : > { %v3648_v32 = vpop.eup %3647  ;;  %v1680_v29 = vadd.f32 %v1648_v20, %v1612_v11  ;;  %v1681_v26 = vadd.f32 %v1649_v53, %v1613_v48  ;;  %v5069_v41 = vsel %vm1130_vm2, %v1933_v33, %v1949_v7  ;;  %v2009_v30 = vmul.f32 %v4081_v14, %v5063_v4 }
 0x1f6   : > { %v3650_v16 = vpop.eup %3649  ;;  %v2517_v3 = vadd.f32 1.0, %v3648_v32  ;;  %v2391_v38 = vmul.f32 0.044715, %v2359_v6  ;;  %v2392_v42 = vmul.f32 0.044715, %v2360_v52  ;;  %v2010_v54 = vmul.f32 %v4081_v14, %v5069_v41 }
 0x1f7   : > { %v2518_v58 = vadd.f32 1.0, %v3650_v16  ;;  %v1828_v31 = vadd.f32 %v1796_v56, %v1680_v29  ;;  %v1829_v0 = vadd.f32 %v1797_v18, %v1681_v26  ;;  %v2133_v60 = vrot.slane %v5030_v63, 1 }
 0x1f8   : > { %v2549_v43 = vmul.f32 0.5, %v2517_v3  ;;  %v2423_v27 = vadd.f32 %v2391_v38, %v5036_v24  ;;  %v2424_v61 = vadd.f32 %v2392_v42, %v5039_v36  ;;  %v2149_v44 = vrot.slane %v5045_v5, 1 }
 0x1f9   : > { %v2550_v25 = vmul.f32 0.5, %v2518_v58  ;;  %v2041_v57 = vadd.f32 %v2009_v30, %v1828_v31  ;;  %v2042_v59 = vadd.f32 %v2010_v54, %v1829_v0  ;;  %v2165_v23 = vrot.slane %v1880_v8, 1  ;;  %v5117_v30 = vld [vmem:[#allocation3 + $0x168] sm:$0xff] }
 0x1fa   : > { %v2581_v20 = vmul.f32 %v2549_v43, %v4950_v45  ;;  %v2455_v53 = vmul.f32 0.7978846, %v2423_v27  ;;  %v2456_v12 = vmul.f32 0.7978846, %v2424_v61  ;;  %v5082_v62 = vsel %vm1315_vm3, %v2133_v60, %v2149_v44 }
 0x1fb   : > { %v2582_v56 = vmul.f32 %v2550_v25, %v4959_v21  ;;  %v2109_v18 = vadd.f32 %v2077_v50, %v2041_v57  ;;  %v2110_v34 = vadd.f32 %v2078_v55, %v2042_v59  ;;  %v5087_v15 = vsel %vm1315_vm3, %v2149_v44, %v2165_v23 }
 0x1fc   : > { %3651 = vtanh.f32 %v2455_v53  ;;  %v2225_v17 = vmul.f32 %v5008_v22, %v5082_v62  ;;  %v2226_v45 = vmul.f32 %v5008_v22, %v5087_v15  ;;  %v1185_v33 = vmul.f32 %v4985_v51, %v4024_v39 }
 0x1fd   : > { %v2607_v11 = vpack.c.bf16 %v2582_v56, %v2581_v20  ;;  %3653 = vtanh.f32 %v2456_v12  ;;  %v1186_v21 = vmul.f32 %v4981_v37, %v4024_v39  ;;  %v1221_v48 = vmul.f32 %v4954_v46, %v4026_v40  ;;  %v1881_v46 = vld [vmem:[#allocation3 + $0x160] sm:$0xff] }
 0x1fe   : > { %v2257_v7 = vadd.f32 %v2225_v17, %v2109_v18  ;;  %v2258_v50 = vadd.f32 %v2226_v45, %v2110_v34  ;;  %v1222_v6 = vmul.f32 %v4956_v2, %v4026_v40  ;;  %v1370_v52 = vmul.f32 %v5004_v1, %v4038_v47  ;;  %v1884_v17 = vld [vmem:[#allocation3 + $0x178] sm:$0xff] }
 0x1ff   : > { %3472 = vmatprep.mubr.bf16.mxu1 %v2607_v11  ;;  %v1253_v55 = vadd.f32 %v1221_v48, %v1185_v33  ;;  %v1371_v51 = vmul.f32 %v5000_v49, %v4038_v47  ;;  %v1582_v32 = vmul.f32 %v5063_v4, %v4070_v9  ;;  %v1583_v37 = vmul.f32 %v5069_v41, %v4070_v9  ;;  %v5119_v49 = vld [vmem:[#allocation3 + $0x170] sm:$0xff] }
 0x200   : > { %v5110_v29 = vadd.f32 %v5033_v35, %v2257_v7  ;;  %v5113_v2 = vadd.f32 %v5033_v35, %v2258_v50  ;;  %v1254_v26 = vadd.f32 %v1222_v6, %v1186_v21  ;;  %v1650_v1 = vmul.f32 %v5030_v63, %v4072_v10 }
 0x201   : > { %v1402_v16 = vadd.f32 %v1370_v52, %v1253_v55  ;;  %v1651_v3 = vmul.f32 %v5045_v5, %v4072_v10  ;;  %v1798_v38 = vmul.f32 %v5082_v62, %v4079_v13  ;;  %v1799_v42 = vmul.f32 %v5087_v15, %v4079_v13 }
 0x202   : > { %v2329_v8 = vmul.f32 %v5110_v29, %v5110_v29  ;;  %v2330_v54 = vmul.f32 %v5113_v2, %v5113_v2  ;;  %v1403_v58 = vadd.f32 %v1371_v51, %v1254_v26  ;;  %v1918_v31 = vrot.slane %v1881_v46, 7 }
 0x203   : > { %v1614_v0 = vadd.f32 %v1582_v32, %v1402_v16  ;;  %v1934_v60 = vrot.slane %v5117_v30, 7  ;;  %v1950_v43 = vrot.slane %v5119_v49, 7  ;;  %v2079_v27 = vmul.f32 %v4090_v19, %v5117_v30 }
 0x204   : > { %v2361_v61 = vmul.f32 %v2329_v8, %v5110_v29  ;;  %v2362_v44 = vmul.f32 %v2330_v54, %v5113_v2  ;;  %v1615_v25 = vadd.f32 %v1583_v37, %v1403_v58  ;;  %v2080_v57 = vmul.f32 %v4090_v19, %v5119_v49 }
 0x205   : > { %v1682_v59 = vadd.f32 %v1650_v1, %v1614_v0  ;;  %v5141_v23 = vsel %vm1130_vm2, %v1934_v60, %v1950_v43  ;;  %v5145_v20 = vsel %vm1130_vm2, %v1918_v31, %v1934_v60  ;;  %v2134_v53 = vrot.slane %v5117_v30, 1 }
 0x206   : > { %v3652_v12 = vpop.eup %3651  ;;  %v2393_v56 = vmul.f32 0.044715, %v2361_v61  ;;  %v2394_v18 = vmul.f32 0.044715, %v2362_v44  ;;  %v1683_v34 = vadd.f32 %v1651_v3, %v1615_v25  ;;  %v2011_v45 = vmul.f32 %v4081_v14, %v5145_v20 }
 0x207   : > { %v3654_v33 = vpop.eup %3653  ;;  %v2519_v11 = vadd.f32 1.0, %v3652_v12  ;;  %v1830_v21 = vadd.f32 %v1798_v38, %v1682_v59  ;;  %v2012_v48 = vmul.f32 %v4081_v14, %v5141_v23  ;;  %v2150_v7 = vrot.slane %v5119_v49, 1  ;;  %v1885_v12 = vld [vmem:[#allocation3 + $0x180] sm:$0xff] }
 0x208   : > { %v2520_v50 = vadd.f32 1.0, %v3654_v33  ;;  %v2425_v6 = vadd.f32 %v2393_v56, %v5110_v29  ;;  %v2426_v52 = vadd.f32 %v2394_v18, %v5113_v2  ;;  %v1831_v55 = vadd.f32 %v1799_v42, %v1683_v34  ;;  %v5191_v56 = vld [vmem:[#allocation3 + $0x188] sm:$0xff]  ;;  %v5193_v18 = vld [vmem:[#allocation3 + $0x190] sm:$0xff] }
 0x209   : > { %v2551_v51 = vmul.f32 0.5, %v2519_v11  ;;  %v2043_v32 = vadd.f32 %v2011_v45, %v1830_v21  ;;  %v2166_v37 = vrot.slane %v1884_v17, 1  ;;  %v5157_v46 = vsel %vm1315_vm3, %v2134_v53, %v2150_v7 }
 0x20a   : > { %v2552_v26 = vmul.f32 0.5, %v2520_v50  ;;  %v2457_v1 = vmul.f32 0.7978846, %v2425_v6  ;;  %v2458_v16 = vmul.f32 0.7978846, %v2426_v52  ;;  %v2044_v3 = vadd.f32 %v2012_v48, %v1831_v55 }
 0x20b   : > { %v2583_v38 = vmul.f32 %v2551_v51, %v5036_v24  ;;  %v2111_v8 = vadd.f32 %v2079_v27, %v2043_v32  ;;  %v5162_v54 = vsel %vm1315_vm3, %v2150_v7, %v2166_v37  ;;  %v2227_v42 = vmul.f32 %v5008_v22, %v5157_v46 }
 0x20c   : > { %v2584_v58 = vmul.f32 %v2552_v26, %v5039_v36  ;;  %3655 = vtanh.f32 %v2457_v1  ;;  %v2112_v31 = vadd.f32 %v2080_v57, %v2044_v3  ;;  %v2228_v0 = vmul.f32 %v5008_v22, %v5162_v54 }
 0x20d   : > { %3657 = vtanh.f32 %v2458_v16  ;;  %v2259_v60 = vadd.f32 %v2227_v42, %v2111_v8  ;;  %v1187_v24 = vmul.f32 %v5063_v4, %v4024_v39  ;;  %v1188_v43 = vmul.f32 %v5069_v41, %v4024_v39 }
 0x20e   : > { %v2608_v27 = vpack.c.bf16 %v2584_v58, %v2583_v38  ;;  %v2260_v61 = vadd.f32 %v2228_v0, %v2112_v31  ;;  %v1223_v44 = vmul.f32 %v5030_v63, %v4026_v40  ;;  %v1224_v36 = vmul.f32 %v5045_v5, %v4026_v40  ;;  %v1888_v58 = vld [vmem:[#allocation3 + $0x198] sm:$0xff] }
 0x20f   : > { %v5178_v25 = vadd.f32 %v5033_v35, %v2259_v60  ;;  %v1372_v57 = vmul.f32 %v5082_v62, %v4038_v47  ;;  %v1373_v4 = vmul.f32 %v5087_v15, %v4038_v47  ;;  %v1584_v41 = vmul.f32 %v5145_v20, %v4070_v9 }
 0x210   : > { %3473 = vmatmul.mubr.bf16.gmra.mrb[8].mxu1 %v2608_v27  ;;  %v5187_v59 = vadd.f32 %v5033_v35, %v2260_v61  ;;  %v1255_v63 = vadd.f32 %v1223_v44, %v1187_v24  ;;  %v1256_v53 = vadd.f32 %v1224_v36, %v1188_v43  ;;  %v1585_v5 = vmul.f32 %v5141_v23, %v4070_v9 }
 0x211   : > { %v2331_v62 = vmul.f32 %v5178_v25, %v5178_v25  ;;  %v1652_v15 = vmul.f32 %v5117_v30, %v4072_v10  ;;  %v1653_v34 = vmul.f32 %v5119_v49, %v4072_v10  ;;  %v1800_v17 = vmul.f32 %v5157_v46, %v4079_v13 }
 0x212   : > { %v2332_v45 = vmul.f32 %v5187_v59, %v5187_v59  ;;  %v1404_v33 = vadd.f32 %v1372_v57, %v1255_v63  ;;  %v1405_v11 = vadd.f32 %v1373_v4, %v1256_v53  ;;  %v1801_v21 = vmul.f32 %v5162_v54, %v4079_v13 }
 0x213   : > { %v2363_v48 = vmul.f32 %v2331_v62, %v5178_v25  ;;  %v1919_v7 = vrot.slane %v1885_v12, 7  ;;  %v1935_v50 = vrot.slane %v5191_v56, 7  ;;  %v1951_v6 = vrot.slane %v5193_v18, 7 }
 0x214   : > { %v2364_v52 = vmul.f32 %v2332_v45, %v5187_v59  ;;  %v1616_v55 = vadd.f32 %v1584_v41, %v1404_v33  ;;  %v1617_v51 = vadd.f32 %v1585_v5, %v1405_v11  ;;  %v2081_v32 = vmul.f32 %v4090_v19, %v5191_v56 }
 0x215   : > { %v2395_v37 = vmul.f32 0.044715, %v2363_v48  ;;  %v5215_v26 = vsel %vm1130_vm2, %v1935_v50, %v1951_v6  ;;  %v5219_v1 = vsel %vm1130_vm2, %v1919_v7, %v1935_v50  ;;  %v2082_v16 = vmul.f32 %v4090_v19, %v5193_v18 }
 0x216   : > { %v3656_v3 = vpop.eup %3655  ;;  %v2396_v38 = vmul.f32 0.044715, %v2364_v52  ;;  %v1684_v8 = vadd.f32 %v1652_v15, %v1616_v55  ;;  %v1685_v42 = vadd.f32 %v1653_v34, %v1617_v51  ;;  %v2013_v31 = vmul.f32 %v4081_v14, %v5219_v1 }
 0x217   : > { %v3658_v0 = vpop.eup %3657  ;;  %v2521_v60 = vadd.f32 1.0, %v3656_v3  ;;  %v2427_v24 = vadd.f32 %v2395_v37, %v5178_v25  ;;  %v2014_v43 = vmul.f32 %v4081_v14, %v5215_v26  ;;  %v2135_v27 = vrot.slane %v5191_v56, 1 }
 0x218   : > { %v2522_v61 = vadd.f32 1.0, %v3658_v0  ;;  %v2428_v44 = vadd.f32 %v2396_v38, %v5187_v59  ;;  %v1832_v36 = vadd.f32 %v1800_v17, %v1684_v8  ;;  %v1833_v57 = vadd.f32 %v1801_v21, %v1685_v42  ;;  %v5263_v38 = vld [vmem:[#allocation3 + $0x1a8] sm:$0xff] }
 0x219   : > { %v2553_v4 = vmul.f32 0.5, %v2521_v60  ;;  %v2459_v41 = vmul.f32 0.7978846, %v2427_v24  ;;  %v2151_v63 = vrot.slane %v5193_v18, 1  ;;  %v2167_v53 = vrot.slane %v1888_v58, 1 }
 0x21a   : > { %v2554_v5 = vmul.f32 0.5, %v2522_v61  ;;  %v2460_v12 = vmul.f32 0.7978846, %v2428_v44  ;;  %v2045_v62 = vadd.f32 %v2013_v31, %v1832_v36  ;;  %v2046_v15 = vadd.f32 %v2014_v43, %v1833_v57 }
 0x21b   : > { %v2585_v34 = vmul.f32 %v2553_v4, %v5110_v29  ;;  %3659 = vtanh.f32 %v2459_v41  ;;  %v5234_v45 = vsel %vm1315_vm3, %v2151_v63, %v2167_v53  ;;  %v5238_v17 = vsel %vm1315_vm3, %v2135_v27, %v2151_v63 }
 0x21c   : > { %v2586_v33 = vmul.f32 %v2554_v5, %v5113_v2  ;;  %3661 = vtanh.f32 %v2460_v12  ;;  %v2113_v11 = vadd.f32 %v2081_v32, %v2045_v62  ;;  %v2114_v21 = vadd.f32 %v2082_v16, %v2046_v15  ;;  %v1889_v16 = vld [vmem:[#allocation3 + $0x1a0] sm:$0xff] }
 0x21d   : > { %v2229_v48 = vmul.f32 %v5008_v22, %v5238_v17  ;;  %v2230_v29 = vmul.f32 %v5008_v22, %v5234_v45  ;;  %v1189_v7 = vmul.f32 %v5145_v20, %v4024_v39  ;;  %v1190_v50 = vmul.f32 %v5141_v23, %v4024_v39 }
 0x21e   : > { %v2609_v6 = vpack.c.bf16 %v2586_v33, %v2585_v34  ;;  %v1225_v52 = vmul.f32 %v5117_v30, %v4026_v40  ;;  %v1226_v2 = vmul.f32 %v5119_v49, %v4026_v40  ;;  %v1374_v55 = vmul.f32 %v5157_v46, %v4038_v47  ;;  %v5265_v46 = vld [vmem:[#allocation3 + $0x1b0] sm:$0xff] }
 0x21f   : > { %v2261_v51 = vadd.f32 %v2229_v48, %v2113_v11  ;;  %v2262_v32 = vadd.f32 %v2230_v29, %v2114_v21  ;;  %v1375_v37 = vmul.f32 %v5162_v54, %v4038_v47  ;;  %v1586_v20 = vmul.f32 %v5219_v1, %v4070_v9 }
 0x220   : > { %3476 = vmatprep.mubr.bf16.mxu1 %v2609_v6  ;;  %v1257_v23 = vadd.f32 %v1225_v52, %v1189_v7  ;;  %v1258_v3 = vadd.f32 %v1226_v2, %v1190_v50  ;;  %v1587_v30 = vmul.f32 %v5215_v26, %v4070_v9  ;;  %v1654_v49 = vmul.f32 %v5191_v56, %v4072_v10  ;;  %v1892_v50 = vld [vmem:[#allocation3 + $0x1b8] sm:$0xff] }
 0x221   : > { %v5268_v8 = vadd.f32 %v5033_v35, %v2261_v51  ;;  %v5271_v54 = vadd.f32 %v5033_v35, %v2262_v32  ;;  %v1655_v42 = vmul.f32 %v5193_v18, %v4072_v10  ;;  %v1802_v58 = vmul.f32 %v5238_v17, %v4079_v13 }
 0x222   : > { %v1406_v31 = vadd.f32 %v1374_v55, %v1257_v23  ;;  %v1407_v0 = vadd.f32 %v1375_v37, %v1258_v3  ;;  %v1803_v60 = vmul.f32 %v5234_v45, %v4079_v13  ;;  %v1920_v24 = vrot.slane %v1889_v16, 7 }
 0x223   : > { %v2333_v43 = vmul.f32 %v5268_v8, %v5268_v8  ;;  %v2334_v27 = vmul.f32 %v5271_v54, %v5271_v54  ;;  %v1936_v61 = vrot.slane %v5263_v38, 7  ;;  %v1952_v44 = vrot.slane %v5265_v46, 7 }
 0x224   : > { %v1618_v36 = vadd.f32 %v1586_v20, %v1406_v31  ;;  %v1619_v57 = vadd.f32 %v1587_v30, %v1407_v0  ;;  %v2083_v4 = vmul.f32 %v4090_v19, %v5263_v38  ;;  %v2084_v41 = vmul.f32 %v4090_v19, %v5265_v46 }
 0x225   : > { %v3660_v63 = vpop.eup %3659  ;;  %v2365_v53 = vmul.f32 %v2333_v43, %v5268_v8  ;;  %v2366_v5 = vmul.f32 %v2334_v27, %v5271_v54  ;;  %v5293_v12 = vsel %vm1130_vm2, %v1936_v61, %v1952_v44  ;;  %v5297_v62 = vsel %vm1130_vm2, %v1920_v24, %v1936_v61 }
 0x226   : > { %v3662_v15 = vpop.eup %3661  ;;  %v2523_v34 = vadd.f32 1.0, %v3660_v63  ;;  %v1686_v33 = vadd.f32 %v1654_v49, %v1618_v36  ;;  %v1687_v11 = vadd.f32 %v1655_v42, %v1619_v57  ;;  %v2015_v21 = vmul.f32 %v4081_v14, %v5297_v62 }
 0x227   : > { %v2524_v48 = vadd.f32 1.0, %v3662_v15  ;;  %v2397_v29 = vmul.f32 0.044715, %v2365_v53  ;;  %v2398_v7 = vmul.f32 0.044715, %v2366_v5  ;;  %v2016_v6 = vmul.f32 %v4081_v14, %v5293_v12  ;;  %v1893_v15 = vld [vmem:[#allocation3 + $0x1c0] sm:$0xff] }
 0x228   : > { %v2555_v52 = vmul.f32 0.5, %v2523_v34  ;;  %v1834_v2 = vadd.f32 %v1802_v58, %v1686_v33  ;;  %v1835_v55 = vadd.f32 %v1803_v60, %v1687_v11  ;;  %v2136_v51 = vrot.slane %v5263_v38, 1  ;;  %v5340_v34 = vld [vmem:[#allocation3 + $0x1c8] sm:$0xff]  ;;  %v5349_v11 = vld [vmem:[#allocation3 + $0x1d0] sm:$0xff] }
 0x229   : > { %v2556_v32 = vmul.f32 0.5, %v2524_v48  ;;  %v2429_v37 = vadd.f32 %v2397_v29, %v5268_v8  ;;  %v2430_v20 = vadd.f32 %v2398_v7, %v5271_v54  ;;  %v2152_v16 = vrot.slane %v5265_v46, 1 }
 0x22a   : > { %v2587_v23 = vmul.f32 %v2555_v52, %v5178_v25  ;;  %v2047_v3 = vadd.f32 %v2015_v21, %v1834_v2  ;;  %v2048_v30 = vadd.f32 %v2016_v6, %v1835_v55  ;;  %v2168_v49 = vrot.slane %v1892_v50, 1 }
 0x22b   : > { %v2588_v42 = vmul.f32 %v2556_v32, %v5187_v59  ;;  %v2461_v31 = vmul.f32 0.7978846, %v2429_v37  ;;  %v2462_v0 = vmul.f32 0.7978846, %v2430_v20  ;;  %v5311_v58 = vsel %vm1315_vm3, %v2136_v51, %v2152_v16 }
 0x22c   : > { %v2115_v60 = vadd.f32 %v2083_v4, %v2047_v3  ;;  %v2116_v24 = vadd.f32 %v2084_v41, %v2048_v30  ;;  %v5315_v43 = vsel %vm1315_vm3, %v2152_v16, %v2168_v49  ;;  %v2231_v25 = vmul.f32 %v5008_v22, %v5311_v58 }
 0x22d   : > { %v2610_v27 = vpack.c.bf16 %v2588_v42, %v2587_v23  ;;  %3663 = vtanh.f32 %v2461_v31  ;;  %v2232_v59 = vmul.f32 %v5008_v22, %v5315_v43  ;;  %v1191_v61 = vmul.f32 %v5219_v1, %v4024_v39  ;;  %v1896_v42 = vld [vmem:[#allocation3 + $0x1d8] sm:$0xff] }
 0x22e   : > { %3665 = vtanh.f32 %v2462_v0  ;;  %v2263_v44 = vadd.f32 %v2231_v25, %v2115_v60  ;;  %v1192_v36 = vmul.f32 %v5215_v26, %v4024_v39  ;;  %v1227_v57 = vmul.f32 %v5191_v56, %v4026_v40 }
 0x22f   : > { %3477 = vmatmul.mubr.bf16.gmra.mrb[12].mxu1 %v2610_v27  ;;  %v2264_v4 = vadd.f32 %v2232_v59, %v2116_v24  ;;  %v1228_v41 = vmul.f32 %v5193_v18, %v4026_v40  ;;  %v1376_v63 = vmul.f32 %v5238_v17, %v4038_v47  ;;  %v1377_v53 = vmul.f32 %v5234_v45, %v4038_v47 }
 0x230   : > { %v5334_v1 = vadd.f32 %v5033_v35, %v2263_v44  ;;  %v1259_v5 = vadd.f32 %v1227_v57, %v1191_v61  ;;  %v1588_v26 = vmul.f32 %v5297_v62, %v4070_v9  ;;  %v1589_v56 = vmul.f32 %v5293_v12, %v4070_v9 }
 0x231   : > { %v5343_v18 = vadd.f32 %v5033_v35, %v2264_v4  ;;  %v1260_v17 = vadd.f32 %v1228_v41, %v1192_v36  ;;  %v1656_v45 = vmul.f32 %v5263_v38, %v4072_v10  ;;  %v1657_v33 = vmul.f32 %v5265_v46, %v4072_v10 }
 0x232   : > { %v2335_v21 = vmul.f32 %v5334_v1, %v5334_v1  ;;  %v1408_v48 = vadd.f32 %v1376_v63, %v1259_v5  ;;  %v1804_v29 = vmul.f32 %v5311_v58, %v4079_v13  ;;  %v1805_v7 = vmul.f32 %v5315_v43, %v4079_v13 }
 0x233   : > { %v2336_v50 = vmul.f32 %v5343_v18, %v5343_v18  ;;  %v1409_v6 = vadd.f32 %v1377_v53, %v1260_v17  ;;  %v1921_v52 = vrot.slane %v1893_v15, 7  ;;  %v1937_v2 = vrot.slane %v5340_v34, 7 }
 0x234   : > { %v2367_v55 = vmul.f32 %v2335_v21, %v5334_v1  ;;  %v1620_v51 = vadd.f32 %v1588_v26, %v1408_v48  ;;  %v1953_v32 = vrot.slane %v5349_v11, 7  ;;  %v2085_v37 = vmul.f32 %v4090_v19, %v5340_v34 }
 0x235   : > { %v2368_v20 = vmul.f32 %v2336_v50, %v5343_v18  ;;  %v1621_v16 = vadd.f32 %v1589_v56, %v1409_v6  ;;  %v5367_v23 = vsel %vm1130_vm2, %v1921_v52, %v1937_v2  ;;  %v2086_v3 = vmul.f32 %v4090_v19, %v5349_v11 }
 0x236   : > { %v2399_v30 = vmul.f32 0.044715, %v2367_v55  ;;  %v1688_v49 = vadd.f32 %v1656_v45, %v1620_v51  ;;  %v5373_v31 = vsel %vm1130_vm2, %v1937_v2, %v1953_v32  ;;  %v2017_v0 = vmul.f32 %v4081_v14, %v5367_v23 }
 0x237   : > { %v3664_v60 = vpop.eup %3663  ;;  %v2400_v24 = vmul.f32 0.044715, %v2368_v20  ;;  %v1689_v25 = vadd.f32 %v1657_v33, %v1621_v16  ;;  %v2018_v27 = vmul.f32 %v4081_v14, %v5373_v31  ;;  %v2137_v59 = vrot.slane %v5340_v34, 1 }
 0x238   : > { %v3666_v61 = vpop.eup %3665  ;;  %v2525_v44 = vadd.f32 1.0, %v3664_v60  ;;  %v2431_v36 = vadd.f32 %v2399_v30, %v5334_v1  ;;  %v1836_v57 = vadd.f32 %v1804_v29, %v1688_v49  ;;  %v2153_v4 = vrot.slane %v5349_v11, 1  ;;  %v1897_v49 = vld [vmem:[#allocation3 + $0x1e0] sm:$0xff]  ;;  %v5423_v60 = vld [vmem:[#allocation3 + $0x1f0] sm:$0xff] }
 0x239   : > { %v2526_v41 = vadd.f32 1.0, %v3666_v61  ;;  %v2432_v63 = vadd.f32 %v2400_v24, %v5343_v18  ;;  %v1837_v53 = vadd.f32 %v1805_v7, %v1689_v25  ;;  %v2169_v5 = vrot.slane %v1896_v42, 1 }
 0x23a   : > { %v2557_v26 = vmul.f32 0.5, %v2525_v44  ;;  %v2463_v56 = vmul.f32 0.7978846, %v2431_v36  ;;  %v2049_v15 = vadd.f32 %v2017_v0, %v1836_v57  ;;  %v5385_v17 = vsel %vm1315_vm3, %v2137_v59, %v2153_v4  ;;  %v5421_v0 = vld [vmem:[#allocation3 + $0x1e8] sm:$0xff] }
 0x23b   : > { %v2558_v45 = vmul.f32 0.5, %v2526_v41  ;;  %v2464_v33 = vmul.f32 0.7978846, %v2432_v63  ;;  %v2050_v21 = vadd.f32 %v2018_v27, %v1837_v53  ;;  %v5389_v48 = vsel %vm1315_vm3, %v2153_v4, %v2169_v5 }
 0x23c   : > { %v2589_v29 = vmul.f32 %v2557_v26, %v5268_v8  ;;  %3667 = vtanh.f32 %v2463_v56  ;;  %v2117_v50 = vadd.f32 %v2085_v37, %v2049_v15  ;;  %v2233_v7 = vmul.f32 %v5008_v22, %v5385_v17 }
 0x23d   : > { %v2590_v6 = vmul.f32 %v2558_v45, %v5271_v54  ;;  %3669 = vtanh.f32 %v2464_v33  ;;  %v2118_v52 = vadd.f32 %v2086_v3, %v2050_v21  ;;  %v2234_v2 = vmul.f32 %v5008_v22, %v5389_v48 }
 0x23e   : > { %v2265_v55 = vadd.f32 %v2233_v7, %v2117_v50  ;;  %v1193_v51 = vmul.f32 %v5297_v62, %v4024_v39  ;;  %v1194_v32 = vmul.f32 %v5293_v12, %v4024_v39  ;;  %v1229_v8 = vmul.f32 %v5263_v38, %v4026_v40 }
 0x23f   : > { %v2611_v37 = vpack.c.bf16 %v2590_v6, %v2589_v29  ;;  %v2266_v20 = vadd.f32 %v2234_v2, %v2118_v52  ;;  %v1230_v54 = vmul.f32 %v5265_v46, %v4026_v40  ;;  %v1378_v16 = vmul.f32 %v5311_v58, %v4038_v47 }
 0x240   : > { %v5408_v3 = vadd.f32 %v5033_v35, %v2265_v55  ;;  %v1261_v30 = vadd.f32 %v1229_v8, %v1193_v51  ;;  %v1379_v62 = vmul.f32 %v5315_v43, %v4038_v47  ;;  %v1590_v12 = vmul.f32 %v5367_v23, %v4070_v9  ;;  %v1900_v8 = vld [vmem:[#allocation3 + $0x1f8] sm:$0xff] }
 0x241   : > { %3480 = vmatprep.mubr.bf16.mxu1 %v2611_v37  ;;  %v5415_v38 = vadd.f32 %v5033_v35, %v2266_v20  ;;  %v1262_v42 = vadd.f32 %v1230_v54, %v1194_v32  ;;  %v1591_v46 = vmul.f32 %v5373_v31, %v4070_v9  ;;  %v1658_v58 = vmul.f32 %v5340_v34, %v4072_v10 }
 0x242   : > { %v2337_v43 = vmul.f32 %v5408_v3, %v5408_v3  ;;  %v1410_v24 = vadd.f32 %v1378_v16, %v1261_v30  ;;  %v1659_v25 = vmul.f32 %v5349_v11, %v4072_v10  ;;  %v1806_v27 = vmul.f32 %v5385_v17, %v4079_v13 }
 0x243   : > { %v2338_v59 = vmul.f32 %v5415_v38, %v5415_v38  ;;  %v1411_v61 = vadd.f32 %v1379_v62, %v1262_v42  ;;  %v1807_v44 = vmul.f32 %v5389_v48, %v4079_v13  ;;  %v1922_v36 = vrot.slane %v1897_v49, 7 }
 0x244   : > { %v2369_v57 = vmul.f32 %v2337_v43, %v5408_v3  ;;  %v1622_v4 = vadd.f32 %v1590_v12, %v1410_v24  ;;  %v1938_v41 = vrot.slane %v5421_v0, 7  ;;  %v1954_v63 = vrot.slane %v5423_v60, 7 }
 0x245   : > { %v2370_v53 = vmul.f32 %v2338_v59, %v5415_v38  ;;  %v1623_v5 = vadd.f32 %v1591_v46, %v1411_v61  ;;  %v2087_v26 = vmul.f32 %v4090_v19, %v5421_v0  ;;  %v2088_v56 = vmul.f32 %v4090_v19, %v5423_v60 }
 0x246   : > { %v3668_v15 = vpop.eup %3667  ;;  %v2401_v45 = vmul.f32 0.044715, %v2369_v57  ;;  %v1690_v33 = vadd.f32 %v1658_v58, %v1622_v4  ;;  %v5445_v21 = vsel %vm1130_vm2, %v1938_v41, %v1954_v63  ;;  %v5449_v29 = vsel %vm1130_vm2, %v1922_v36, %v1938_v41 }
 0x247   : > { %v3670_v50 = vpop.eup %3669  ;;  %v2527_v7 = vadd.f32 1.0, %v3668_v15  ;;  %v2402_v6 = vmul.f32 0.044715, %v2370_v53  ;;  %v1691_v52 = vadd.f32 %v1659_v25, %v1623_v5  ;;  %v2019_v2 = vmul.f32 %v4081_v14, %v5449_v29  ;;  %v1901_v15 = vld [vmem:[#allocation3 + $0x200] sm:$0xff] }
 0x248   : > { %v2528_v55 = vadd.f32 1.0, %v3670_v50  ;;  %v2433_v51 = vadd.f32 %v2401_v45, %v5408_v3  ;;  %v1838_v32 = vadd.f32 %v1806_v27, %v1690_v33  ;;  %v2020_v37 = vmul.f32 %v4081_v14, %v5445_v21  ;;  %v5494_v33 = vld [vmem:[#allocation3 + $0x208] sm:$0xff]  ;;  %v5496_v50 = vld [vmem:[#allocation3 + $0x210] sm:$0xff] }
 0x249   : > { %v2559_v20 = vmul.f32 0.5, %v2527_v7  ;;  %v2434_v54 = vadd.f32 %v2402_v6, %v5415_v38  ;;  %v1839_v16 = vadd.f32 %v1807_v44, %v1691_v52  ;;  %v2138_v30 = vrot.slane %v5421_v0, 1 }
 0x24a   : > { %v2560_v62 = vmul.f32 0.5, %v2528_v55  ;;  %v2465_v12 = vmul.f32 0.7978846, %v2433_v51  ;;  %v2051_v49 = vadd.f32 %v2019_v2, %v1838_v32  ;;  %v2154_v42 = vrot.slane %v5423_v60, 1 }
 0x24b   : > { %v2591_v46 = vmul.f32 %v2559_v20, %v5334_v1  ;;  %v2466_v58 = vmul.f32 0.7978846, %v2434_v54  ;;  %v2052_v43 = vadd.f32 %v2020_v37, %v1839_v16  ;;  %v2170_v24 = vrot.slane %v1900_v8, 1 }
 0x24c   : > { %v2592_v25 = vmul.f32 %v2560_v62, %v5343_v18  ;;  %3671 = vtanh.f32 %v2465_v12  ;;  %v2119_v27 = vadd.f32 %v2087_v26, %v2051_v49  ;;  %v5463_v59 = vsel %vm1315_vm3, %v2138_v30, %v2154_v42 }
 0x24d   : > { %3673 = vtanh.f32 %v2466_v58  ;;  %v2120_v61 = vadd.f32 %v2088_v56, %v2052_v43  ;;  %v5467_v44 = vsel %vm1315_vm3, %v2154_v42, %v2170_v24  ;;  %v2235_v1 = vmul.f32 %v5008_v22, %v5463_v59 }
 0x24e   : > { %v2612_v36 = vpack.c.bf16 %v2592_v25, %v2591_v46  ;;  %v2236_v57 = vmul.f32 %v5008_v22, %v5467_v44  ;;  %v1195_v18 = vmul.f32 %v5367_v23, %v4024_v39  ;;  %v1196_v4 = vmul.f32 %v5373_v31, %v4024_v39 }
 0x24f   : > { %v2267_v41 = vadd.f32 %v2235_v1, %v2119_v27  ;;  %v1231_v63 = vmul.f32 %v5340_v34, %v4026_v40  ;;  %v1232_v53 = vmul.f32 %v5349_v11, %v4026_v40  ;;  %v1380_v5 = vmul.f32 %v5385_v17, %v4038_v47 }
 0x250   : > { %3481 = vmatmul.mubr.bf16.gmra.mrb[16].mxu1 %v2612_v36  ;;  %v2268_v26 = vadd.f32 %v2236_v57, %v2120_v61  ;;  %v1381_v56 = vmul.f32 %v5389_v48, %v4038_v47  ;;  %v1592_v23 = vmul.f32 %v5449_v29, %v4070_v9  ;;  %v1593_v31 = vmul.f32 %v5445_v21, %v4070_v9  ;;  %v1904_v36 = vld [vmem:[#allocation3 + $0x218] sm:$0xff] }
 0x251   : > { %v5490_v34 = vadd.f32 %v5033_v35, %v2267_v41  ;;  %v1263_v45 = vadd.f32 %v1231_v63, %v1195_v18  ;;  %v1264_v11 = vadd.f32 %v1232_v53, %v1196_v4  ;;  %v1660_v17 = vmul.f32 %v5421_v0, %v4072_v10 }
 0x252   : > { %v5499_v48 = vadd.f32 %v5033_v35, %v2268_v26  ;;  %v1661_v7 = vmul.f32 %v5423_v60, %v4072_v10  ;;  %v1808_v6 = vmul.f32 %v5463_v59, %v4079_v13  ;;  %v1809_v52 = vmul.f32 %v5467_v44, %v4079_v13 }
 0x253   : > { %v2339_v2 = vmul.f32 %v5490_v34, %v5490_v34  ;;  %v1412_v55 = vadd.f32 %v1380_v5, %v1263_v45  ;;  %v1413_v51 = vadd.f32 %v1381_v56, %v1264_v11  ;;  %v1923_v32 = vrot.slane %v1901_v15, 7 }
 0x254   : > { %v2340_v8 = vmul.f32 %v5499_v48, %v5499_v48  ;;  %v1939_v37 = vrot.slane %v5494_v33, 7  ;;  %v1955_v20 = vrot.slane %v5496_v50, 7  ;;  %v2089_v54 = vmul.f32 %v4090_v19, %v5494_v33 }
 0x255   : > { %v2371_v16 = vmul.f32 %v2339_v2, %v5490_v34  ;;  %v1624_v30 = vadd.f32 %v1592_v23, %v1412_v55  ;;  %v1625_v62 = vadd.f32 %v1593_v31, %v1413_v51  ;;  %v2090_v12 = vmul.f32 %v4090_v19, %v5496_v50 }
 0x256   : > { %v3672_v49 = vpop.eup %3671  ;;  %v2372_v42 = vmul.f32 %v2340_v8, %v5499_v48  ;;  %v1971_v46 = vsel %vm1130_vm2, %v1939_v37, %v1955_v20  ;;  %v1987_v58 = vsel %vm1130_vm2, %v1923_v32, %v1939_v37  ;;  %v2139_v43 = vrot.slane %v5494_v33, 1 }
 0x257   : > { %v3674_v24 = vpop.eup %3673  ;;  %v2529_v25 = vadd.f32 1.0, %v3672_v49  ;;  %v2403_v27 = vmul.f32 0.044715, %v2371_v16  ;;  %v1692_v61 = vadd.f32 %v1660_v17, %v1624_v30  ;;  %v1693_v1 = vadd.f32 %v1661_v7, %v1625_v62 }
 0x258   : > { %v2530_v57 = vadd.f32 1.0, %v3674_v24  ;;  %v2404_v18 = vmul.f32 0.044715, %v2372_v42  ;;  %v2021_v4 = vmul.f32 %v4081_v14, %v1987_v58  ;;  %v2022_v41 = vmul.f32 %v4081_v14, %v1971_v46  ;;  %v1905_v42 = vld [vmem:[#allocation3 + $0x220] sm:$0xff] }
 0x259   : > { %v2561_v63 = vmul.f32 0.5, %v2529_v25  ;;  %v2435_v53 = vadd.f32 %v2403_v27, %v5490_v34  ;;  %v1840_v5 = vadd.f32 %v1808_v6, %v1692_v61  ;;  %v1841_v26 = vadd.f32 %v1809_v52, %v1693_v1 }
 0x25a   : > { %v2562_v56 = vmul.f32 0.5, %v2530_v57  ;;  %v2436_v23 = vadd.f32 %v2404_v18, %v5499_v48  ;;  %v2155_v31 = vrot.slane %v5496_v50, 1  ;;  %v2171_v15 = vrot.slane %v1904_v36, 1 }
 0x25b   : > { %v2593_v45 = vmul.f32 %v2561_v63, %v5408_v3  ;;  %v2467_v11 = vmul.f32 0.7978846, %v2435_v53  ;;  %v2053_v17 = vadd.f32 %v2021_v4, %v1840_v5  ;;  %v2054_v7 = vadd.f32 %v2022_v41, %v1841_v26  ;;  %v1908_v5 = vld [vmem:[#allocation3 + $0x238] sm:$0xff] }
 0x25c   : > { %v2594_v2 = vmul.f32 %v2562_v56, %v5415_v38  ;;  %v2468_v55 = vmul.f32 0.7978846, %v2436_v23  ;;  %v2187_v51 = vsel %vm1315_vm3, %v2155_v31, %v2171_v15  ;;  %v2203_v6 = vsel %vm1315_vm3, %v2139_v43, %v2155_v31  ;;  %v1906_v43 = vld [vmem:[#allocation3 + $0x228] sm:$0xff] }
 0x25d   : > { %3675 = vtanh.f32 %v2467_v11  ;;  %v2121_v52 = vadd.f32 %v2089_v54, %v2053_v17  ;;  %v2122_v32 = vadd.f32 %v2090_v12, %v2054_v7  ;;  %v2237_v8 = vmul.f32 %v5008_v22, %v2203_v6 }
 0x25e   : > { %v2613_v37 = vpack.c.bf16 %v2594_v2, %v2593_v45  ;;  %3677 = vtanh.f32 %v2468_v55  ;;  %v2238_v3 = vmul.f32 %v5008_v22, %v2187_v51  ;;  %v1197_v20 = vmul.f32 %v5449_v29, %v4024_v39 }
 0x25f   : > { %v2269_v38 = vadd.f32 %v2237_v8, %v2121_v52  ;;  %v1198_v16 = vmul.f32 %v5445_v21, %v4024_v39  ;;  %v1233_v30 = vmul.f32 %v5421_v0, %v4026_v40  ;;  %v1234_v54 = vmul.f32 %v5423_v60, %v4026_v40  ;;  %v1907_v40 = vld [vmem:[#allocation3 + $0x230] sm:$0xff] }
 0x260   : > { %3484 = vmatprep.mubr.bf16.mxu1 %v2613_v37  ;;  %v2270_v62 = vadd.f32 %v2238_v3, %v2122_v32  ;;  %v1382_v12 = vmul.f32 %v5463_v59, %v4038_v47  ;;  %v1383_v22 = vmul.f32 %v5467_v44, %v4038_v47  ;;  %v1594_v29 = vmul.f32 %v1987_v58, %v4070_v9 }
 0x261   : > { %v5551_v49 = vadd.f32 %v5033_v35, %v2269_v38  ;;  %v1265_v39 = vadd.f32 %v1233_v30, %v1197_v20  ;;  %v1266_v21 = vadd.f32 %v1234_v54, %v1198_v16  ;;  %v1595_v0 = vmul.f32 %v1971_v46, %v4070_v9 }
 0x262   : > { %v5555_v60 = vadd.f32 %v5033_v35, %v2270_v62  ;;  %v1662_v59 = vmul.f32 %v5494_v33, %v4072_v10  ;;  %v1663_v47 = vmul.f32 %v5496_v50, %v4072_v10  ;;  %v1810_v44 = vmul.f32 %v2203_v6, %v4079_v13  ;;  %v3753_v62 = vld [vmem:[%s4018_s8 + $0x8] ss:$0 sm:$0xff] }
 0x263   : > { %v2341_v58 = vmul.f32 %v5551_v49, %v5551_v49  ;;  %v1414_v24 = vadd.f32 %v1382_v12, %v1265_v39  ;;  %v1415_v25 = vadd.f32 %v1383_v22, %v1266_v21  ;;  %v1811_v9 = vmul.f32 %v2187_v51, %v4079_v13  ;;  %v3754_v21 = vld [vmem:[%s4446_s15] ss:$0 sm:$0xff] }
 0x264   : > { %v2342_v46 = vmul.f32 %v5555_v60, %v5555_v60  ;;  %v1924_v35 = vrot.slane %v1905_v42, 7  ;;  %v1940_v27 = vrot.slane %v1906_v43, 7  ;;  %v1956_v61 = vrot.slane %v1907_v40, 7 }
 0x265   : > { %v2373_v33 = vmul.f32 %v2341_v58, %v5551_v49  ;;  %v1626_v1 = vadd.f32 %v1594_v29, %v1414_v24  ;;  %v1627_v36 = vadd.f32 %v1595_v0, %v1415_v25  ;;  %v2091_v10 = vmul.f32 %v4090_v19, %v1906_v43 }
 0x266   : > { %v2374_v50 = vmul.f32 %v2342_v46, %v5555_v60  ;;  %v1972_v57 = vsel %vm1130_vm2, %v1940_v27, %v1956_v61  ;;  %v1988_v13 = vsel %vm1130_vm2, %v1924_v35, %v1940_v27  ;;  %v2092_v18 = vmul.f32 %v4090_v19, %v1907_v40 }
 0x267   : > { %v3676_v4 = vpop.eup %3675  ;;  %v2405_v41 = vmul.f32 0.044715, %v2373_v33  ;;  %v1694_v63 = vadd.f32 %v1662_v59, %v1626_v1  ;;  %v1695_v53 = vadd.f32 %v1663_v47, %v1627_v36  ;;  %v2023_v26 = vmul.f32 %v4081_v14, %v1988_v13 }
 0x268   : > { %v3678_v56 = vpop.eup %3677  ;;  %v2531_v23 = vadd.f32 1.0, %v3676_v4  ;;  %v2406_v31 = vmul.f32 0.044715, %v2374_v50  ;;  %v2024_v15 = vmul.f32 %v4081_v14, %v1972_v57  ;;  %v2140_v45 = vrot.slane %v1906_v43, 1  ;;  %v5593_v50 = vld [vmem:[%s2635_s18] ss:$0 sm:$0xff] }
 0x269   : > { %v2532_v11 = vadd.f32 1.0, %v3678_v56  ;;  %v2437_v17 = vadd.f32 %v2405_v41, %v5551_v49  ;;  %v1842_v7 = vadd.f32 %v1810_v44, %v1694_v63  ;;  %v1843_v2 = vadd.f32 %v1811_v9, %v1695_v53 }
 0x26a   : > { %v2563_v55 = vmul.f32 0.5, %v2531_v23  ;;  %v2438_v19 = vadd.f32 %v2406_v31, %v5555_v60  ;;  %v2156_v51 = vrot.slane %v1907_v40, 1  ;;  %v2172_v6 = vrot.slane %v1908_v5, 1  ;;  %v3756_v5 = vld [vmem:[#allocation2] sm:$0xff]  ;;  %v3757_v31 = vld [vmem:[#allocation2 + $0x18] sm:$0xff] }
 0x26b   : > { %v2564_v52 = vmul.f32 0.5, %v2532_v11  ;;  %v2469_v32 = vmul.f32 0.7978846, %v2437_v17  ;;  %v2055_v8 = vadd.f32 %v2023_v26, %v1842_v7  ;;  %v2056_v37 = vadd.f32 %v2024_v15, %v1843_v2  ;;  %v3758_v17 = vld [vmem:[#allocation2 + $0x8] sm:$0xff] }
 0x26c   : > { %v2595_v3 = vmul.f32 %v2563_v55, %v5490_v34  ;;  %v2470_v14 = vmul.f32 0.7978846, %v2438_v19  ;;  %v2188_v20 = vsel %vm1315_vm3, %v2156_v51, %v2172_v6  ;;  %v2204_v38 = vsel %vm1315_vm3, %v2140_v45, %v2156_v51 }
 0x26d   : > { %v2596_v16 = vmul.f32 %v2564_v52, %v5499_v48  ;;  %3679 = vtanh.f32 %v2469_v32  ;;  %v2123_v30 = vadd.f32 %v2091_v10, %v2055_v8  ;;  %v2124_v54 = vadd.f32 %v2092_v18, %v2056_v37 }
 0x26e   : > { %3681 = vtanh.f32 %v2470_v14  ;;  %v2239_v12 = vmul.f32 %v3753_v62, %v2204_v38  ;;  %v2240_v22 = vmul.f32 %v3753_v62, %v2188_v20 }
 0x26f   : > { %v2614_v29 = vpack.c.bf16 %v2596_v16, %v2595_v3 }
 0x270   : > { %v2271_v39 = vadd.f32 %v2239_v12, %v2123_v30  ;;  %v2272_v34 = vadd.f32 %v2240_v22, %v2124_v54 }
 0x271   : > { %3485 = vmatmul.mubr.bf16.gmra.mrb[20].mxu1 %v2614_v29 }
 0x272   : > { %v2311_v0 = vadd.f32 %v3754_v21, %v2271_v39  ;;  %v2312_v42 = vadd.f32 %v3754_v21, %v2272_v34 }
 0x274   : > { %v2343_v43 = vmul.f32 %v2311_v0, %v2311_v0  ;;  %v2344_v40 = vmul.f32 %v2312_v42, %v2312_v42 }
 0x276   : > { %v2375_v28 = vmul.f32 %v2343_v43, %v2311_v0  ;;  %v2376_v59 = vmul.f32 %v2344_v40, %v2312_v42 }
 0x277   : > { %v3680_v48 = vpop.eup %3679 }
 0x278   : > { %v3682_v47 = vpop.eup %3681  ;;  %v2533_v44 = vadd.f32 1.0, %v3680_v48  ;;  %v2407_v58 = vmul.f32 0.044715, %v2375_v28  ;;  %v2408_v24 = vmul.f32 0.044715, %v2376_v59 }
 0x279   : > { %v2534_v25 = vadd.f32 1.0, %v3682_v47 }
 0x27a   : > { %v2565_v9 = vmul.f32 0.5, %v2533_v44  ;;  %v2439_v46 = vadd.f32 %v2407_v58, %v2311_v0  ;;  %v2440_v35 = vadd.f32 %v2408_v24, %v2312_v42 }
 0x27b   : > { %v2566_v27 = vmul.f32 0.5, %v2534_v25 }
 0x27c   : > { %v2471_v61 = vmul.f32 0.7978846, %v2439_v46  ;;  %v2472_v33 = vmul.f32 0.7978846, %v2440_v35  ;;  %v2597_v1 = vmul.f32 %v2565_v9, %v5551_v49  ;;  %v3755_v49 = vld [vmem:[#allocation2 + $0x10] sm:$0xff] }
 0x27d   : > { %v2598_v36 = vmul.f32 %v2566_v27, %v5555_v60 }
 0x27e   : > { %3683 = vtanh.f32 %v2471_v61 }
 0x27f   : > { %v2615_v10 = vpack.c.bf16 %v2598_v36, %v2597_v1  ;;  %3685 = vtanh.f32 %v2472_v33 }
 0x281   : > { %3488 = vmatprep.mubr.bf16.mxu1 %v2615_v10 }
 0x282   : > { %v3462_v57 = vpop.f32.mrb[32].mxu0 }
 0x283   : > { %v2734_v13 = vadd.f32 %v3462_v57, %v5593_v50  ;;  %v2725_v18 = vpop.f32.mrb[33].mxu0 }
 0x284   : > { %v2726_v4 = vadd.f32 %v5593_v50, %v2725_v18  ;;  %v3463_v41 = vpop.f32.mrb[34].mxu0 }
 0x285   : > { %v2854_v63 = vadd.f32 %v3755_v49, %v2734_v13  ;;  %v2737_v60 = vadd.f32 %v3463_v41, %v5593_v50  ;;  %v2728_v53 = vpop.f32.mrb[35].mxu0 }
 0x286   : > { %v2852_v26 = vadd.f32 %v3756_v5, %v2726_v4  ;;  %v2729_v56 = vadd.f32 %v5593_v50, %v2728_v53  ;;  %v3759_v4 = vld [vmem:[#allocation2 + $0x30] sm:$0xff] }
 0x287   : > { %v2886_v23 = vmul.f32 %v2854_v63, %v2854_v63  ;;  %v2855_v15 = vadd.f32 %v3757_v31, %v2737_v60  ;;  %v3760_v60 = vld [vmem:[#allocation2 + $0x20] sm:$0xff] }
 0x288   : > { %v3684_v45 = vpop.eup %3683  ;;  %v2884_v11 = vmul.f32 %v2852_v26, %v2852_v26  ;;  %v2853_v7 = vadd.f32 %v3758_v17, %v2729_v56  ;;  %v3761_v56 = vld [vmem:[#allocation2 + $0x38] sm:$0xff] }
 0x289   : > { %v3686_v2 = vpop.eup %3685  ;;  %v2535_v55 = vadd.f32 1.0, %v3684_v45  ;;  %v2918_v19 = vmul.f32 %v2886_v23, %v2854_v63  ;;  %v2887_v51 = vmul.f32 %v2855_v15, %v2855_v15 }
 0x28a   : > { %v2536_v6 = vadd.f32 1.0, %v3686_v2  ;;  %v2916_v52 = vmul.f32 %v2884_v11, %v2852_v26  ;;  %v2885_v32 = vmul.f32 %v2853_v7, %v2853_v7 }
 0x28b   : > { %v2567_v8 = vmul.f32 0.5, %v2535_v55  ;;  %v2950_v37 = vmul.f32 0.044715, %v2918_v19  ;;  %v2919_v3 = vmul.f32 %v2887_v51, %v2855_v15 }
 0x28c   : > { %v2568_v14 = vmul.f32 0.5, %v2536_v6  ;;  %v2948_v20 = vmul.f32 0.044715, %v2916_v52  ;;  %v2917_v38 = vmul.f32 %v2885_v32, %v2853_v7 }
 0x28d   : > { %v2982_v16 = vadd.f32 %v2950_v37, %v2854_v63  ;;  %v2951_v30 = vmul.f32 0.044715, %v2919_v3  ;;  %v2599_v54 = vmul.f32 %v2567_v8, %v2311_v0 }
 0x28e   : > { %v2600_v62 = vmul.f32 %v2568_v14, %v2312_v42  ;;  %v2980_v12 = vadd.f32 %v2948_v20, %v2852_v26  ;;  %v2949_v22 = vmul.f32 0.044715, %v2917_v38 }
 0x28f   : > { %v3014_v29 = vmul.f32 0.7978846, %v2982_v16  ;;  %v2983_v39 = vadd.f32 %v2951_v30, %v2855_v15 }
 0x290   : > { %v2616_v34 = vpack.c.bf16 %v2600_v62, %v2599_v54  ;;  %v3012_v21 = vmul.f32 0.7978846, %v2980_v12  ;;  %v2981_v43 = vadd.f32 %v2949_v22, %v2853_v7 }
 0x291   : > { %3687 = vtanh.f32 %v3014_v29  ;;  %v3015_v40 = vmul.f32 0.7978846, %v2983_v39 }
 0x292   : > { %3489 = vmatmul.mubr.bf16.gmra.mrb[24].mxu1 %v2616_v34  ;;  %3689 = vtanh.f32 %v3012_v21  ;;  %v3013_v28 = vmul.f32 0.7978846, %v2981_v43 }
 0x293   : > { %3691 = vtanh.f32 %v3015_v40 }
 0x294   : > { %3693 = vtanh.f32 %v3013_v28 }
 0x29b   : > { %v3688_v59 = vpop.eup %3687 }
 0x29c   : > { %v3690_v48 = vpop.eup %3689  ;;  %v3078_v47 = vadd.f32 1.0, %v3688_v59 }
 0x29d   : > { %v3692_v44 = vpop.eup %3691  ;;  %v3076_v0 = vadd.f32 1.0, %v3690_v48 }
 0x29e   : > { %v3694_v42 = vpop.eup %3693  ;;  %v3110_v58 = vmul.f32 0.5, %v3078_v47  ;;  %v3079_v24 = vadd.f32 1.0, %v3692_v44 }
 0x29f   : > { %v3108_v25 = vmul.f32 0.5, %v3076_v0  ;;  %v3077_v9 = vadd.f32 1.0, %v3694_v42 }
 0x2a0   : > { %v5599_v46 = vmul.f32 %v3110_v58, %v2854_v63  ;;  %v3111_v35 = vmul.f32 0.5, %v3079_v24 }
 0x2a1   : > { %v5601_v27 = vmul.f32 %v3108_v25, %v2852_v26  ;;  %v3109_v61 = vmul.f32 0.5, %v3077_v9  ;;  %v3466_v33 = vpop.f32.mrb[0].mxu1 }
 0x2a2   : > { %3174 = vst.msk [vmem:[#allocation2 + $0x10] sm:$0xff] %vm481_vm1, %v5599_v46  ;;  %v5605_v1 = vmul.f32 %v3111_v35, %v2855_v15  ;;  %v2750_v36 = vadd.f32 %v3466_v33, %v5593_v50  ;;  %v2741_v10 = vpop.f32.mrb[1].mxu1  ;;  %v3762_v15 = vld [vmem:[#allocation2 + $0x28] sm:$0xff]  ;;  %v3763_v35 = vld [vmem:[#allocation2 + $0x50] sm:$0xff]  ;;  %3210 = vst.msk [vmem:[%s3908_s14 + $0x10] sm:$0xff] (!%p3359_p7), %vm481_vm1, %v5599_v46 }
 0x2a3   : > { %3172 = vst.msk [vmem:[#allocation2] sm:$0xff] %vm481_vm1, %v5601_v27  ;;  %v5610_v57 = vmul.f32 %v3109_v61, %v2853_v7  ;;  %v2742_v13 = vadd.f32 %v5593_v50, %v2741_v10  ;;  %v3467_v18 = vpop.f32.mrb[2].mxu1  ;;  %v3764_v10 = vld [vmem:[#allocation2 + $0x40] sm:$0xff]  ;;  %3208 = vst.msk [vmem:[%s3908_s14] sm:$0xff] (!%p3359_p7), %vm481_vm1, %v5601_v27 }
 0x2a4   : > { %3175 = vst.msk [vmem:[#allocation2 + $0x18] sm:$0xff] %vm481_vm1, %v5605_v1  ;;  %v2858_v41 = vadd.f32 %v3759_v4, %v2750_v36  ;;  %v2753_v49 = vadd.f32 %v3467_v18, %v5593_v50  ;;  %v2744_v63 = vpop.f32.mrb[3].mxu1  ;;  %3211 = vst.msk [vmem:[%s3908_s14 + $0x18] sm:$0xff] (!%p3359_p7), %vm481_vm1, %v5605_v1 }
 0x2a5   : > { %3173 = vst.msk [vmem:[#allocation2 + $0x8] sm:$0xff] %vm481_vm1, %v5610_v57  ;;  %v2856_v53 = vadd.f32 %v3760_v60, %v2742_v13  ;;  %v2745_v5 = vadd.f32 %v5593_v50, %v2744_v63  ;;  %v3766_v60 = vld [vmem:[#allocation2 + $0x48] sm:$0xff]  ;;  %3209 = vst.msk [vmem:[%s3908_s14 + $0x8] sm:$0xff] (!%p3359_p7), %vm481_vm1, %v5610_v57 }
 0x2a6   : > { %v2890_v26 = vmul.f32 %v2858_v41, %v2858_v41  ;;  %v2859_v23 = vadd.f32 %v3761_v56, %v2753_v49 }
 0x2a7   : > { %v2888_v31 = vmul.f32 %v2856_v53, %v2856_v53  ;;  %v2857_v45 = vadd.f32 %v3762_v15, %v2745_v5 }
 0x2a8   : > { %v2922_v11 = vmul.f32 %v2890_v26, %v2858_v41  ;;  %v2891_v17 = vmul.f32 %v2859_v23, %v2859_v23 }
 0x2a9   : > { %v2920_v7 = vmul.f32 %v2888_v31, %v2856_v53  ;;  %v2889_v2 = vmul.f32 %v2857_v45, %v2857_v45 }
 0x2aa   : > { %v2954_v55 = vmul.f32 0.044715, %v2922_v11  ;;  %v2923_v19 = vmul.f32 %v2891_v17, %v2859_v23 }
 0x2ab   : > { %v2952_v51 = vmul.f32 0.044715, %v2920_v7  ;;  %v2921_v6 = vmul.f32 %v2889_v2, %v2857_v45 }
 0x2ac   : > { %v2986_v52 = vadd.f32 %v2954_v55, %v2858_v41  ;;  %v2955_v32 = vmul.f32 0.044715, %v2923_v19 }
 0x2ad   : > { %v2984_v8 = vadd.f32 %v2952_v51, %v2856_v53  ;;  %v2953_v37 = vmul.f32 0.044715, %v2921_v6 }
 0x2ae   : > { %v3018_v3 = vmul.f32 0.7978846, %v2986_v52  ;;  %v2987_v14 = vadd.f32 %v2955_v32, %v2859_v23 }
 0x2af   : > { %v3016_v20 = vmul.f32 0.7978846, %v2984_v8  ;;  %v2985_v38 = vadd.f32 %v2953_v37, %v2857_v45 }
 0x2b0   : > { %3695 = vtanh.f32 %v3018_v3  ;;  %v3019_v16 = vmul.f32 0.7978846, %v2987_v14 }
 0x2b1   : > { %3697 = vtanh.f32 %v3016_v20  ;;  %v3017_v30 = vmul.f32 0.7978846, %v2985_v38 }
 0x2b2   : > { %3699 = vtanh.f32 %v3019_v16 }
 0x2b3   : > { %3701 = vtanh.f32 %v3017_v30 }
 0x2ba   : > { %v3696_v54 = vpop.eup %3695 }
 0x2bb   : > { %v3698_v62 = vpop.eup %3697  ;;  %v3082_v12 = vadd.f32 1.0, %v3696_v54 }
 0x2bc   : > { %v3700_v22 = vpop.eup %3699  ;;  %v3080_v29 = vadd.f32 1.0, %v3698_v62 }
 0x2bd   : > { %v3702_v39 = vpop.eup %3701  ;;  %v3114_v34 = vmul.f32 0.5, %v3082_v12  ;;  %v3083_v21 = vadd.f32 1.0, %v3700_v22 }
 0x2be   : > { %v3112_v43 = vmul.f32 0.5, %v3080_v29  ;;  %v3081_v40 = vadd.f32 1.0, %v3702_v39 }
 0x2bf   : > { %v5619_v28 = vmul.f32 %v3114_v34, %v2858_v41  ;;  %v3115_v59 = vmul.f32 0.5, %v3083_v21  ;;  %v3765_v41 = vld [vmem:[#allocation2 + $0x58] sm:$0xff] }
 0x2c0   : > { %v5621_v48 = vmul.f32 %v3112_v43, %v2856_v53  ;;  %v3113_v47 = vmul.f32 0.5, %v3081_v40 }
 0x2c1   : > { %3178 = vst.msk [vmem:[#allocation2 + $0x30] sm:$0xff] %vm481_vm1, %v5619_v28  ;;  %v5625_v44 = vmul.f32 %v3115_v59, %v2859_v23  ;;  %3214 = vst.msk [vmem:[%s3908_s14 + $0x30] sm:$0xff] (!%p3359_p7), %vm481_vm1, %v5619_v28 }
 0x2c2   : > { %3176 = vst.msk [vmem:[#allocation2 + $0x20] sm:$0xff] %vm481_vm1, %v5621_v48  ;;  %v5629_v0 = vmul.f32 %v3113_v47, %v2857_v45  ;;  %v3470_v42 = vpop.f32.mrb[4].mxu1  ;;  %3212 = vst.msk [vmem:[%s3908_s14 + $0x20] sm:$0xff] (!%p3359_p7), %vm481_vm1, %v5621_v48 }
 0x2c3   : > { %3179 = vst.msk [vmem:[#allocation2 + $0x38] sm:$0xff] %vm481_vm1, %v5625_v44  ;;  %v2766_v58 = vadd.f32 %v3470_v42, %v5593_v50  ;;  %v2757_v24 = vpop.f32.mrb[5].mxu1  ;;  %3215 = vst.msk [vmem:[%s3908_s14 + $0x38] sm:$0xff] (!%p3359_p7), %vm481_vm1, %v5625_v44 }
 0x2c4   : > { %3177 = vst.msk [vmem:[#allocation2 + $0x28] sm:$0xff] %vm481_vm1, %v5629_v0  ;;  %v2758_v25 = vadd.f32 %v5593_v50, %v2757_v24  ;;  %v3471_v9 = vpop.f32.mrb[6].mxu1  ;;  %v3767_v24 = vld [vmem:[#allocation2 + $0x70] sm:$0xff]  ;;  %3213 = vst.msk [vmem:[%s3908_s14 + $0x28] sm:$0xff] (!%p3359_p7), %vm481_vm1, %v5629_v0 }
 0x2c5   : > { %v2862_v61 = vadd.f32 %v3763_v35, %v2766_v58  ;;  %v2769_v33 = vadd.f32 %v3471_v9, %v5593_v50  ;;  %v2760_v36 = vpop.f32.mrb[7].mxu1 }
 0x2c6   : > { %v2860_v13 = vadd.f32 %v3764_v10, %v2758_v25  ;;  %v2761_v18 = vadd.f32 %v5593_v50, %v2760_v36 }
 0x2c7   : > { %v2894_v4 = vmul.f32 %v2862_v61, %v2862_v61  ;;  %v2863_v49 = vadd.f32 %v3765_v41, %v2769_v33  ;;  %v3770_v41 = vld [vmem:[#allocation2 + $0x68] sm:$0xff] }
 0x2c8   : > { %v2892_v63 = vmul.f32 %v2860_v13, %v2860_v13  ;;  %v2861_v53 = vadd.f32 %v3766_v60, %v2761_v18 }
 0x2c9   : > { %v2926_v5 = vmul.f32 %v2894_v4, %v2862_v61  ;;  %v2895_v26 = vmul.f32 %v2863_v49, %v2863_v49 }
 0x2ca   : > { %v2924_v56 = vmul.f32 %v2892_v63, %v2860_v13  ;;  %v2893_v23 = vmul.f32 %v2861_v53, %v2861_v53 }
 0x2cb   : > { %v2958_v31 = vmul.f32 0.044715, %v2926_v5  ;;  %v2927_v15 = vmul.f32 %v2895_v26, %v2863_v49 }
 0x2cc   : > { %v2956_v45 = vmul.f32 0.044715, %v2924_v56  ;;  %v2925_v11 = vmul.f32 %v2893_v23, %v2861_v53 }
 0x2cd   : > { %v2990_v17 = vadd.f32 %v2958_v31, %v2862_v61  ;;  %v2959_v7 = vmul.f32 0.044715, %v2927_v15 }
 0x2ce   : > { %v2988_v2 = vadd.f32 %v2956_v45, %v2860_v13  ;;  %v2957_v55 = vmul.f32 0.044715, %v2925_v11 }
 0x2cf   : > { %v3022_v19 = vmul.f32 0.7978846, %v2990_v17  ;;  %v2991_v51 = vadd.f32 %v2959_v7, %v2863_v49 }
 0x2d0   : > { %v3020_v6 = vmul.f32 0.7978846, %v2988_v2  ;;  %v2989_v52 = vadd.f32 %v2957_v55, %v2861_v53 }
 0x2d1   : > { %3703 = vtanh.f32 %v3022_v19  ;;  %v3023_v32 = vmul.f32 0.7978846, %v2991_v51 }
 0x2d2   : > { %3705 = vtanh.f32 %v3020_v6  ;;  %v3021_v8 = vmul.f32 0.7978846, %v2989_v52 }
 0x2d3   : > { %3707 = vtanh.f32 %v3023_v32 }
 0x2d4   : > { %3709 = vtanh.f32 %v3021_v8 }
 0x2db   : > { %v3704_v37 = vpop.eup %3703 }
 0x2dc   : > { %v3706_v3 = vpop.eup %3705  ;;  %v3086_v14 = vadd.f32 1.0, %v3704_v37 }
 0x2dd   : > { %v3708_v20 = vpop.eup %3707  ;;  %v3084_v38 = vadd.f32 1.0, %v3706_v3 }
 0x2de   : > { %v3710_v16 = vpop.eup %3709  ;;  %v3118_v30 = vmul.f32 0.5, %v3086_v14  ;;  %v3087_v54 = vadd.f32 1.0, %v3708_v20 }
 0x2df   : > { %v3116_v62 = vmul.f32 0.5, %v3084_v38  ;;  %v3085_v12 = vadd.f32 1.0, %v3710_v16 }
 0x2e0   : > { %v5639_v22 = vmul.f32 %v3118_v30, %v2862_v61  ;;  %v3119_v29 = vmul.f32 0.5, %v3087_v54  ;;  %v3768_v61 = vld [vmem:[#allocation2 + $0x60] sm:$0xff] }
 0x2e1   : > { %v5641_v39 = vmul.f32 %v3116_v62, %v2860_v13  ;;  %v3117_v34 = vmul.f32 0.5, %v3085_v12  ;;  %v3769_v13 = vld [vmem:[#allocation2 + $0x78] sm:$0xff] }
 0x2e2   : > { %3182 = vst.msk [vmem:[#allocation2 + $0x50] sm:$0xff] %vm481_vm1, %v5639_v22  ;;  %v5645_v21 = vmul.f32 %v3119_v29, %v2863_v49  ;;  %3218 = vst.msk [vmem:[%s3908_s14 + $0x50] sm:$0xff] (!%p3359_p7), %vm481_vm1, %v5639_v22 }
 0x2e3   : > { %3180 = vst.msk [vmem:[#allocation2 + $0x40] sm:$0xff] %vm481_vm1, %v5641_v39  ;;  %v5649_v43 = vmul.f32 %v3117_v34, %v2861_v53  ;;  %v3474_v40 = vpop.f32.mrb[8].mxu1  ;;  %3216 = vst.msk [vmem:[%s3908_s14 + $0x40] sm:$0xff] (!%p3359_p7), %vm481_vm1, %v5641_v39 }
 0x2e4   : > { %3183 = vst.msk [vmem:[#allocation2 + $0x58] sm:$0xff] %vm481_vm1, %v5645_v21  ;;  %v2782_v59 = vadd.f32 %v3474_v40, %v5593_v50  ;;  %v2773_v47 = vpop.f32.mrb[9].mxu1  ;;  %3219 = vst.msk [vmem:[%s3908_s14 + $0x58] sm:$0xff] (!%p3359_p7), %vm481_vm1, %v5645_v21 }
 0x2e5   : > { %3181 = vst.msk [vmem:[#allocation2 + $0x48] sm:$0xff] %vm481_vm1, %v5649_v43  ;;  %v2774_v42 = vadd.f32 %v5593_v50, %v2773_v47  ;;  %v3475_v58 = vpop.f32.mrb[10].mxu1  ;;  %3217 = vst.msk [vmem:[%s3908_s14 + $0x48] sm:$0xff] (!%p3359_p7), %vm481_vm1, %v5649_v43 }
 0x2e6   : > { %v2866_v25 = vadd.f32 %v3767_v24, %v2782_v59  ;;  %v2785_v9 = vadd.f32 %v3475_v58, %v5593_v50  ;;  %v2776_v35 = vpop.f32.mrb[11].mxu1 }
 0x2e7   : > { %v2864_v33 = vadd.f32 %v3768_v61, %v2774_v42  ;;  %v2777_v36 = vadd.f32 %v5593_v50, %v2776_v35 }
 0x2e8   : > { %v2898_v10 = vmul.f32 %v2866_v25, %v2866_v25  ;;  %v2867_v18 = vadd.f32 %v3769_v13, %v2785_v9 }
 0x2e9   : > { %v2896_v4 = vmul.f32 %v2864_v33, %v2864_v33  ;;  %v2865_v49 = vadd.f32 %v3770_v41, %v2777_v36 }
 0x2ea   : > { %v2930_v63 = vmul.f32 %v2898_v10, %v2866_v25  ;;  %v2899_v60 = vmul.f32 %v2867_v18, %v2867_v18 }
 0x2eb   : > { %v2928_v53 = vmul.f32 %v2896_v4, %v2864_v33  ;;  %v2897_v5 = vmul.f32 %v2865_v49, %v2865_v49 }
 0x2ec   : > { %v2962_v26 = vmul.f32 0.044715, %v2930_v63  ;;  %v2931_v56 = vmul.f32 %v2899_v60, %v2867_v18 }
 0x2ed   : > { %v2960_v23 = vmul.f32 0.044715, %v2928_v53  ;;  %v2929_v31 = vmul.f32 %v2897_v5, %v2865_v49 }
 0x2ee   : > { %v2994_v15 = vadd.f32 %v2962_v26, %v2866_v25  ;;  %v2963_v45 = vmul.f32 0.044715, %v2931_v56 }
 0x2ef   : > { %v2992_v11 = vadd.f32 %v2960_v23, %v2864_v33  ;;  %v2961_v17 = vmul.f32 0.044715, %v2929_v31 }
 0x2f0   : > { %v3026_v7 = vmul.f32 0.7978846, %v2994_v15  ;;  %v2995_v2 = vadd.f32 %v2963_v45, %v2867_v18 }
 0x2f1   : > { %v3024_v55 = vmul.f32 0.7978846, %v2992_v11  ;;  %v2993_v19 = vadd.f32 %v2961_v17, %v2865_v49 }
 0x2f2   : > { %3711 = vtanh.f32 %v3026_v7  ;;  %v3027_v51 = vmul.f32 0.7978846, %v2995_v2 }
 0x2f3   : > { %3713 = vtanh.f32 %v3024_v55  ;;  %v3025_v6 = vmul.f32 0.7978846, %v2993_v19 }
 0x2f4   : > { %3715 = vtanh.f32 %v3027_v51 }
 0x2f5   : > { %3717 = vtanh.f32 %v3025_v6 }
 0x2fc   : > { %v3712_v52 = vpop.eup %3711 }
 0x2fd   : > { %v3714_v32 = vpop.eup %3713  ;;  %v3090_v8 = vadd.f32 1.0, %v3712_v52 }
 0x2fe   : > { %v3716_v37 = vpop.eup %3715  ;;  %v3088_v3 = vadd.f32 1.0, %v3714_v32 }
 0x2ff   : > { %v3718_v14 = vpop.eup %3717  ;;  %v3122_v20 = vmul.f32 0.5, %v3090_v8  ;;  %v3091_v38 = vadd.f32 1.0, %v3716_v37 }
 0x300   : > { %v3120_v16 = vmul.f32 0.5, %v3088_v3  ;;  %v3089_v30 = vadd.f32 1.0, %v3718_v14 }
 0x301   : > { %v5659_v54 = vmul.f32 %v3122_v20, %v2866_v25  ;;  %v3123_v62 = vmul.f32 0.5, %v3091_v38  ;;  %v3771_v25 = vld [vmem:[#allocation2 + $0x90] sm:$0xff] }
 0x302   : > { %v5661_v12 = vmul.f32 %v3120_v16, %v2864_v33  ;;  %v3121_v29 = vmul.f32 0.5, %v3089_v30  ;;  %v3478_v34 = vpop.f32.mrb[12].mxu1  ;;  %v3772_v33 = vld [vmem:[#allocation2 + $0x80] sm:$0xff] }
 0x303   : > { %3186 = vst.msk [vmem:[#allocation2 + $0x70] sm:$0xff] %vm481_vm1, %v5659_v54  ;;  %v5665_v40 = vmul.f32 %v3123_v62, %v2867_v18  ;;  %v2798_v59 = vadd.f32 %v3478_v34, %v5593_v50  ;;  %v2789_v47 = vpop.f32.mrb[13].mxu1  ;;  %v3773_v18 = vld [vmem:[#allocation2 + $0x98] sm:$0xff]  ;;  %3222 = vst.msk [vmem:[%s3908_s14 + $0x70] sm:$0xff] (!%p3359_p7), %vm481_vm1, %v5659_v54 }
 0x304   : > { %3184 = vst.msk [vmem:[#allocation2 + $0x60] sm:$0xff] %vm481_vm1, %v5661_v12  ;;  %v5670_v42 = vmul.f32 %v3121_v29, %v2865_v49  ;;  %v2790_v58 = vadd.f32 %v5593_v50, %v2789_v47  ;;  %v3479_v24 = vpop.f32.mrb[14].mxu1  ;;  %v3774_v49 = vld [vmem:[#allocation2 + $0x88] sm:$0xff]  ;;  %3220 = vst.msk [vmem:[%s3908_s14 + $0x60] sm:$0xff] (!%p3359_p7), %vm481_vm1, %v5661_v12 }
 0x305   : > { %3187 = vst.msk [vmem:[#allocation2 + $0x78] sm:$0xff] %vm481_vm1, %v5665_v40  ;;  %v2870_v9 = vadd.f32 %v3771_v25, %v2798_v59  ;;  %v2801_v35 = vadd.f32 %v3479_v24, %v5593_v50  ;;  %v2792_v61 = vpop.f32.mrb[15].mxu1  ;;  %3223 = vst.msk [vmem:[%s3908_s14 + $0x78] sm:$0xff] (!%p3359_p7), %vm481_vm1, %v5665_v40 }
 0x306   : > { %3185 = vst.msk [vmem:[#allocation2 + $0x68] sm:$0xff] %vm481_vm1, %v5670_v42  ;;  %v2868_v36 = vadd.f32 %v3772_v33, %v2790_v58  ;;  %v2793_v10 = vadd.f32 %v5593_v50, %v2792_v61  ;;  %3221 = vst.msk [vmem:[%s3908_s14 + $0x68] sm:$0xff] (!%p3359_p7), %vm481_vm1, %v5670_v42 }
 0x307   : > { %v2902_v13 = vmul.f32 %v2870_v9, %v2870_v9  ;;  %v2871_v4 = vadd.f32 %v3773_v18, %v2801_v35 }
 0x308   : > { %v2900_v41 = vmul.f32 %v2868_v36, %v2868_v36  ;;  %v2869_v63 = vadd.f32 %v3774_v49, %v2793_v10 }
 0x309   : > { %v2934_v60 = vmul.f32 %v2902_v13, %v2870_v9  ;;  %v2903_v53 = vmul.f32 %v2871_v4, %v2871_v4 }
 0x30a   : > { %v2932_v5 = vmul.f32 %v2900_v41, %v2868_v36  ;;  %v2901_v26 = vmul.f32 %v2869_v63, %v2869_v63 }
 0x30b   : > { %v2966_v56 = vmul.f32 0.044715, %v2934_v60  ;;  %v2935_v23 = vmul.f32 %v2903_v53, %v2871_v4  ;;  %v3777_v60 = vld [vmem:[#allocation2 + $0xb8] sm:$0xff] }
 0x30c   : > { %v2964_v31 = vmul.f32 0.044715, %v2932_v5  ;;  %v2933_v15 = vmul.f32 %v2901_v26, %v2869_v63  ;;  %v3778_v26 = vld [vmem:[#allocation2 + $0xa8] sm:$0xff] }
 0x30d   : > { %v2998_v45 = vadd.f32 %v2966_v56, %v2870_v9  ;;  %v2967_v11 = vmul.f32 0.044715, %v2935_v23 }
 0x30e   : > { %v2996_v17 = vadd.f32 %v2964_v31, %v2868_v36  ;;  %v2965_v7 = vmul.f32 0.044715, %v2933_v15 }
 0x30f   : > { %v3030_v2 = vmul.f32 0.7978846, %v2998_v45  ;;  %v2999_v55 = vadd.f32 %v2967_v11, %v2871_v4 }
 0x310   : > { %v3028_v19 = vmul.f32 0.7978846, %v2996_v17  ;;  %v2997_v51 = vadd.f32 %v2965_v7, %v2869_v63 }
 0x311   : > { %3719 = vtanh.f32 %v3030_v2  ;;  %v3031_v6 = vmul.f32 0.7978846, %v2999_v55 }
 0x312   : > { %3721 = vtanh.f32 %v3028_v19  ;;  %v3029_v52 = vmul.f32 0.7978846, %v2997_v51 }
 0x313   : > { %3723 = vtanh.f32 %v3031_v6 }
 0x314   : > { %3725 = vtanh.f32 %v3029_v52 }
 0x31b   : > { %v3720_v32 = vpop.eup %3719 }
 0x31c   : > { %v3722_v8 = vpop.eup %3721  ;;  %v3094_v37 = vadd.f32 1.0, %v3720_v32 }
 0x31d   : > { %v3724_v3 = vpop.eup %3723  ;;  %v3092_v14 = vadd.f32 1.0, %v3722_v8 }
 0x31e   : > { %v3726_v20 = vpop.eup %3725  ;;  %v3126_v38 = vmul.f32 0.5, %v3094_v37  ;;  %v3095_v16 = vadd.f32 1.0, %v3724_v3 }
 0x31f   : > { %v3124_v30 = vmul.f32 0.5, %v3092_v14  ;;  %v3093_v62 = vadd.f32 1.0, %v3726_v20 }
 0x320   : > { %v5679_v29 = vmul.f32 %v3126_v38, %v2870_v9  ;;  %v3127_v34 = vmul.f32 0.5, %v3095_v16 }
 0x321   : > { %v5681_v59 = vmul.f32 %v3124_v30, %v2868_v36  ;;  %v3125_v47 = vmul.f32 0.5, %v3093_v62  ;;  %v3775_v36 = vld [vmem:[#allocation2 + $0xb0] sm:$0xff] }
 0x322   : > { %3190 = vst.msk [vmem:[#allocation2 + $0x90] sm:$0xff] %vm481_vm1, %v5679_v29  ;;  %v5685_v58 = vmul.f32 %v3127_v34, %v2871_v4  ;;  %v3776_v4 = vld [vmem:[#allocation2 + $0xa0] sm:$0xff]  ;;  %3226 = vst.msk [vmem:[%s3908_s14 + $0x90] sm:$0xff] (!%p3359_p7), %vm481_vm1, %v5679_v29 }
 0x323   : > { %3188 = vst.msk [vmem:[#allocation2 + $0x80] sm:$0xff] %vm481_vm1, %v5681_v59  ;;  %v5689_v24 = vmul.f32 %v3125_v47, %v2869_v63  ;;  %v3482_v25 = vpop.f32.mrb[16].mxu1  ;;  %3224 = vst.msk [vmem:[%s3908_s14 + $0x80] sm:$0xff] (!%p3359_p7), %vm481_vm1, %v5681_v59 }
 0x324   : > { %3191 = vst.msk [vmem:[#allocation2 + $0x98] sm:$0xff] %vm481_vm1, %v5685_v58  ;;  %v2814_v9 = vadd.f32 %v3482_v25, %v5593_v50  ;;  %v2805_v35 = vpop.f32.mrb[17].mxu1  ;;  %3227 = vst.msk [vmem:[%s3908_s14 + $0x98] sm:$0xff] (!%p3359_p7), %vm481_vm1, %v5685_v58 }
 0x325   : > { %3189 = vst.msk [vmem:[#allocation2 + $0x88] sm:$0xff] %vm481_vm1, %v5689_v24  ;;  %v2806_v61 = vadd.f32 %v5593_v50, %v2805_v35  ;;  %v3483_v33 = vpop.f32.mrb[18].mxu1  ;;  %3225 = vst.msk [vmem:[%s3908_s14 + $0x88] sm:$0xff] (!%p3359_p7), %vm481_vm1, %v5689_v24 }
 0x326   : > { %v2874_v10 = vadd.f32 %v3775_v36, %v2814_v9  ;;  %v2817_v13 = vadd.f32 %v3483_v33, %v5593_v50  ;;  %v2808_v18 = vpop.f32.mrb[19].mxu1 }
 0x327   : > { %v2872_v41 = vadd.f32 %v3776_v4, %v2806_v61  ;;  %v2809_v49 = vadd.f32 %v5593_v50, %v2808_v18 }
 0x328   : > { %v2906_v63 = vmul.f32 %v2874_v10, %v2874_v10  ;;  %v2875_v53 = vadd.f32 %v3777_v60, %v2817_v13 }
 0x329   : > { %v2904_v5 = vmul.f32 %v2872_v41, %v2872_v41  ;;  %v2873_v56 = vadd.f32 %v3778_v26, %v2809_v49 }
 0x32a   : > { %v2938_v23 = vmul.f32 %v2906_v63, %v2874_v10  ;;  %v2907_v31 = vmul.f32 %v2875_v53, %v2875_v53 }
 0x32b   : > { %v2936_v15 = vmul.f32 %v2904_v5, %v2872_v41  ;;  %v2905_v45 = vmul.f32 %v2873_v56, %v2873_v56 }
 0x32c   : > { %v2970_v11 = vmul.f32 0.044715, %v2938_v23  ;;  %v2939_v17 = vmul.f32 %v2907_v31, %v2875_v53 }
 0x32d   : > { %v2968_v7 = vmul.f32 0.044715, %v2936_v15  ;;  %v2937_v2 = vmul.f32 %v2905_v45, %v2873_v56 }
 0x32e   : > { %v3002_v55 = vadd.f32 %v2970_v11, %v2874_v10  ;;  %v2971_v19 = vmul.f32 0.044715, %v2939_v17  ;;  %v3781_v11 = vld [vmem:[#allocation2 + $0xd8] sm:$0xff] }
 0x32f   : > { %v3000_v51 = vadd.f32 %v2968_v7, %v2872_v41  ;;  %v2969_v6 = vmul.f32 0.044715, %v2937_v2  ;;  %v3782_v2 = vld [vmem:[#allocation2 + $0xc8] sm:$0xff] }
 0x330   : > { %v3034_v52 = vmul.f32 0.7978846, %v3002_v55  ;;  %v3003_v32 = vadd.f32 %v2971_v19, %v2875_v53 }
 0x331   : > { %v3032_v8 = vmul.f32 0.7978846, %v3000_v51  ;;  %v3001_v37 = vadd.f32 %v2969_v6, %v2873_v56 }
 0x332   : > { %3727 = vtanh.f32 %v3034_v52  ;;  %v3035_v3 = vmul.f32 0.7978846, %v3003_v32 }
 0x333   : > { %3729 = vtanh.f32 %v3032_v8  ;;  %v3033_v14 = vmul.f32 0.7978846, %v3001_v37 }
 0x334   : > { %3731 = vtanh.f32 %v3035_v3 }
 0x335   : > { %3733 = vtanh.f32 %v3033_v14 }
 0x33c   : > { %v3728_v20 = vpop.eup %3727 }
 0x33d   : > { %v3730_v38 = vpop.eup %3729  ;;  %v3098_v16 = vadd.f32 1.0, %v3728_v20 }
 0x33e   : > { %v3732_v30 = vpop.eup %3731  ;;  %v3096_v62 = vadd.f32 1.0, %v3730_v38 }
 0x33f   : > { %v3734_v34 = vpop.eup %3733  ;;  %v3130_v47 = vmul.f32 0.5, %v3098_v16  ;;  %v3099_v25 = vadd.f32 1.0, %v3732_v30 }
 0x340   : > { %v3128_v9 = vmul.f32 0.5, %v3096_v62  ;;  %v3097_v35 = vadd.f32 1.0, %v3734_v34 }
 0x341   : > { %v5699_v61 = vmul.f32 %v3130_v47, %v2874_v10  ;;  %v3131_v33 = vmul.f32 0.5, %v3099_v25 }
 0x342   : > { %v5701_v36 = vmul.f32 %v3128_v9, %v2872_v41  ;;  %v3129_v13 = vmul.f32 0.5, %v3097_v35 }
 0x343   : > { %3194 = vst.msk [vmem:[#allocation2 + $0xb0] sm:$0xff] %vm481_vm1, %v5699_v61  ;;  %v5705_v18 = vmul.f32 %v3131_v33, %v2875_v53  ;;  %v3779_v53 = vld [vmem:[#allocation2 + $0xd0] sm:$0xff]  ;;  %3230 = vst.msk [vmem:[%s3908_s14 + $0xb0] sm:$0xff] (!%p3359_p7), %vm481_vm1, %v5699_v61 }
 0x344   : > { %3192 = vst.msk [vmem:[#allocation2 + $0xa0] sm:$0xff] %vm481_vm1, %v5701_v36  ;;  %v5709_v4 = vmul.f32 %v3129_v13, %v2873_v56  ;;  %v3486_v49 = vpop.f32.mrb[20].mxu1  ;;  %v3780_v56 = vld [vmem:[#allocation2 + $0xc0] sm:$0xff]  ;;  %3228 = vst.msk [vmem:[%s3908_s14 + $0xa0] sm:$0xff] (!%p3359_p7), %vm481_vm1, %v5701_v36 }
 0x345   : > { %3195 = vst.msk [vmem:[#allocation2 + $0xb8] sm:$0xff] %vm481_vm1, %v5705_v18  ;;  %v2830_v10 = vadd.f32 %v3486_v49, %v5593_v50  ;;  %v2821_v63 = vpop.f32.mrb[21].mxu1  ;;  %3231 = vst.msk [vmem:[%s3908_s14 + $0xb8] sm:$0xff] (!%p3359_p7), %vm481_vm1, %v5705_v18 }
 0x346   : > { %3193 = vst.msk [vmem:[#allocation2 + $0xa8] sm:$0xff] %vm481_vm1, %v5709_v4  ;;  %v2822_v41 = vadd.f32 %v5593_v50, %v2821_v63  ;;  %v3487_v60 = vpop.f32.mrb[22].mxu1  ;;  %3229 = vst.msk [vmem:[%s3908_s14 + $0xa8] sm:$0xff] (!%p3359_p7), %vm481_vm1, %v5709_v4 }
 0x347   : > { %v2878_v5 = vadd.f32 %v3779_v53, %v2830_v10  ;;  %v2833_v26 = vadd.f32 %v3487_v60, %v5593_v50  ;;  %v2824_v23 = vpop.f32.mrb[23].mxu1 }
 0x348   : > { %v2876_v31 = vadd.f32 %v3780_v56, %v2822_v41  ;;  %v2825_v15 = vadd.f32 %v5593_v50, %v2824_v23 }
 0x349   : > { %v2910_v45 = vmul.f32 %v2878_v5, %v2878_v5  ;;  %v2879_v17 = vadd.f32 %v3781_v11, %v2833_v26 }
 0x34a   : > { %v2908_v7 = vmul.f32 %v2876_v31, %v2876_v31  ;;  %v2877_v55 = vadd.f32 %v3782_v2, %v2825_v15 }
 0x34b   : > { %v2942_v19 = vmul.f32 %v2910_v45, %v2878_v5  ;;  %v2911_v51 = vmul.f32 %v2879_v17, %v2879_v17 }
 0x34c   : > { %v2940_v6 = vmul.f32 %v2908_v7, %v2876_v31  ;;  %v2909_v52 = vmul.f32 %v2877_v55, %v2877_v55 }
 0x34d   : > { %v2974_v32 = vmul.f32 0.044715, %v2942_v19  ;;  %v2943_v8 = vmul.f32 %v2911_v51, %v2879_v17 }
 0x34e   : > { %v2972_v37 = vmul.f32 0.044715, %v2940_v6  ;;  %v2941_v3 = vmul.f32 %v2909_v52, %v2877_v55 }
 0x34f   : > { %v3006_v14 = vadd.f32 %v2974_v32, %v2878_v5  ;;  %v2975_v20 = vmul.f32 0.044715, %v2943_v8 }
 0x350   : > { %v3004_v38 = vadd.f32 %v2972_v37, %v2876_v31  ;;  %v2973_v16 = vmul.f32 0.044715, %v2941_v3 }
 0x351   : > { %v3038_v30 = vmul.f32 0.7978846, %v3006_v14  ;;  %v3007_v62 = vadd.f32 %v2975_v20, %v2879_v17  ;;  %v3785_v14 = vld [vmem:[#allocation2 + $0xf8] sm:$0xff] }
 0x352   : > { %v3036_v34 = vmul.f32 0.7978846, %v3004_v38  ;;  %v3005_v47 = vadd.f32 %v2973_v16, %v2877_v55  ;;  %v3786_v16 = vld [vmem:[#allocation2 + $0xe8] sm:$0xff] }
 0x353   : > { %3735 = vtanh.f32 %v3038_v30  ;;  %v3039_v25 = vmul.f32 0.7978846, %v3007_v62 }
 0x354   : > { %3737 = vtanh.f32 %v3036_v34  ;;  %v3037_v9 = vmul.f32 0.7978846, %v3005_v47 }
 0x355   : > { %3739 = vtanh.f32 %v3039_v25 }
 0x356   : > { %3741 = vtanh.f32 %v3037_v9 }
 0x35d   : > { %v3736_v35 = vpop.eup %3735 }
 0x35e   : > { %v3738_v33 = vpop.eup %3737  ;;  %v3102_v13 = vadd.f32 1.0, %v3736_v35 }
 0x35f   : > { %v3740_v49 = vpop.eup %3739  ;;  %v3100_v10 = vadd.f32 1.0, %v3738_v33 }
 0x360   : > { %v3742_v63 = vpop.eup %3741  ;;  %v3134_v41 = vmul.f32 0.5, %v3102_v13  ;;  %v3103_v60 = vadd.f32 1.0, %v3740_v49 }
 0x361   : > { %v3132_v53 = vmul.f32 0.5, %v3100_v10  ;;  %v3101_v26 = vadd.f32 1.0, %v3742_v63 }
 0x362   : > { %v5719_v23 = vmul.f32 %v3134_v41, %v2878_v5  ;;  %v3135_v56 = vmul.f32 0.5, %v3103_v60 }
 0x363   : > { %v5721_v15 = vmul.f32 %v3132_v53, %v2876_v31  ;;  %v3133_v45 = vmul.f32 0.5, %v3101_v26 }
 0x364   : > { %3198 = vst.msk [vmem:[#allocation2 + $0xd0] sm:$0xff] %vm481_vm1, %v5719_v23  ;;  %v5725_v11 = vmul.f32 %v3135_v56, %v2879_v17  ;;  %v3783_v17 = vld [vmem:[#allocation2 + $0xf0] sm:$0xff]  ;;  %3234 = vst.msk [vmem:[%s3908_s14 + $0xd0] sm:$0xff] (!%p3359_p7), %vm481_vm1, %v5719_v23 }
 0x365   : > { %3196 = vst.msk [vmem:[#allocation2 + $0xc0] sm:$0xff] %vm481_vm1, %v5721_v15  ;;  %v5729_v7 = vmul.f32 %v3133_v45, %v2877_v55  ;;  %v3490_v2 = vpop.f32.mrb[24].mxu1  ;;  %v3784_v55 = vld [vmem:[#allocation2 + $0xe0] sm:$0xff]  ;;  %3232 = vst.msk [vmem:[%s3908_s14 + $0xc0] sm:$0xff] (!%p3359_p7), %vm481_vm1, %v5721_v15 }
 0x366   : > { %3199 = vst.msk [vmem:[#allocation2 + $0xd8] sm:$0xff] %vm481_vm1, %v5725_v11  ;;  %v2846_v5 = vadd.f32 %v3490_v2, %v5593_v50  ;;  %v2837_v19 = vpop.f32.mrb[25].mxu1  ;;  %3235 = vst.msk [vmem:[%s3908_s14 + $0xd8] sm:$0xff] (!%p3359_p7), %vm481_vm1, %v5725_v11 }
 0x367   : > { %3197 = vst.msk [vmem:[#allocation2 + $0xc8] sm:$0xff] %vm481_vm1, %v5729_v7  ;;  %v2838_v31 = vadd.f32 %v5593_v50, %v2837_v19  ;;  %v3491_v51 = vpop.f32.mrb[26].mxu1  ;;  %3233 = vst.msk [vmem:[%s3908_s14 + $0xc8] sm:$0xff] (!%p3359_p7), %vm481_vm1, %v5729_v7 }
 0x368   : > { %v2882_v6 = vadd.f32 %v3783_v17, %v2846_v5  ;;  %v2849_v52 = vadd.f32 %v3491_v51, %v5593_v50  ;;  %v2840_v32 = vpop.f32.mrb[27].mxu1 }
 0x369   : > { %v2880_v8 = vadd.f32 %v3784_v55, %v2838_v31  ;;  %v2841_v37 = vadd.f32 %v5593_v50, %v2840_v32 }
 0x36a   : > { %v2914_v3 = vmul.f32 %v2882_v6, %v2882_v6  ;;  %v2883_v20 = vadd.f32 %v3785_v14, %v2849_v52 }
 0x36b   : > { %v2912_v38 = vmul.f32 %v2880_v8, %v2880_v8  ;;  %v2881_v30 = vadd.f32 %v3786_v16, %v2841_v37 }
 0x36c   : > { %v2946_v62 = vmul.f32 %v2914_v3, %v2882_v6  ;;  %v2915_v34 = vmul.f32 %v2883_v20, %v2883_v20 }
 0x36d   : > { %v2944_v47 = vmul.f32 %v2912_v38, %v2880_v8  ;;  %v2913_v25 = vmul.f32 %v2881_v30, %v2881_v30 }
 0x36e   : > { %v2978_v9 = vmul.f32 0.044715, %v2946_v62  ;;  %v2947_v35 = vmul.f32 %v2915_v34, %v2883_v20 }
 0x36f   : > { %v2976_v33 = vmul.f32 0.044715, %v2944_v47  ;;  %v2945_v13 = vmul.f32 %v2913_v25, %v2881_v30 }
 0x370   : > { %v3010_v49 = vadd.f32 %v2978_v9, %v2882_v6  ;;  %v2979_v10 = vmul.f32 0.044715, %v2947_v35 }
 0x371   : > { %v3008_v63 = vadd.f32 %v2976_v33, %v2880_v8  ;;  %v2977_v41 = vmul.f32 0.044715, %v2945_v13 }
 0x372   : > { %v3042_v60 = vmul.f32 0.7978846, %v3010_v49  ;;  %v3011_v50 = vadd.f32 %v2979_v10, %v2883_v20 }
 0x373   : > { %v3040_v53 = vmul.f32 0.7978846, %v3008_v63  ;;  %v3009_v26 = vadd.f32 %v2977_v41, %v2881_v30 }
 0x374   : > { %3743 = vtanh.f32 %v3042_v60  ;;  %v3043_v56 = vmul.f32 0.7978846, %v3011_v50 }
 0x375   : > { %3745 = vtanh.f32 %v3040_v53  ;;  %v3041_v45 = vmul.f32 0.7978846, %v3009_v26 }
 0x376   : > { %3747 = vtanh.f32 %v3043_v56 }
 0x377   : > { %3749 = vtanh.f32 %v3041_v45 }
 0x37e   : > { %v3744_v2 = vpop.eup %3743 }
 0x37f   : > { %v3746_v5 = vpop.eup %3745  ;;  %v3106_v19 = vadd.f32 1.0, %v3744_v2 }
 0x380   : > { %v3748_v31 = vpop.eup %3747  ;;  %v3104_v51 = vadd.f32 1.0, %v3746_v5 }
 0x381   : > { %v3750_v17 = vpop.eup %3749  ;;  %v3138_v52 = vmul.f32 0.5, %v3106_v19  ;;  %v3107_v32 = vadd.f32 1.0, %v3748_v31 }
 0x382   : > { %v3136_v55 = vmul.f32 0.5, %v3104_v51  ;;  %v3105_v37 = vadd.f32 1.0, %v3750_v17  ;;  %3207 = sbr.rel (%p3359_p7) target bundleno = 905 (0x389), region = 56 }
 0x383   : > { %v3170_v3 = vmul.f32 %v3138_v52, %v2882_v6  ;;  %v3139_v14 = vmul.f32 0.5, %v3107_v32 }
 0x384   : > { %v3168_v38 = vmul.f32 %v3136_v55, %v2880_v8  ;;  %v3137_v16 = vmul.f32 0.5, %v3105_v37 }
 0x385   : > { %3202 = vst.msk [vmem:[#allocation2 + $0xf0] sm:$0xff] %vm481_vm1, %v3170_v3  ;;  %v3171_v62 = vmul.f32 %v3139_v14, %v2883_v20  ;;  %3238 = vst.msk [vmem:[%s3908_s14 + $0xf0] sm:$0xff] (!%p3359_p7), %vm481_vm1, %v3170_v3 }
 0x386   : > { %3200 = vst.msk [vmem:[#allocation2 + $0xe0] sm:$0xff] %vm481_vm1, %v3168_v38  ;;  %v3169_v34 = vmul.f32 %v3137_v16, %v2881_v30  ;;  %3236 = vst.msk [vmem:[%s3908_s14 + $0xe0] sm:$0xff] (!%p3359_p7), %vm481_vm1, %v3168_v38 }
 0x387   : > { %3203 = vst.msk [vmem:[#allocation2 + $0xf8] sm:$0xff] %vm481_vm1, %v3171_v62  ;;  %3239 = vst.msk [vmem:[%s3908_s14 + $0xf8] sm:$0xff] (!%p3359_p7), %vm481_vm1, %v3171_v62 }
 0x388   : > { %3201 = vst.msk [vmem:[#allocation2 + $0xe8] sm:$0xff] %vm481_vm1, %v3169_v34  ;;  %3237 = vst.msk [vmem:[%s3908_s14 + $0xe8] sm:$0xff] (!%p3359_p7), %vm481_vm1, %v3169_v34 }
 0x389 PF: > { %s17_s28 = sadd.s32 1, %s3825_s28   ;;  %s5884_s24 = smov %s3817_s26 }
 0x38a   : > { %p14_p8 = scmp.ge.s32.totalorder %s17_s28, 6   ;;  %s5885_s25 = smov %s3821_s27 }
 0x38b   : > { %s5886_s26 = smov %s5889_s29  ;;  %s5887_s27 = smov %s5893_s30 }
 0x38c   :  { %16 = sbr.rel (!%p14_p8) target bundleno = 3 (0x3), region = 95 }

</bundles_post_ra>
